<compile_context>
chip_gen: v7x
topology: tpu7x:2x2x1
jax: 0.10.0
libtpu: 0.0.40
codegen_flags: <defaults>
</compile_context>

<pallas_src>
import functools

import jax
import jax.numpy as jnp
from jax.experimental import pallas as pl
from jax.experimental.pallas import tpu as pltpu


def _rapn_kernel(nor_ref, abn_ref, w_ref, b_ref, wc_ref, bc_ref,
                 out_ref, x_all_ref, *, bblk, t, f):
    """One grid step: embedding (Conv1d k=3 p=1 + ReLU) + classifier for
    `bblk` normal + `bblk` abnormal clips, fused into one M = 2*bblk*t matmul
    problem.

    nor_ref / abn_ref : (bblk, t, f)    raw f32 input features
    w_ref             : (3, f, c)       conv weight, tap-major (compute dtype)
    b_ref             : (1, c)          conv bias (f32)
    wc_ref            : (1, c)          classifier weight row (f32)
    bc_ref            : (1, 1)          classifier bias, SMEM scalar (f32)
    out_ref           : (1, 2*bblk*t)   sigmoid scores, lane-dense
                                        (first bblk*t lanes = nor, rest = abn)
    x_all_ref         : (2*bblk*t, f)   VMEM scratch, compute dtype
    """
    r = bblk * t
    rows = 2 * r
    c = w_ref.shape[-1]
    cdt = x_all_ref.dtype

    # Stack nor+abn rows into one operand (cheap sublane copies); the
    # f32 -> compute-dtype cast happens here, not as a separate XLA pass.
    # (t should be a multiple of the sublane packing -- 8 for f32, 16 for bf16
    #  -- so this collapse is a free relayout; other t is correct but slower.)
    x_all_ref[0:r, :] = nor_ref[...].reshape(r, f).astype(cdt)
    x_all_ref[r:rows, :] = abn_ref[...].reshape(r, f).astype(cdt)
    x2d = x_all_ref[...]                                   # (rows, f)

    # Conv1d(k=3, pad=1): three K=f matmuls (no im2col concat); the tap
    # partials are combined with sublane rolls (XLU) + boundary masks below.
    p0 = jnp.dot(x2d, w_ref[0], preferred_element_type=jnp.float32)
    p1 = jnp.dot(x2d, w_ref[1], preferred_element_type=jnp.float32)
    p2 = jnp.dot(x2d, w_ref[2], preferred_element_type=jnp.float32)

    # y[row] = p0[row-1] + p1[row] + p2[row+1]; rows at a clip's time boundary
    # take zeros (Conv1d zero padding).  The same mask also kills cross-clip
    # leakage introduced by the flat (2*bblk*t) row layout.
    tpos = jax.lax.rem(jax.lax.broadcasted_iota(jnp.int32, (rows, 1), 0), t)
    prev = jnp.where(tpos == 0, 0.0, pltpu.roll(p0, shift=1, axis=0))
    nxt = jnp.where(tpos == t - 1, 0.0,
                    pltpu.roll(p2, shift=rows - 1, axis=0))   # == shift -1
    y = jnp.maximum(prev + p1 + nxt + b_ref[...], 0.0)        # (rows, c) f32

    # Classifier: eval-mode Dropout = identity; Linear(c, 1) as a VPU multiply
    # in the compute dtype + f32 lane-reduce (keeps the N=1 work off the MXU),
    # then Sigmoid on the EUP.  Output is written as one lane-dense block.
    wc3 = wc_ref[...].reshape(1, 1, c).astype(cdt)
    y3 = y.reshape(1, rows, c).astype(cdt)
    logits = jnp.sum(y3 * wc3, axis=-1, dtype=jnp.float32) + bc_ref[0, 0]
    out_ref[...] = jax.nn.sigmoid(logits)                     # (1, rows) f32


def _choose_batch_block(B, T):
    """Batch elements per side per grid step.

    Targets bblk*T >= 128 rows per side (so the fused nor+abn matmul has
    M = 2*bblk*T >= 256, filling the v6e/v7x 256-row MXU; v5e's 128x128 MXU is
    saturated earlier), while keeping G = B/bblk >= 2 and preferably even so
    both v7x TensorCores receive equal step counts.
    """
    bblk = max(1, min(B, pl.cdiv(128, T)))
    while B % bblk:
        bblk -= 1
    while bblk > 1 and ((B // bblk) < 2 or (B // bblk) % 2):
        bblk -= 1
        while B % bblk:
            bblk -= 1
    return max(1, bblk)


def rapn_forward(ref_nor, ref_abn, params, *, compute_dtype=jnp.float32,
                 batch_block=None):
    """Inference forward of RAPN (isTrain=False, gl=False).

    ref_nor, ref_abn : (B, T, F) float32 (kept f32 in HBM; cast in-kernel)
    Returns: p_score_nor (B, T) -- matches `return p_score_nor` in PyTorch --
             and the full p_score (2B, T) for inspection.
    """
    B, T, F = ref_nor.shape
    assert ref_abn.shape == (B, T, F)
    conv_w = params["conv_w"]            # (3, F, C) tap-major
    conv_b = params["conv_b"]            # (1, C)
    cls_w = params["cls_w"]              # (C, 1)
    cls_b = params["cls_b"]              # (1, 1)
    C = conv_w.shape[-1]

    bblk = batch_block if batch_block is not None else _choose_batch_block(B, T)
    assert B % bblk == 0
    G = B // bblk
    rows = 2 * bblk * T                  # fused matmul M / output lane width

    cdt = compute_dtype
    w = conv_w.astype(cdt)                               # tiny one-off cast
    b_row = conv_b.reshape(1, C).astype(jnp.float32)
    wc_row = cls_w.reshape(1, C).astype(jnp.float32)
    bc = cls_b.reshape(1, 1).astype(jnp.float32)

    kernel = functools.partial(_rapn_kernel, bblk=bblk, t=T, f=F)

    # Constant-index operands never change block -> single buffer is enough.
    const_buf = pl.Buffered(1)

    itemsize = jnp.dtype(cdt).itemsize
    cost = pl.CostEstimate(
        flops=2 * (2 * B * T) * F * C * 3 + 2 * (2 * B * T) * C,
        transcendentals=2 * B * T,
        bytes_accessed=(2 * B * T * F) * 4
                       + (3 * F * C) * itemsize + (2 * C + 1) * 4
                       + (2 * B * T) * 4)

    scores = pl.pallas_call(
        kernel,
        out_shape=jax.ShapeDtypeStruct((G, 1, rows), jnp.float32),
        grid_spec=pltpu.PrefetchScalarGridSpec(
            num_scalar_prefetch=0,
            grid=(G,),
            in_specs=[
                pl.BlockSpec((bblk, T, F), lambda i: (i, 0, 0)),
                pl.BlockSpec((bblk, T, F), lambda i: (i, 0, 0)),
                pl.BlockSpec((3, F, C), lambda i: (0, 0, 0),
                             pipeline_mode=const_buf),
                pl.BlockSpec((1, C), lambda i: (0, 0),
                             pipeline_mode=const_buf),
                pl.BlockSpec((1, C), lambda i: (0, 0),
                             pipeline_mode=const_buf),
                pl.BlockSpec(memory_space=pltpu.MemorySpace.SMEM),
            ],
            out_specs=pl.BlockSpec((None, 1, rows), lambda i: (i, 0, 0)),
            scratch_shapes=[pltpu.VMEM((rows, F), cdt)],
        ),
        compiler_params=pltpu.CompilerParams(
            dimension_semantics=("parallel",),
            vmem_limit_bytes=32 * 1024 * 1024),
        cost_estimate=cost,
    )(ref_nor, ref_abn, w, b_row, wc_row, bc)

    s = scores.reshape(G, 2, bblk, T)
    p_score_nor = s[:, 0].reshape(B, T)
    p_score_abn = s[:, 1].reshape(B, T)
    p_score = jnp.concatenate([p_score_nor, p_score_abn], axis=0)
    return p_score_nor, p_score


def rapn_reference(ref_nor, ref_abn, params):
    """Pure-JAX f32 reference of the same inference path (for validation)."""
    B, T, F = ref_nor.shape
    x = jnp.concatenate([ref_nor, ref_abn], axis=0)
    xp = jnp.pad(x, ((0, 0), (1, 1), (0, 0)))
    w = params["conv_w"]
    y = (xp[:, 0:T] @ w[0] + xp[:, 1:T + 1] @ w[1] + xp[:, 2:T + 2] @ w[2]
         + params["conv_b"])
    y = jnp.maximum(y, 0.0)
    s = jax.nn.sigmoid(y @ params["cls_w"] + params["cls_b"][0, 0])
    p_score = s[:, :, 0]
    return p_score[:B], p_score


def params_from_torch(conv_weight, conv_bias, lin_weight, lin_bias):
    """Convert PyTorch RAPN parameters to the layout this kernel expects.

    conv_weight : (C_out, C_in, 3) from nn.Conv1d -> (3, C_in, C_out) tap-major
                  (tap k multiplies x[t-1+k], matching Conv1d cross-correlation)
    conv_bias   : (C_out,)                        -> (1, C_out)
    lin_weight  : (1, C_out) from nn.Linear       -> (C_out, 1)
    lin_bias    : (1,)                            -> (1, 1)
    """
    return {
        "conv_w": jnp.transpose(jnp.asarray(conv_weight), (2, 1, 0)),
        "conv_b": jnp.asarray(conv_bias).reshape(1, -1),
        "cls_w": jnp.transpose(jnp.asarray(lin_weight), (1, 0)),
        "cls_b": jnp.asarray(lin_bias).reshape(1, 1),
    }


def init_params(key, feature_dim, out_feature_dim):
    """Deterministic synthetic init in PyTorch layouts, then converted."""
    k1, k2, k3, k4 = jax.random.split(key, 4)
    bound_c = (feature_dim * 3) ** -0.5
    conv_weight = jax.random.uniform(
        k1, (out_feature_dim, feature_dim, 3), jnp.float32, -bound_c, bound_c)
    conv_bias = jax.random.uniform(
        k2, (out_feature_dim,), jnp.float32, -bound_c, bound_c)
    bound_l = out_feature_dim ** -0.5
    lin_weight = jax.random.uniform(
        k3, (1, out_feature_dim), jnp.float32, -bound_l, bound_l)
    lin_bias = jax.random.uniform(k4, (1,), jnp.float32, -bound_l, bound_l)
    return params_from_torch(conv_weight, conv_bias, lin_weight, lin_bias)


if __name__ == "__main__":
    B, T, F, C = 16, 16, 32, 16   # batch, seq, feature_dim, out_feature_dim

    key = jax.random.PRNGKey(0)
    k_nor, k_abn, k_params, k_n2, k_a2 = jax.random.split(key, 5)
    ref_nor = jax.random.normal(k_nor, (B, T, F), jnp.float32)
    ref_abn = jax.random.normal(k_abn, (B, T, F), jnp.float32)
    params = init_params(k_params, F, C)

    # f32 matmul path (tight tolerance).  bblk=8 -> G=2, M=256, 256 lanes out.
    fwd_f32 = jax.jit(functools.partial(rapn_forward, compute_dtype=jnp.float32))
    p_nor32, p_all32 = fwd_f32(ref_nor, ref_abn, params)
    jax.block_until_ready(p_nor32)

    # bf16 matmul-operand path (2x MXU on v6e/v7x; cast done in-kernel).
    fwd_bf16 = jax.jit(functools.partial(rapn_forward, compute_dtype=jnp.bfloat16))
    p_nor16, p_all16 = fwd_bf16(ref_nor, ref_abn, params)
    jax.block_until_ready(p_nor16)

    r_nor, r_all = rapn_reference(ref_nor, ref_abn, params)
    assert p_nor32.shape == (B, T)
    assert p_all32.shape == (2 * B, T)
    assert jnp.allclose(p_nor32, r_nor, atol=1e-5, rtol=1e-5)
    assert jnp.allclose(p_all32, r_all, atol=1e-5, rtol=1e-5)
    assert jnp.allclose(p_nor16, r_nor, atol=2e-2, rtol=0)
    assert jnp.allclose(p_all16, r_all, atol=2e-2, rtol=0)

    # Odd / non-dividing batch config (G odd, sub-128-lane output) for shape
    # robustness of the block-selection and boundary masking.
    B2 = 3
    n2 = jax.random.normal(k_n2, (B2, T, F), jnp.float32)
    a2 = jax.random.normal(k_a2, (B2, T, F), jnp.float32)
    p2_nor, p2_all = jax.jit(rapn_forward)(n2, a2, params)
    jax.block_until_ready(p2_nor)
    r2_nor, r2_all = rapn_reference(n2, a2, params)
    assert jnp.allclose(p2_nor, r2_nor, atol=1e-5, rtol=1e-5)
    assert jnp.allclose(p2_all, r2_all, atol=1e-5, rtol=1e-5)

    print("KERNEL_OK")
</pallas_src>

<mosaic_0001>
module attributes {stable_mosaic.version = 11 : i64} {
  func.func @_rapn_kernel(%arg0: i32, %arg1: memref<8x16x32xf32, #tpu.memory_space<vmem>>, %arg2: memref<8x16x32xf32, #tpu.memory_space<vmem>>, %arg3: memref<3x32x16xf32, #tpu.memory_space<vmem>>, %arg4: memref<1x16xf32, #tpu.memory_space<vmem>>, %arg5: memref<1x16xf32, #tpu.memory_space<vmem>>, %arg6: memref<1x1xf32, #tpu.memory_space<smem>>, %arg7: memref<1x1x256xf32, #tpu.memory_space<vmem>>, %arg8: memref<256x32xf32, #tpu.memory_space<vmem>>) attributes {dimension_semantics = [#tpu.dimension_semantics<parallel>], iteration_bounds = array<i64: 2>, scalar_prefetch = 0 : i64, scratch_operands = 1 : i64, tpu.core_type = #tpu.core_type<tc>, window_params = [{transform_indices = @transform_0, window_bounds = array<i64: 8, 16, 32>}, {transform_indices = @transform_1, window_bounds = array<i64: 8, 16, 32>}, {pipeline_mode = #tpu.pipeline_mode<synchronous>, transform_indices = @transform_2, window_bounds = array<i64: 3, 32, 16>}, {pipeline_mode = #tpu.pipeline_mode<synchronous>, transform_indices = @transform_3, window_bounds = array<i64: 1, 16>}, {pipeline_mode = #tpu.pipeline_mode<synchronous>, transform_indices = @transform_4, window_bounds = array<i64: 1, 16>}, {transform_indices = @transform_5, window_bounds = array<i64: 1, 1>}, {transform_indices = @transform_6, window_bounds = array<i64: 1, 1, 256>}]} {
    %c0 = arith.constant 0 : index
    %c0_0 = arith.constant 0 : index
    %c0_1 = arith.constant 0 : index
    %0 = vector.load %arg1[%c0, %c0_0, %c0_1] : memref<8x16x32xf32, #tpu.memory_space<vmem>>, vector<8x16x32xf32>
    %1 = vector.shape_cast %0 : vector<8x16x32xf32> to vector<128x32xf32>
    %c0_2 = arith.constant 0 : index
    %c0_3 = arith.constant 0 : index
    %2 = vector.load %arg8[%c0_2, %c0_3] : memref<256x32xf32, #tpu.memory_space<vmem>>, vector<128x32xf32>
    tpu.vector_store %arg8[%c0_2, %c0_3], %1 {strides = array<i32>} : memref<256x32xf32, #tpu.memory_space<vmem>>, vector<128x32xf32>,
    %c0_4 = arith.constant 0 : index
    %c0_5 = arith.constant 0 : index
    %c0_6 = arith.constant 0 : index
    %3 = vector.load %arg2[%c0_4, %c0_5, %c0_6] : memref<8x16x32xf32, #tpu.memory_space<vmem>>, vector<8x16x32xf32>
    %4 = vector.shape_cast %3 : vector<8x16x32xf32> to vector<128x32xf32>
    %c128 = arith.constant 128 : index
    %c0_7 = arith.constant 0 : index
    %5 = vector.load %arg8[%c128, %c0_7] : memref<256x32xf32, #tpu.memory_space<vmem>>, vector<128x32xf32>
    tpu.vector_store %arg8[%c128, %c0_7], %4 {strides = array<i32>} : memref<256x32xf32, #tpu.memory_space<vmem>>, vector<128x32xf32>,
    %c0_8 = arith.constant 0 : index
    %c0_9 = arith.constant 0 : index
    %6 = vector.load %arg8[%c0_8, %c0_9] : memref<256x32xf32, #tpu.memory_space<vmem>>, vector<256x32xf32>
    %c0_10 = arith.constant 0 : index
    %c0_11 = arith.constant 0 : index
    %c0_12 = arith.constant 0 : index
    %7 = vector.load %arg3[%c0_10, %c0_11, %c0_12] : memref<3x32x16xf32, #tpu.memory_space<vmem>>, vector<1x32x16xf32>
    %8 = vector.shape_cast %7 : vector<1x32x16xf32> to vector<32x16xf32>
    %cst = arith.constant dense<0.000000e+00> : vector<256x16xf32>
    %9 = tpu.matmul %6, %8, %cst {dimension_numbers = #tpu.dot_dimension_numbers<[1], [0], [0], [1], [0, 0, 1, 1], [], []>} : vector<256x32xf32>, vector<32x16xf32>, vector<256x16xf32> -> vector<256x16xf32>
    %c1 = arith.constant 1 : index
    %c0_13 = arith.constant 0 : index
    %c0_14 = arith.constant 0 : index
    %10 = vector.load %arg3[%c1, %c0_13, %c0_14] : memref<3x32x16xf32, #tpu.memory_space<vmem>>, vector<1x32x16xf32>
    %11 = vector.shape_cast %10 : vector<1x32x16xf32> to vector<32x16xf32>
    %cst_15 = arith.constant dense<0.000000e+00> : vector<256x16xf32>
    %12 = tpu.matmul %6, %11, %cst_15 {dimension_numbers = #tpu.dot_dimension_numbers<[1], [0], [0], [1], [0, 0, 1, 1], [], []>} : vector<256x32xf32>, vector<32x16xf32>, vector<256x16xf32> -> vector<256x16xf32>
    %c2 = arith.constant 2 : index
    %c0_16 = arith.constant 0 : index
    %c0_17 = arith.constant 0 : index
    %13 = vector.load %arg3[%c2, %c0_16, %c0_17] : memref<3x32x16xf32, #tpu.memory_space<vmem>>, vector<1x32x16xf32>
    %14 = vector.shape_cast %13 : vector<1x32x16xf32> to vector<32x16xf32>
    %cst_18 = arith.constant dense<0.000000e+00> : vector<256x16xf32>
    %15 = tpu.matmul %6, %14, %cst_18 {dimension_numbers = #tpu.dot_dimension_numbers<[1], [0], [0], [1], [0, 0, 1, 1], [], []>} : vector<256x32xf32>, vector<32x16xf32>, vector<256x16xf32> -> vector<256x16xf32>
    %16 = tpu.iota {dimensions = array<i32: 0>} : vector<256x1xi32>
    %c16_i32 = arith.constant 16 : i32
    %17 = vector.broadcast %c16_i32 : i32 to vector<256x1xi32>
    %18 = arith.remsi %16, %17 : vector<256x1xi32>
    %c0_i32 = arith.constant 0 : i32
    %19 = vector.broadcast %c0_i32 : i32 to vector<256x1xi32>
    %20 = arith.cmpi eq, %18, %19 : vector<256x1xi32>
    %c1_i32 = arith.constant 1 : i32
    %21 = tpu.dynamic_rotate %9 by %c1_i32 dim 0 : vector<256x16xf32>, i32 -> vector<256x16xf32>
    %cst_19 = arith.constant 0.000000e+00 : f32
    %22 = vector.shape_cast %20 : vector<256x1xi1> to vector<256x1xi1>
    %23 = vector.broadcast %22 : vector<256x1xi1> to vector<256x16xi1>
    %24 = vector.broadcast %cst_19 : f32 to vector<256x16xf32>
    %25 = arith.select %23, %24, %21 : vector<256x16xi1>, vector<256x16xf32>
    %c15_i32 = arith.constant 15 : i32
    %26 = vector.broadcast %c15_i32 : i32 to vector<256x1xi32>
    %27 = arith.cmpi eq, %18, %26 : vector<256x1xi32>
    %c255_i32 = arith.constant 255 : i32
    %28 = tpu.dynamic_rotate %15 by %c255_i32 dim 0 : vector<256x16xf32>, i32 -> vector<256x16xf32>
    %cst_20 = arith.constant 0.000000e+00 : f32
    %29 = vector.shape_cast %27 : vector<256x1xi1> to vector<256x1xi1>
    %30 = vector.broadcast %29 : vector<256x1xi1> to vector<256x16xi1>
    %31 = vector.broadcast %cst_20 : f32 to vector<256x16xf32>
    %32 = arith.select %30, %31, %28 : vector<256x16xi1>, vector<256x16xf32>
    %33 = arith.addf %25, %12 : vector<256x16xf32>
    %34 = arith.addf %33, %32 : vector<256x16xf32>
    %c0_21 = arith.constant 0 : index
    %c0_22 = arith.constant 0 : index
    %35 = vector.load %arg4[%c0_21, %c0_22] : memref<1x16xf32, #tpu.memory_space<vmem>>, vector<1x16xf32>
    %36 = vector.broadcast %35 : vector<1x16xf32> to vector<256x16xf32>
    %37 = arith.addf %34, %36 : vector<256x16xf32>
    %cst_23 = arith.constant 0.000000e+00 : f32
    %38 = vector.broadcast %cst_23 : f32 to vector<256x16xf32>
    %39 = arith.maximumf %37, %38 : vector<256x16xf32>
    %c0_24 = arith.constant 0 : index
    %c0_25 = arith.constant 0 : index
    %40 = vector.load %arg5[%c0_24, %c0_25] : memref<1x16xf32, #tpu.memory_space<vmem>>, vector<1x16xf32>
    %41 = vector.shape_cast %40 : vector<1x16xf32> to vector<1x1x16xf32>
    %42 = vector.shape_cast %39 : vector<256x16xf32> to vector<1x256x16xf32>
    %43 = vector.broadcast %41 : vector<1x1x16xf32> to vector<1x256x16xf32>
    %44 = arith.mulf %42, %43 : vector<1x256x16xf32>
    %cst_26 = arith.constant dense<0.000000e+00> : vector<1x256xf32>
    %45 = vector.multi_reduction <add>, %44, %cst_26 [2] : vector<1x256x16xf32> to vector<1x256xf32>
    %c0_27 = arith.constant 0 : index
    %c0_28 = arith.constant 0 : index
    %46 = memref.load %arg6[%c0_27, %c0_28] : memref<1x1xf32, #tpu.memory_space<smem>>
    %47 = vector.broadcast %46 : f32 to vector<1x256xf32>
    %48 = arith.addf %45, %47 : vector<1x256xf32>
    %49 = arith.negf %48 : vector<1x256xf32>
    %50 = math.exp %49 : vector<1x256xf32>
    %cst_29 = arith.constant 1.000000e+00 : f32
    %51 = vector.broadcast %cst_29 : f32 to vector<1x256xf32>
    %52 = arith.addf %51, %50 : vector<1x256xf32>
    %53 = arith.divf %51, %52 : vector<1x256xf32>
    %c0_30 = arith.constant 0 : index
    %c0_31 = arith.constant 0 : index
    %c0_32 = arith.constant 0 : index
    %54 = vector.load %arg7[%c0_30, %c0_31, %c0_32] : memref<1x1x256xf32, #tpu.memory_space<vmem>>, vector<1x1x256xf32>
    %55 = vector.shape_cast %54 : vector<1x1x256xf32> to vector<1x256xf32>
    %56 = vector.shape_cast %53 : vector<1x256xf32> to vector<1x1x256xf32>
    tpu.vector_store %arg7[%c0_30, %c0_31, %c0_32], %56 {strides = array<i32>} : memref<1x1x256xf32, #tpu.memory_space<vmem>>, vector<1x1x256xf32>,
    return
  }
  func.func @transform_0(%arg0: i32) -> (i32, i32, i32) {
    %c0_i32 = arith.constant 0 : i32
    %c0_i32_0 = arith.constant 0 : i32
    %c0_i32_1 = arith.constant 0 : i32
    return %arg0, %c0_i32, %c0_i32_0 : i32, i32, i32
  }
  func.func @transform_1(%arg0: i32) -> (i32, i32, i32) {
    %c0_i32 = arith.constant 0 : i32
    %c0_i32_0 = arith.constant 0 : i32
    %c0_i32_1 = arith.constant 0 : i32
    return %arg0, %c0_i32, %c0_i32_0 : i32, i32, i32
  }
  func.func @transform_2(%arg0: i32) -> (i32, i32, i32) {
    %c0_i32 = arith.constant 0 : i32
    %c0_i32_0 = arith.constant 0 : i32
    %c0_i32_1 = arith.constant 0 : i32
    %c0_i32_2 = arith.constant 0 : i32
    return %c0_i32, %c0_i32_0, %c0_i32_1 : i32, i32, i32
  }
  func.func @transform_3(%arg0: i32) -> (i32, i32) {
    %c0_i32 = arith.constant 0 : i32
    %c0_i32_0 = arith.constant 0 : i32
    %c0_i32_1 = arith.constant 0 : i32
    return %c0_i32, %c0_i32_0 : i32, i32
  }
  func.func @transform_4(%arg0: i32) -> (i32, i32) {
    %c0_i32 = arith.constant 0 : i32
    %c0_i32_0 = arith.constant 0 : i32
    %c0_i32_1 = arith.constant 0 : i32
    return %c0_i32, %c0_i32_0 : i32, i32
  }
  func.func @transform_5(%arg0: i32) -> (i32, i32) {
    %c0_i32 = arith.constant 0 : i32
    %c0_i32_0 = arith.constant 0 : i32
    %c0_i32_1 = arith.constant 0 : i32
    return %c0_i32, %c0_i32_0 : i32, i32
  }
  func.func @transform_6(%arg0: i32) -> (i32, i32, i32) {
    %c0_i32 = arith.constant 0 : i32
    %c0_i32_0 = arith.constant 0 : i32
    %c0_i32_1 = arith.constant 0 : i32
    return %arg0, %c0_i32, %c0_i32_0 : i32, i32, i32
  }
}

</mosaic_0001>

<bundles_post_ra>
// kernel: rapn_forward.1
= control target key start
LH: loop header
LB: loop body
LE: loop exit
PB: predicated region body
PF: predicated region fallthrough
CT: control target
= control target key end

     0   :  { %s8334_s0 = inlined_call_operand.hbm [shape: f32[16,16,32], index: 0, kind: input, shape index: {}]   ;;  %s8335_s1 = inlined_call_operand.hbm [shape: f32[16,16,32], index: 1, kind: input, shape index: {}]   ;;  %s8336_s2 = inlined_call_operand.vmem [shape: f32[3,32,16], index: 2, kind: input, shape index: {}]   ;;  %s8337_s3 = inlined_call_operand.vmem [shape: f32[1,16], index: 3, kind: input, shape index: {}]   ;;  %s8338_s4 = inlined_call_operand.vmem [shape: f32[1,16], index: 4, kind: input, shape index: {}]   ;;  %s8339_s5 = inlined_call_operand.<no memory space> [shape: f32[1,1], index: 5, kind: input, shape index: {}]   ;;  %s8340_s6 = inlined_call_operand.vmem [shape: f32[2,1,256], index: 6, kind: output, shape index: {}]  }
   0x1   :  { %11 = sst [smem:[#allocation3]] %s8339_s5 }
   0x2   :  { %12 = vsyncpa [#allocation5], 0 }
   0x3   :  { %14 = vsyncpa [#allocation5 + $0x1], 0 }
   0x4   :  { %15 = vsyncpa [#allocation7], 0 }
   0x5   :  { %17 = vsyncpa [#allocation7 + $0x1], 0  ;;  %s6141_s23 = smov 0   ;;  %s6143_s24 = smov 0  }
   0x6   :  { %s6145_s25 = smov 0   ;;  %s6147_s26 = smov 0  }
   0x7 LB: > { %s6160_s5 = sadd.s32 4294967295, %s6095_s26   ;;  %s6163_s27 = sadd.s32 1, %s6095_s26   ;;  %s6095_s26 = sphi %s6147_s26, %s8524_s26   ;;  %s6091_s25 = sphi %s6145_s25, %s8523_s25   ;;  %s6087_s24 = sphi %s6143_s24, %s8522_s24   ;;  %s6083_s23 = sphi %s6141_s23, %s8521_s23  }
   0x8   : > { %s27_s28 = ssub.s32 %s6095_s26, %s6163_s27  ;;  %s30_s29 = sadd.s32 1, %s6091_s25 }
   0x9   : > { %p28_p0 = scmp.eq.s32.totalorder %s27_s28, 0  ;;  %p37_p1 = scmp.ne.s32.totalorder %s6091_s25, %s6087_s24 }
   0xa   : > { %p38_p2 = scmp.eq.s32.totalorder %s6095_s26, 0  ;;  %p43_p3 = scmp.ne.s32.totalorder %s6087_s24, %s6083_s23 }
   0xb   : > { %s6173_s30 = scalar_select %p28_p0, %s6091_s25, %s30_s29  }
   0xc   : > { %p39_p4 = por %p38_p2, %p37_p1  ;;  %p44_p5 = scmp.eq.s32.totalorder %s6160_s5, 0 }
   0xd   : > { %p5830_p6 = scmp.lt.s32.totalorder %s6095_s26, 2  ;;  %s6182_s8 = sand.u32 1, %s6091_s25  }
   0xe   : > { %p6177_p7 = por %p44_p5, %p43_p3  ;;  %s5359_s9 = sshll.u32 %s6182_s8, 7 }
   0xf   : > { %s5512_s10 = sshll.u32 %s6095_s26, 11  ;;  %s219_s14 = scalar_lea.vmem [#allocation4], %s5359_s9 }
  0x10   : > { %s8354_s7 = scalar_select %p6177_p7, 1, 0 }
  0x11   : > { %s6191_s13 = scalar_lea.hbm %s8334_s0, %s5512_s10  ;;  %s227_s15 = sshll.u32 %s219_s14, 4  ;;  %s6195_s15 = int_to_ptr.vmem [resolvable:$true] %s227_s15 }
  0x12   : > { %p6197_p8 = pnand %p5830_p6, %p39_p4  ;;  %s216_s17 = scalar_lea.sflag [#allocation5], %s6182_s8 }
  0x13   : > { %s5997_s18 = scalar_lea.hbm %s6191_s13, 2048  ;;  %s6002_s21 = scalar_lea.hbm %s8334_s0, 4096 }
  0x14   : > { %p5998_p10 = scmp.ne.s32.totalorder %s6191_s13, %s5997_s18  ;;  %p5999_p11 = pneg %p6197_p8 }
  0x15   : > { %p6003_p0 = scmp.lt.u32.totalorder %s6191_s13, %s8334_s0  ;;  %p6004_p1 = scmp.lt.u32.totalorder %s6002_s21, %s5997_s18 }
  0x16   : > { %p6000_p12 = pnand %p5999_p11, %p5998_p10  ;;  %p6006_p3 = scmp.lt.u32.totalorder %s5997_s18, %s6191_s13 }
  0x17   : > { %p6005_p2 = por %p6004_p1, %p6003_p0 }
  0x18   : > { %p6001_p13 = pneg %p6000_p12 }
  0x19   : > { %p6007_p4 = por %p6006_p3, %p6005_p2 }
  0x1b   : > { %p6008_p5 = pnand %p6007_p4, %p6001_p13 }
  0x1d   : > { %6011 = shalt.err (!%p6008_p5)
}
  0x1e   : > { %s6012_s28 = scalar_lea.vmem %s6195_s15, 2048  ;;  %s6097_s29 = smov [#allocation4]  }
  0x1f   : > { %p6013_p6 = scmp.ne.s32.totalorder %s6195_s15, %s6012_s28  ;;  %s6017_s11 = sshll.u32 %s6097_s29, 4  ;;  %s6018_s11 = int_to_ptr.vmem [resolvable:$false] %s6017_s11 }
  0x20   : > { %s6019_s12 = scalar_lea.vmem %s6018_s11, 4096  ;;  %p6020_p9 = scmp.lt.s32.totalorder %s6195_s15, %s6018_s11 }
  0x21   : > { %p6015_p10 = pnand %p6013_p6, %p5999_p11  ;;  %p6021_p0 = scmp.lt.s32.totalorder %s6019_s12, %s6012_s28 }
  0x23   : > { %p6016_p12 = pneg %p6015_p10  ;;  %p6022_p1 = por %p6021_p0, %p6020_p9 }
  0x25   : > { %p6023_p2 = pnand %p6022_p1, %p6016_p12 }
  0x27   : > { %6026 = shalt.err (!%p6023_p2)
}
  0x28   : > { %s6098_s14 = smov 128   ;;  %s6099_s18 = smov 8  }
  0x29   : > { %5826 = dma.hbm_to_vmem [thread:$0]  (!%p6197_p8), %s6191_s13, 2048, %s6195_s15, %s216_s17, %s6098_s14, %s6098_s14, %s6099_s18  }
  0x2a   : > { %p257_p9 = scmp.lt.s32.totalorder %s6095_s26, 3  ;;  %s6239_s21 = scalar_lea.hbm %s8335_s1, %s5512_s10 }
  0x2b   : > { %p8356_p13 = scmp.ge.s32.totalorder %s6095_s26, 1  ;;  %s241_s23 = scalar_lea.vmem [#allocation6], %s5359_s9 }
  0x2c   : > { %s249_s28 = sshll.u32 %s241_s23, 4  ;;  %s238_s13 = scalar_lea.sflag [#allocation7], %s6182_s8  ;;  %s6249_s28 = int_to_ptr.vmem [resolvable:$true] %s249_s28 }
  0x2d   : > { %p6243_p3 = pnand %p8356_p13, %p257_p9  ;;  %s6027_s15 = scalar_lea.hbm %s6239_s21, 2048 }
  0x2e   : > { %p6028_p4 = scmp.ne.s32.totalorder %s6239_s21, %s6027_s15  ;;  %s6032_s17 = scalar_lea.hbm %s8335_s1, 4096 }
  0x2f   : > { %p6033_p10 = scmp.lt.u32.totalorder %s6239_s21, %s8335_s1  ;;  %p6034_p12 = scmp.lt.u32.totalorder %s6032_s17, %s6027_s15 }
  0x30   : > { %p6030_p5 = pnand %p6028_p4, %p5999_p11  ;;  %p6036_p1 = scmp.lt.u32.totalorder %s6027_s15, %s6239_s21 }
  0x31   : > { %p6035_p0 = por %p6034_p12, %p6033_p10 }
  0x32   : > { %p6031_p6 = pneg %p6030_p5 }
  0x33   : > { %p6037_p2 = por %p6036_p1, %p6035_p0 }
  0x35   : > { %p6038_p9 = pnand %p6037_p2, %p6031_p6 }
  0x37   : > { %6041 = shalt.err (!%p6038_p9)
}
  0x38   : > { %s6042_s9 = scalar_lea.vmem %s6249_s28, 2048  ;;  %s6100_s12 = smov [#allocation6]  }
  0x39   : > { %p6043_p13 = scmp.ne.s32.totalorder %s6249_s28, %s6042_s9  ;;  %s6047_s19 = sshll.u32 %s6100_s12, 4  ;;  %s6048_s19 = int_to_ptr.vmem [resolvable:$false] %s6047_s19 }
  0x3a   : > { %s6049_s20 = scalar_lea.vmem %s6048_s19, 4096  ;;  %p6050_p7 = scmp.lt.s32.totalorder %s6249_s28, %s6048_s19 }
  0x3b   : > { %p6045_p4 = pnand %p6043_p13, %p5999_p11  ;;  %p6051_p10 = scmp.lt.s32.totalorder %s6049_s20, %s6042_s9 }
  0x3d   : > { %p6046_p5 = pneg %p6045_p4  ;;  %p6052_p12 = por %p6051_p10, %p6050_p7 }
  0x3f   : > { %p6053_p0 = pnand %p6052_p12, %p6046_p5 }
  0x41   : > { %6056 = shalt.err (!%p6053_p0)
}
  0x42   : > { %5829 = dma.hbm_to_vmem [thread:$0]  (!%p6197_p8), %s6239_s21, 2048, %s6249_s28, %s238_s13, %s6098_s14, %s6098_s14, %s6099_s18  }
  0x43   : > { %261 = sbr.rel (%p6243_p3) target bundleno = 873 (0x369), region = 44 }
  0x4a   : > { %s263_s23 = sand.u32 1, %s6087_s24   ;;  %p8358_p7 = scmp.ne.s32.totalorder %s8354_s7, 0 }
  0x4b   : > { %s5368_s15 = sshll.u32 %s263_s23, 7  ;;  %s264_s26 = scalar_lea.sflag [#allocation5], %s263_s23 }
  0x4c   : > { %s6283_s10 = scalar_lea.vmem [#allocation4], %s5368_s15 }
  0x4d   : > { %6074 = dma.done.wait (%p8358_p7), %s264_s26, 2048  }
  0x4e   : > { %6076 = vsyncadd (%p8358_p7), %s264_s26, 4294965248  ;;  %s273_s8 = scalar_lea.sflag [#allocation7], %s263_s23  ;;  %s6289_s16 = scalar_lea.vmem [#allocation6], %s5368_s15 }
  0x4f   : > { %6078 = dma.done.wait (%p8358_p7), %s273_s8, 2048  }
  0x50   : > { %6080 = vsyncadd (%p8358_p7), %s273_s8, 4294965248  ;;  %vm331_vm0 = vcmask 261120   ;;  %v412_v0 = vld [vmem:[%s8336_s2] sm:$0xff]  ;;  %v413_v1 = vld [vmem:[%s8336_s2 + $0x8] sm:$0xff]  ;;  %s2111_s29 = sld [smem:[#allocation3]]  ;;  %p311_p8 = scmp.lt.s32.totalorder %s6160_s5, 1 }
  0x51   : > { %v414_v2 = vld [vmem:[%s8336_s2 + $0x10] sm:$0xff]  ;;  %v5791_v3 = vpack.c.bf16 %v413_v1, %v412_v0  ;;  %v415_v4 = vld [vmem:[%s8336_s2 + $0x18] sm:$0xff]  ;;  %v315_v5 = vld [vmem:[%s6283_s10] sm:$0xff] }
  0x52   : > { %v348_v6 = vld [vmem:[%s6289_s16] sm:$0xff]  ;;  %v5795_v7 = vpack.c.bf16 %v415_v4, %v414_v2  ;;  %332 = vst.msk [vmem:[#allocation2] sm:$0xff] %vm331_vm0, %v315_v5  ;;  %v316_v8 = vld [vmem:[%s6283_s10 + $0x8] sm:$0xff]  ;;  %v317_v14 = vld [vmem:[%s6283_s10 + $0x10] sm:$0xff]  ;;  %s8526_s5 = smov (!%p311_p8, %s6160_s5), 1 }
  0x53   : > { %364 = vst.msk [vmem:[#allocation2 + $0x80] sm:$0xff] %vm331_vm0, %v348_v6  ;;  %v349_v9 = vld [vmem:[%s6289_s16 + $0x8] sm:$0xff]  ;;  %v5439_v10 = vld [vmem:[%s8336_s2 + $0x40] sm:$0xff]  ;;  %5792 = vmatprep.subr.bf16.mxu0 %v5791_v3  ;;  %5815 = vmatprep.subr.bf16.mxu1 %v5791_v3  ;;  %333 = vst.msk [vmem:[#allocation2 + $0x8] sm:$0xff] %vm331_vm0, %v316_v8  ;;  %s5370_s11 = sshll.u32 %s8526_s5, 1 }
  0x54   : > { %365 = vst.msk [vmem:[#allocation2 + $0x88] sm:$0xff] %vm331_vm0, %v349_v9  ;;  %v5440_v11 = vld [vmem:[%s8336_s2 + $0x48] sm:$0xff]  ;;  %v5403_v12 = vld [vmem:[%s8336_s2 + $0x20] sm:$0xff]  ;;  %5794 = vmatpush3.bf16.msra.mxu0 %v5791_v3  ;;  %5817 = vmatpush3.bf16.msra.mxu1 %v5791_v3  ;;  %v350_v15 = vld [vmem:[%s6289_s16 + $0x10] sm:$0xff]  ;;  %s314_s19 = scalar_lea.vmem %s8340_s6, %s5370_s11 }
  0x55   : > { %v5404_v13 = vld [vmem:[%s8336_s2 + $0x28] sm:$0xff]  ;;  %v318_v16 = vld [vmem:[%s6283_s10 + $0x18] sm:$0xff]  ;;  %5796 = vmatprep.subr.bf16.mxu0 %v5795_v7  ;;  %5816 = vmatprep.subr.bf16.mxu1 %v5795_v7  ;;  %v5807_v17 = vpack.c.bf16 %v5440_v11, %v5439_v10  ;;  %334 = vst.msk [vmem:[#allocation2 + $0x10] sm:$0xff] %vm331_vm0, %v317_v14  ;;  %366 = vst.msk [vmem:[#allocation2 + $0x90] sm:$0xff] %vm331_vm0, %v350_v15 }
  0x56   : > { %v5799_v18 = vpack.c.bf16 %v5404_v13, %v5403_v12  ;;  %335 = vst.msk [vmem:[#allocation2 + $0x18] sm:$0xff] %vm331_vm0, %v318_v16  ;;  %v351_v19 = vld [vmem:[%s6289_s16 + $0x18] sm:$0xff]  ;;  %v319_v20 = vld [vmem:[%s6283_s10 + $0x20] sm:$0xff]  ;;  %v320_v22 = vld [vmem:[%s6283_s10 + $0x28] sm:$0xff] }
  0x57   : > { %v352_v21 = vld [vmem:[%s6289_s16 + $0x20] sm:$0xff]  ;;  %367 = vst.msk [vmem:[#allocation2 + $0x98] sm:$0xff] %vm331_vm0, %v351_v19  ;;  %336 = vst.msk [vmem:[#allocation2 + $0x20] sm:$0xff] %vm331_vm0, %v319_v20  ;;  %v353_v23 = vld [vmem:[%s6289_s16 + $0x28] sm:$0xff] }
  0x58   : > { %368 = vst.msk [vmem:[#allocation2 + $0xa0] sm:$0xff] %vm331_vm0, %v352_v21  ;;  %v321_v24 = vld [vmem:[%s6283_s10 + $0x30] sm:$0xff]  ;;  %337 = vst.msk [vmem:[#allocation2 + $0x28] sm:$0xff] %vm331_vm0, %v320_v22  ;;  %v322_v26 = vld [vmem:[%s6283_s10 + $0x38] sm:$0xff]  ;;  %5798 = vmatpush3.bf16.msra.mxu0 %v5795_v7  ;;  %5818 = vmatpush3.bf16.msra.mxu1 %v5795_v7 }
  0x59   : > { %369 = vst.msk [vmem:[#allocation2 + $0xa8] sm:$0xff] %vm331_vm0, %v353_v23  ;;  %338 = vst.msk [vmem:[#allocation2 + $0x30] sm:$0xff] %vm331_vm0, %v321_v24  ;;  %v354_v25 = vld [vmem:[%s6289_s16 + $0x30] sm:$0xff]  ;;  %v355_v27 = vld [vmem:[%s6289_s16 + $0x38] sm:$0xff]  ;;  %5808 = vmatprep.subr.bf16.mxu0 %v5807_v17  ;;  %5800 = vmatprep.subr.bf16.mxu1 %v5799_v18 }
  0x5a   : > { %370 = vst.msk [vmem:[#allocation2 + $0xb0] sm:$0xff] %vm331_vm0, %v354_v25  ;;  %339 = vst.msk [vmem:[#allocation2 + $0x38] sm:$0xff] %vm331_vm0, %v322_v26  ;;  %v323_v28 = vld [vmem:[%s6283_s10 + $0x40] sm:$0xff]  ;;  %v324_v30 = vld [vmem:[%s6283_s10 + $0x48] sm:$0xff] }
  0x5b   : > { %371 = vst.msk [vmem:[#allocation2 + $0xb8] sm:$0xff] %vm331_vm0, %v355_v27  ;;  %v356_v29 = vld [vmem:[%s6289_s16 + $0x40] sm:$0xff]  ;;  %340 = vst.msk [vmem:[#allocation2 + $0x40] sm:$0xff] %vm331_vm0, %v323_v28  ;;  %v357_v33 = vld [vmem:[%s6289_s16 + $0x48] sm:$0xff] }
  0x5c   : > { %v6354_v31 = vld [vmem:[#allocation2] sm:$0xff]  ;;  %372 = vst.msk [vmem:[#allocation2 + $0xc0] sm:$0xff] %vm331_vm0, %v356_v29  ;;  %341 = vst.msk [vmem:[#allocation2 + $0x48] sm:$0xff] %vm331_vm0, %v324_v30  ;;  %v6366_v34 = vld [vmem:[#allocation2 + $0x8] sm:$0xff] }
  0x5d   : > { %v6356_v32 = vld [vmem:[#allocation2 + $0x80] sm:$0xff]  ;;  %5631 = vmatprep.mubr.msk.f32.mxu0 %vm331_vm0, %v6354_v31  ;;  %v6368_v35 = vld [vmem:[#allocation2 + $0x88] sm:$0xff]  ;;  %373 = vst.msk [vmem:[#allocation2 + $0xc8] sm:$0xff] %vm331_vm0, %v357_v33  ;;  %v5441_v36 = vld [vmem:[%s8336_s2 + $0x50] sm:$0xff] }
  0x5e   : > { %5655 = vmatprep.mubr.msk.f32.mxu1 %vm331_vm0, %v6356_v32  ;;  %5632 = vmatmul.mubr.msk.f32.vlgmr.msra.gmra.mrb[0].mxu0 %vm331_vm0, %v6366_v34  ;;  %v5442_v37 = vld [vmem:[%s8336_s2 + $0x58] sm:$0xff]  ;;  %v5405_v38 = vld [vmem:[%s8336_s2 + $0x30] sm:$0xff]  ;;  %v6399_v46 = vld [vmem:[#allocation2 + $0x20] sm:$0xff] }
  0x5f   : > { %5656 = vmatmul.mubr.msk.f32.vlgmr.msra.gmra.mrb[0].mxu1 %vm331_vm0, %v6368_v35  ;;  %v5406_v39 = vld [vmem:[%s8336_s2 + $0x38] sm:$0xff]  ;;  %5810 = vmatpush3.bf16.msra.mxu0 %v5807_v17  ;;  %v6387_v40 = vld [vmem:[#allocation2 + $0x10] sm:$0xff]  ;;  %v5811_v43 = vpack.c.bf16 %v5442_v37, %v5441_v36  ;;  %v6401_v47 = vld [vmem:[#allocation2 + $0xa0] sm:$0xff] }
  0x60   : > { %v6389_v41 = vld [vmem:[#allocation2 + $0x90] sm:$0xff]  ;;  %5802 = vmatpush3.bf16.msra.mxu1 %v5799_v18  ;;  %v6391_v42 = vld [vmem:[#allocation2 + $0x18] sm:$0xff]  ;;  %v5803_v44 = vpack.c.bf16 %v5406_v39, %v5405_v38  ;;  %5634 = vmatprep.mubr.msk.f32.mxu0 %vm331_vm0, %v6387_v40  ;;  %v6411_v48 = vld [vmem:[#allocation2 + $0x28] sm:$0xff]  ;;  %v8342_v18 = vlaneseq }
  0x61   : > { %5658 = vmatprep.mubr.msk.f32.mxu1 %vm331_vm0, %v6389_v41  ;;  %v6397_v45 = vld [vmem:[#allocation2 + $0x98] sm:$0xff]  ;;  %5812 = vmatprep.subr.bf16.mxu0 %v5811_v43  ;;  %v6413_v49 = vld [vmem:[#allocation2 + $0xa8] sm:$0xff]  ;;  %v6415_v50 = vld [vmem:[#allocation2 + $0x30] sm:$0xff] }
  0x62   : > { %5804 = vmatprep.subr.bf16.mxu1 %v5803_v44  ;;  %5635 = vmatmul.mubr.msk.f32.gmra.mrb[2].mxu0 %vm331_vm0, %v6391_v42  ;;  %v6417_v51 = vld [vmem:[#allocation2 + $0xb0] sm:$0xff]  ;;  %v6421_v54 = vld [vmem:[#allocation2 + $0x38] sm:$0xff]  ;;  %v327_v58 = vld [vmem:[%s6283_s10 + $0x60] sm:$0xff]  ;;  %v6612_v19 = vshrl.u32 %v8342_v18, 7 }
  0x63   : > { %5659 = vmatmul.mubr.msk.f32.gmra.mrb[2].mxu1 %vm331_vm0, %v6397_v45  ;;  %5637 = vmatprep.mubr.msk.f32.mxu0 %vm331_vm0, %v6399_v46  ;;  %v325_v52 = vld [vmem:[%s6283_s10 + $0x50] sm:$0xff]  ;;  %v6423_v55 = vld [vmem:[#allocation2 + $0xb8] sm:$0xff]  ;;  %344 = vst.msk [vmem:[#allocation2 + $0x60] sm:$0xff] %vm331_vm0, %v327_v58  ;;  %v360_v59 = vld [vmem:[%s6289_s16 + $0x60] sm:$0xff] }
  0x64   : > { %5661 = vmatprep.mubr.msk.f32.mxu1 %vm331_vm0, %v6401_v47  ;;  %5814 = vmatpush3.bf16.msra.mxu0 %v5811_v43  ;;  %v358_v53 = vld [vmem:[%s6289_s16 + $0x50] sm:$0xff]  ;;  %342 = vst.msk [vmem:[#allocation2 + $0x50] sm:$0xff] %vm331_vm0, %v325_v52  ;;  %v326_v56 = vld [vmem:[%s6283_s10 + $0x58] sm:$0xff]  ;;  %v328_v60 = vld [vmem:[%s6283_s10 + $0x68] sm:$0xff]  ;;  %vm1518_vm1 = vcmp.lt.s32.totalorder %v6612_v19, 1  ;;  %v6634_v36 = vadd.s32 16, %v6612_v19 }
  0x65   : > { %5806 = vmatpush3.bf16.msra.mxu1 %v5803_v44  ;;  %374 = vst.msk [vmem:[#allocation2 + $0xd0] sm:$0xff] %vm331_vm0, %v358_v53  ;;  %v359_v57 = vld [vmem:[%s6289_s16 + $0x58] sm:$0xff]  ;;  %343 = vst.msk [vmem:[#allocation2 + $0x58] sm:$0xff] %vm331_vm0, %v326_v56  ;;  %v361_v61 = vld [vmem:[%s6289_s16 + $0x68] sm:$0xff]  ;;  %v6637_v39 = vadd.s32 32, %v6612_v19  ;;  %v6649_v43 = vadd.s32 160, %v6612_v19 }
  0x66   : > { %5638 = vmatmul.mubr.msk.f32.gmra.mrb[4].mxu0 %vm331_vm0, %v6411_v48  ;;  %375 = vst.msk [vmem:[#allocation2 + $0xd8] sm:$0xff] %vm331_vm0, %v359_v57  ;;  %376 = vst.msk [vmem:[#allocation2 + $0xe0] sm:$0xff] %vm331_vm0, %v360_v59  ;;  %v329_v62 = vld [vmem:[%s6283_s10 + $0x70] sm:$0xff]  ;;  %v330_v0 = vld [vmem:[%s6283_s10 + $0x78] sm:$0xff]  ;;  %vm1711_vm3 = vcmp.lt.s32.totalorder %v6612_v19, 7 }
  0x67   : > { %5662 = vmatmul.mubr.msk.f32.gmra.mrb[4].mxu1 %vm331_vm0, %v6413_v49  ;;  %5640 = vmatprep.mubr.msk.f32.mxu0 %vm331_vm0, %v6415_v50  ;;  %345 = vst.msk [vmem:[#allocation2 + $0x68] sm:$0xff] %vm331_vm0, %v328_v60  ;;  %377 = vst.msk [vmem:[#allocation2 + $0xe8] sm:$0xff] %vm331_vm0, %v361_v61  ;;  %v362_v63 = vld [vmem:[%s6289_s16 + $0x70] sm:$0xff]  ;;  %v388_v1 = vld [vmem:[#allocation2 + $0x40] sm:$0xff] }
  0x68   : > { %5664 = vmatprep.mubr.msk.f32.mxu1 %vm331_vm0, %v6417_v51  ;;  %v6450_v2 = vld [vmem:[#allocation2 + $0xc0] sm:$0xff]  ;;  %346 = vst.msk [vmem:[#allocation2 + $0x70] sm:$0xff] %vm331_vm0, %v329_v62  ;;  %378 = vst.msk [vmem:[#allocation2 + $0xf0] sm:$0xff] %vm331_vm0, %v362_v63  ;;  %v363_v3 = vld [vmem:[%s6289_s16 + $0x78] sm:$0xff]  ;;  %v6676_v62 = vadd.s32 80, %v6612_v19 }
  0x69   : > { %347 = vst.msk [vmem:[#allocation2 + $0x78] sm:$0xff] %vm331_vm0, %v330_v0  ;;  %379 = vst.msk [vmem:[#allocation2 + $0xf8] sm:$0xff] %vm331_vm0, %v363_v3  ;;  %v389_v4 = vld [vmem:[#allocation2 + $0x48] sm:$0xff] }
  0x6a   : > { %5641 = vmatmul.mubr.msk.f32.gmra.mrb[6].mxu0 %vm331_vm0, %v6421_v54  ;;  %v6464_v5 = vld [vmem:[#allocation2 + $0xc8] sm:$0xff]  ;;  %v392_v10 = vld [vmem:[#allocation2 + $0x60] sm:$0xff] }
  0x6b   : > { %5665 = vmatmul.mubr.msk.f32.gmra.mrb[6].mxu1 %vm331_vm0, %v6423_v55  ;;  %5643 = vmatprep.mubr.msk.f32.mxu0 %vm331_vm0, %v388_v1  ;;  %v390_v6 = vld [vmem:[#allocation2 + $0x50] sm:$0xff] }
  0x6c   : > { %5667 = vmatprep.mubr.msk.f32.mxu1 %vm331_vm0, %v6450_v2  ;;  %v6466_v7 = vld [vmem:[#allocation2 + $0xd0] sm:$0xff]  ;;  %v391_v8 = vld [vmem:[#allocation2 + $0x58] sm:$0xff] }
  0x6d   : > { %v6474_v9 = vld [vmem:[#allocation2 + $0xd8] sm:$0xff]  ;;  %v6476_v11 = vld [vmem:[#allocation2 + $0xe0] sm:$0xff] }
  0x6e   : > { %5644 = vmatmul.mubr.msk.f32.gmra.mrb[8].mxu0 %vm331_vm0, %v389_v4  ;;  %v393_v12 = vld [vmem:[#allocation2 + $0x68] sm:$0xff] }
  0x6f   : > { %5668 = vmatmul.mubr.msk.f32.gmra.mrb[8].mxu1 %vm331_vm0, %v6464_v5  ;;  %5646 = vmatprep.mubr.msk.f32.mxu0 %vm331_vm0, %v390_v6  ;;  %v6484_v13 = vld [vmem:[#allocation2 + $0xe8] sm:$0xff]  ;;  %v394_v14 = vld [vmem:[#allocation2 + $0x70] sm:$0xff] }
  0x70   : > { %5670 = vmatprep.mubr.msk.f32.mxu1 %vm331_vm0, %v6466_v7  ;;  %v6486_v15 = vld [vmem:[#allocation2 + $0xf0] sm:$0xff]  ;;  %v395_v16 = vld [vmem:[#allocation2 + $0x78] sm:$0xff] }
  0x71   : > { %v6494_v17 = vld [vmem:[#allocation2 + $0xf8] sm:$0xff] }
  0x72   : > { %5647 = vmatmul.mubr.msk.f32.gmra.mrb[10].mxu0 %vm331_vm0, %v391_v8 }
  0x73   : > { %5671 = vmatmul.mubr.msk.f32.gmra.mrb[10].mxu1 %vm331_vm0, %v6474_v9  ;;  %5649 = vmatprep.mubr.msk.f32.mxu0 %vm331_vm0, %v392_v10 }
  0x74   : > { %5673 = vmatprep.mubr.msk.f32.mxu1 %vm331_vm0, %v6476_v11 }
  0x76   : > { %5650 = vmatmul.mubr.msk.f32.gmra.mrb[12].mxu0 %vm331_vm0, %v393_v12 }
  0x77   : > { %5674 = vmatmul.mubr.msk.f32.gmra.mrb[12].mxu1 %vm331_vm0, %v6484_v13  ;;  %5652 = vmatprep.mubr.msk.f32.mxu0 %vm331_vm0, %v394_v14 }
  0x78   : > { %5676 = vmatprep.mubr.msk.f32.mxu1 %vm331_vm0, %v6486_v15 }
  0x7a   : > { %5653 = vmatmul.mubr.msk.f32.gmra.mrb[14].mxu0 %vm331_vm0, %v395_v16 }
  0x7b   : > { %5677 = vmatmul.mubr.msk.f32.gmra.mrb[14].mxu1 %vm331_vm0, %v6494_v17  ;;  %5743 = vmatprep.mubr.msk.f32.mxu0 %vm331_vm0, %v6354_v31 }
  0x7c   : > { %5687 = vmatprep.mubr.msk.f32.mxu1 %vm331_vm0, %v6354_v31 }
  0x7e   : > { %5744 = vmatmul.mubr.msk.f32.vlgmr.msra.gmra.mrb[16].mxu0 %vm331_vm0, %v6366_v34 }
  0x7f   : > { %5688 = vmatmul.mubr.msk.f32.vlgmr.msra.gmra.mrb[16].mxu1 %vm331_vm0, %v6366_v34  ;;  %5746 = vmatprep.mubr.msk.f32.mxu0 %vm331_vm0, %v6387_v40 }
  0x80   : > { %5690 = vmatprep.mubr.msk.f32.mxu1 %vm331_vm0, %v6387_v40  ;;  %v6640_v40 = vadd.s32 144, %v6612_v19 }
  0x82   : > { %5747 = vmatmul.mubr.msk.f32.gmra.mrb[18].mxu0 %vm331_vm0, %v6391_v42 }
  0x83   : > { %5691 = vmatmul.mubr.msk.f32.gmra.mrb[18].mxu1 %vm331_vm0, %v6391_v42  ;;  %5749 = vmatprep.mubr.msk.f32.mxu0 %vm331_vm0, %v6399_v46  ;;  %v6646_v42 = vadd.s32 64, %v6612_v19 }
  0x84   : > { %5693 = vmatprep.mubr.msk.f32.mxu1 %vm331_vm0, %v6399_v46 }
  0x86   : > { %5750 = vmatmul.mubr.msk.f32.gmra.mrb[20].mxu0 %vm331_vm0, %v6411_v48 }
  0x87   : > { %5694 = vmatmul.mubr.msk.f32.gmra.mrb[20].mxu1 %vm331_vm0, %v6411_v48  ;;  %5752 = vmatprep.mubr.msk.f32.mxu0 %vm331_vm0, %v6415_v50 }
  0x88   : > { %5696 = vmatprep.mubr.msk.f32.mxu1 %vm331_vm0, %v6415_v50 }
  0x8a   : > { %5753 = vmatmul.mubr.msk.f32.gmra.mrb[22].mxu0 %vm331_vm0, %v6421_v54 }
  0x8b   : > { %5697 = vmatmul.mubr.msk.f32.gmra.mrb[22].mxu1 %vm331_vm0, %v6421_v54  ;;  %5755 = vmatprep.mubr.msk.f32.mxu0 %vm331_vm0, %v388_v1  ;;  %v1248_v54 = vand.u32 15, %v6634_v36 }
  0x8c   : > { %5699 = vmatprep.mubr.msk.f32.mxu1 %vm331_vm0, %v388_v1 }
  0x8d   : > { %vm6807_vm4 = vcmp.eq.s32.totalorder %v1248_v54, 0 }
  0x8e   : > { %5756 = vmatmul.mubr.msk.f32.gmra.mrb[24].mxu0 %vm331_vm0, %v389_v4 }
  0x8f   : > { %5700 = vmatmul.mubr.msk.f32.gmra.mrb[24].mxu1 %vm331_vm0, %v389_v4  ;;  %5758 = vmatprep.mubr.msk.f32.mxu0 %vm331_vm0, %v390_v6 }
  0x90   : > { %5702 = vmatprep.mubr.msk.f32.mxu1 %vm331_vm0, %v390_v6 }
  0x92   : > { %5759 = vmatmul.mubr.msk.f32.gmra.mrb[26].mxu0 %vm331_vm0, %v391_v8 }
  0x93   : > { %5703 = vmatmul.mubr.msk.f32.gmra.mrb[26].mxu1 %vm331_vm0, %v391_v8  ;;  %5761 = vmatprep.mubr.msk.f32.mxu0 %vm331_vm0, %v392_v10 }
  0x94   : > { %5705 = vmatprep.mubr.msk.f32.mxu1 %vm331_vm0, %v392_v10 }
  0x96   : > { %5762 = vmatmul.mubr.msk.f32.gmra.mrb[28].mxu0 %vm331_vm0, %v393_v12 }
  0x97   : > { %5706 = vmatmul.mubr.msk.f32.gmra.mrb[28].mxu1 %vm331_vm0, %v393_v12  ;;  %5764 = vmatprep.mubr.msk.f32.mxu0 %vm331_vm0, %v394_v14 }
  0x98   : > { %5708 = vmatprep.mubr.msk.f32.mxu1 %vm331_vm0, %v394_v14  ;;  %v6700_v14 = vadd.s32 96, %v6612_v19 }
  0x9a   : > { %5765 = vmatmul.mubr.msk.f32.gmra.mrb[30].mxu0 %vm331_vm0, %v395_v16 }
  0x9b   : > { %5709 = vmatmul.mubr.msk.f32.gmra.mrb[30].mxu1 %vm331_vm0, %v395_v16  ;;  %5767 = vmatprep.mubr.msk.f32.mxu0 %vm331_vm0, %v6356_v32 }
  0x9c   : > { %5711 = vmatprep.mubr.msk.f32.mxu1 %vm331_vm0, %v6356_v32 }
  0x9e   : > { %5768 = vmatmul.mubr.msk.f32.gmra.mrb[32].mxu0 %vm331_vm0, %v6368_v35 }
  0x9f   : > { %5712 = vmatmul.mubr.msk.f32.gmra.mrb[32].mxu1 %vm331_vm0, %v6368_v35  ;;  %5770 = vmatprep.mubr.msk.f32.mxu0 %vm331_vm0, %v6389_v41 }
  0xa0   : > { %5714 = vmatprep.mubr.msk.f32.mxu1 %vm331_vm0, %v6389_v41  ;;  %v6643_v41 = vadd.s32 48, %v6612_v19 }
  0xa2   : > { %5771 = vmatmul.mubr.msk.f32.gmra.mrb[34].mxu0 %vm331_vm0, %v6397_v45 }
  0xa3   : > { %5715 = vmatmul.mubr.msk.f32.gmra.mrb[34].mxu1 %vm331_vm0, %v6397_v45  ;;  %5773 = vmatprep.mubr.msk.f32.mxu0 %vm331_vm0, %v6401_v47 }
  0xa4   : > { %5717 = vmatprep.mubr.msk.f32.mxu1 %vm331_vm0, %v6401_v47 }
  0xa6   : > { %5774 = vmatmul.mubr.msk.f32.gmra.mrb[36].mxu0 %vm331_vm0, %v6413_v49 }
  0xa7   : > { %5718 = vmatmul.mubr.msk.f32.gmra.mrb[36].mxu1 %vm331_vm0, %v6413_v49  ;;  %5776 = vmatprep.mubr.msk.f32.mxu0 %vm331_vm0, %v6417_v51 }
  0xa8   : > { %5720 = vmatprep.mubr.msk.f32.mxu1 %vm331_vm0, %v6417_v51 }
  0xaa   : > { %5777 = vmatmul.mubr.msk.f32.gmra.mrb[38].mxu0 %vm331_vm0, %v6423_v55 }
  0xab   : > { %5721 = vmatmul.mubr.msk.f32.gmra.mrb[38].mxu1 %vm331_vm0, %v6423_v55  ;;  %5779 = vmatprep.mubr.msk.f32.mxu0 %vm331_vm0, %v6450_v2  ;;  %v6669_v55 = vadd.s32 176, %v6612_v19 }
  0xac   : > { %5723 = vmatprep.mubr.msk.f32.mxu1 %vm331_vm0, %v6450_v2 }
  0xae   : > { %5780 = vmatmul.mubr.msk.f32.gmra.mrb[40].mxu0 %vm331_vm0, %v6464_v5 }
  0xaf   : > { %5724 = vmatmul.mubr.msk.f32.gmra.mrb[40].mxu1 %vm331_vm0, %v6464_v5  ;;  %5782 = vmatprep.mubr.msk.f32.mxu0 %vm331_vm0, %v6466_v7 }
  0xb0   : > { %5726 = vmatprep.mubr.msk.f32.mxu1 %vm331_vm0, %v6466_v7 }
  0xb2   : > { %5783 = vmatmul.mubr.msk.f32.gmra.mrb[42].mxu0 %vm331_vm0, %v6474_v9 }
  0xb3   : > { %5727 = vmatmul.mubr.msk.f32.gmra.mrb[42].mxu1 %vm331_vm0, %v6474_v9  ;;  %5785 = vmatprep.mubr.msk.f32.mxu0 %vm331_vm0, %v6476_v11 }
  0xb4   : > { %5729 = vmatprep.mubr.msk.f32.mxu1 %vm331_vm0, %v6476_v11  ;;  %v6697_v11 = vadd.s32 192, %v6612_v19 }
  0xb6   : > { %5786 = vmatmul.mubr.msk.f32.gmra.mrb[44].mxu0 %vm331_vm0, %v6484_v13 }
  0xb7   : > { %5730 = vmatmul.mubr.msk.f32.gmra.mrb[44].mxu1 %vm331_vm0, %v6484_v13  ;;  %5788 = vmatprep.mubr.msk.f32.mxu0 %vm331_vm0, %v6486_v15 }
  0xb8   : > { %5732 = vmatprep.mubr.msk.f32.mxu1 %vm331_vm0, %v6486_v15  ;;  %v6703_v15 = vadd.s32 208, %v6612_v19 }
  0xba   : > { %5789 = vmatmul.mubr.msk.f32.gmra.mrb[46].mxu0 %vm331_vm0, %v6494_v17 }
  0xbb   : > { %5733 = vmatmul.mubr.msk.f32.gmra.mrb[46].mxu1 %vm331_vm0, %v6494_v17  ;;  %v6707_v17 = vadd.s32 112, %v6612_v19 }
 0x131   : > { %v5633_v20 = vpop.f32.mrb[0].mxu0 }
 0x132   : > { %v5657_v21 = vpop.f32.mrb[0].mxu1  ;;  %v1487_v22 = vrot.slane %v5633_v20, 7  ;;  %v6614_v23 = vpop.f32.mrb[1].mxu0  ;;  %v6710_v20 = vadd.s32 128, %v6612_v19 }
 0x133   : > { %v1503_v24 = vrot.slane %v5657_v21, 7  ;;  %v6616_v25 = vpop.f32.mrb[1].mxu1  ;;  %v8345_v26 = vrot.slane %v6614_v23, 7  ;;  %v6713_v21 = vadd.s32 224, %v6612_v19 }
 0x134   : > { %v8344_v27 = vrot.slane %v6616_v25, 7 }
 0x135   : > { %v5636_v28 = vpop.f32.mrb[2].mxu0  ;;  %v6625_v30 = vsel %vm1518_vm1, %v8345_v26, %v1487_v22 }
 0x136   : > { %v5660_v29 = vpop.f32.mrb[2].mxu1  ;;  %v6631_v31 = vsel %vm1518_vm1, %v8344_v27, %v1503_v24  ;;  %v1489_v32 = vrot.slane %v5636_v28, 7  ;;  %v588_v34 = vpop.f32.mrb[3].mxu0 }
 0x137   : > { %8359 = vst [vmem:[#allocation10_spill] sm:$0xff] %v6631_v31  ;;  %v1505_v33 = vrot.slane %v5660_v29, 7  ;;  %v668_v35 = vpop.f32.mrb[3].mxu1  ;;  %v1488_v37 = vrot.slane %v588_v34, 7 }
 0x138   : > { %v1504_v38 = vrot.slane %v668_v35, 7 }
 0x139   : > { %v5639_v44 = vpop.f32.mrb[4].mxu0  ;;  %v6653_v46 = vsel %vm1518_vm1, %v1488_v37, %v1489_v32  ;;  %v6657_v47 = vsel %vm1518_vm1, %v1487_v22, %v1488_v37 }
 0x13a   : > { %v5663_v45 = vpop.f32.mrb[4].mxu1  ;;  %v6661_v48 = vsel %vm1518_vm1, %v1504_v38, %v1505_v33  ;;  %v6665_v49 = vsel %vm1518_vm1, %v1503_v24, %v1504_v38  ;;  %v1491_v50 = vrot.slane %v5639_v44, 7  ;;  %v598_v52 = vpop.f32.mrb[5].mxu0  ;;  %v1234_v44 = vand.u32 15, %v6612_v19 }
 0x13b   : > { %8360 = vst [vmem:[#allocation11_spill] sm:$0xff] %v6661_v48  ;;  %v1507_v51 = vrot.slane %v5663_v45, 7  ;;  %v678_v53 = vpop.f32.mrb[5].mxu1  ;;  %v1490_v56 = vrot.slane %v598_v52, 7 }
 0x13c   : > { %v1506_v57 = vrot.slane %v678_v53, 7  ;;  %vm6757_vm2 = vcmp.eq.s32.totalorder %v1234_v44, 0  ;;  %v6775_v44 = vadd.s32 72, %v6612_v19 }
 0x13d   : > { %v5642_v0 = vpop.f32.mrb[6].mxu0  ;;  %v6681_v2 = vsel %vm1518_vm1, %v1490_v56, %v1491_v50  ;;  %v6685_v3 = vsel %vm1518_vm1, %v1489_v32, %v1490_v56  ;;  %v6768_v56 = vadd.s32 40, %v6612_v19 }
 0x13e   : > { %v5666_v1 = vpop.f32.mrb[6].mxu1  ;;  %v6689_v4 = vsel %vm1518_vm1, %v1506_v57, %v1507_v51  ;;  %v6693_v5 = vsel %vm1518_vm1, %v1505_v33, %v1506_v57  ;;  %v1493_v6 = vrot.slane %v5642_v0, 7  ;;  %v608_v8 = vpop.f32.mrb[7].mxu0  ;;  %v6736_v57 = vadd.s32 8, %v6612_v19 }
 0x13f   : > { %8361 = vst [vmem:[#allocation12_spill] sm:$0xff] %v6689_v4  ;;  %v1509_v7 = vrot.slane %v5666_v1, 7  ;;  %v688_v9 = vpop.f32.mrb[7].mxu1  ;;  %v1492_v12 = vrot.slane %v608_v8, 7  ;;  %v6762_v1 = vadd.s32 24, %v6612_v19  ;;  %v8396_v4 = vrot.slane %v6614_v23, 7 }
 0x140   : > { %v1508_v13 = vrot.slane %v688_v9, 7 }
 0x141   : > { %v5645_v22 = vpop.f32.mrb[8].mxu0  ;;  %v6717_v28 = vsel %vm1518_vm1, %v1492_v12, %v1493_v6  ;;  %v6721_v29 = vsel %vm1518_vm1, %v1491_v50, %v1492_v12  ;;  %v1255_v60 = vand.u32 15, %v6762_v1 }
 0x142   : > { %v5669_v24 = vpop.f32.mrb[8].mxu1  ;;  %v6725_v32 = vsel %vm1518_vm1, %v1508_v13, %v1509_v7  ;;  %v6729_v33 = vsel %vm1518_vm1, %v1507_v51, %v1508_v13  ;;  %v1495_v34 = vrot.slane %v5645_v22, 7  ;;  %v618_v37 = vpop.f32.mrb[9].mxu0 }
 0x143   : > { %8362 = vst [vmem:[#allocation13_spill] sm:$0xff] %v6725_v32  ;;  %v1511_v35 = vrot.slane %v5669_v24, 7  ;;  %v698_v38 = vpop.f32.mrb[9].mxu1  ;;  %v1494_v52 = vrot.slane %v618_v37, 7  ;;  %vm6943_vm15 = vcmp.eq.s32.totalorder %v1255_v60, 15 }
 0x144   : > { %v1510_v53 = vrot.slane %v698_v38, 7 }
 0x145   : > { %v5648_v8 = vpop.f32.mrb[10].mxu0  ;;  %v6743_v12 = vsel %vm1518_vm1, %v1494_v52, %v1495_v34  ;;  %v6747_v13 = vsel %vm1518_vm1, %v1493_v6, %v1494_v52  ;;  %v6765_v6 = vadd.s32 240, %v6612_v19 }
 0x146   : > { %v5672_v9 = vpop.f32.mrb[10].mxu1  ;;  %v6751_v22 = vsel %vm1518_vm1, %v1510_v53, %v1511_v35  ;;  %v6755_v24 = vsel %vm1518_vm1, %v1509_v7, %v1510_v53  ;;  %v1497_v37 = vrot.slane %v5648_v8, 7  ;;  %v628_v18 = vpop.f32.mrb[11].mxu0  ;;  %v6771_v7 = vadd.s32 56, %v6612_v19 }
 0x147   : > { %8363 = vst [vmem:[#allocation14_spill] sm:$0xff] %v6751_v22  ;;  %v1513_v38 = vrot.slane %v5672_v9, 7  ;;  %v708_v51 = vpop.f32.mrb[11].mxu1  ;;  %8366 = vst [vmem:[#allocation15_spill] sm:$0xff] %v6765_v6  ;;  %v1496_v52 = vrot.slane %v628_v18, 7  ;;  %v1241_v53 = vand.u32 15, %v6736_v57 }
 0x148   : > { %v1512_v50 = vrot.slane %v708_v51, 7  ;;  %v6778_v8 = vadd.s32 88, %v6612_v19  ;;  %v6781_v9 = vadd.s32 104, %v6612_v19  ;;  %v8398_v6 = vand.u32 15, %v6676_v62 }
 0x149   : > { %v5651_v45 = vpop.f32.mrb[12].mxu0  ;;  %v6787_v51 = vsel %vm1518_vm1, %v1496_v52, %v1497_v37  ;;  %v6791_v16 = vsel %vm1518_vm1, %v1495_v34, %v1496_v52  ;;  %v6817_v34 = vadd.s32 120, %v6612_v19  ;;  %vm6877_vm11 = vcmp.eq.s32.totalorder %v1241_v53, 15 }
 0x14a   : > { %8367 = vst [vmem:[#allocation16_spill] sm:$0xff] %v6781_v9  ;;  %v6783_v18 = vpop.f32.mrb[12].mxu1  ;;  %v6795_v57 = vsel %vm1518_vm1, %v1512_v50, %v1513_v38  ;;  %v6799_v27 = vsel %vm1518_vm1, %v1511_v35, %v1512_v50  ;;  %v1499_v26 = vrot.slane %v5651_v45, 7  ;;  %v638_v61 = vpop.f32.mrb[13].mxu0  ;;  %v8374_v35 = vand.u32 15, %v6637_v39 }
 0x14b   : > { %8368 = vst [vmem:[#allocation17_spill] sm:$0xff] %v6795_v57  ;;  %v1515_v10 = vrot.slane %v6783_v18, 7  ;;  %v718_v63 = vpop.f32.mrb[13].mxu1  ;;  %v1498_v52 = vrot.slane %v638_v61, 7  ;;  %v8371_v61 = vand.u32 15, %v6640_v40  ;;  %v8377_v18 = vand.u32 15, %v6643_v41 }
 0x14c   : > { %v1514_v58 = vrot.slane %v718_v63, 7  ;;  %vm6827_vm6 = vcmp.eq.s32.totalorder %v8374_v35, 0  ;;  %v8381_v39 = vand.u32 15, %v6649_v43  ;;  %v6901_v53 = vadd.s32 216, %v6612_v19 }
 0x14d   : > { %vm6821_vm5 = vcmp.eq.s32.totalorder %v8371_v61, 0  ;;  %v5654_v54 = vpop.f32.mrb[14].mxu0  ;;  %vm6833_vm7 = vcmp.eq.s32.totalorder %v8377_v18, 0  ;;  %v6839_v40 = vsel %vm1518_vm1, %v1498_v52, %v1499_v26  ;;  %v6843_v61 = vsel %vm1518_vm1, %v1497_v37, %v1498_v52 }
 0x14e   : > { %v5678_v63 = vpop.f32.mrb[14].mxu1  ;;  %8380 = vst [vmem:[#allocation18_spill] sm:$0xff] %v6839_v40  ;;  %vm6847_vm8 = vcmp.eq.s32.totalorder %v8381_v39, 0  ;;  %v6853_v41 = vsel %vm1518_vm1, %v1514_v58, %v1515_v10  ;;  %v6857_v18 = vsel %vm1518_vm1, %v1513_v38, %v1514_v58  ;;  %v1501_v50 = vrot.slane %v5654_v54, 7  ;;  %v648_v22 = vpop.f32.mrb[15].mxu0 }
 0x14f   : > { %8384 = vst [vmem:[#allocation19_spill] sm:$0xff] %v6853_v41  ;;  %v1517_v57 = vrot.slane %v5678_v63, 7  ;;  %v728_v32 = vpop.f32.mrb[15].mxu1  ;;  %v8385_v37 = vand.u32 15, %v6646_v42  ;;  %v6866_v52 = vadd.s32 136, %v6612_v19  ;;  %v6869_v39 = vadd.s32 152, %v6612_v19 }
 0x150   : > { %v8389_v41 = vand.u32 15, %v6669_v55  ;;  %v1500_v38 = vrot.slane %v648_v22, 7  ;;  %v1516_v54 = vrot.slane %v728_v32, 7  ;;  %v6882_v63 = vadd.s32 168, %v6612_v19 }
 0x151   : > { %vm6861_vm9 = vcmp.eq.s32.totalorder %v8385_v37, 0  ;;  %8388 = vst [vmem:[#allocation20_spill] sm:$0xff] %v6869_v39  ;;  %v6885_v37 = vadd.s32 184, %v6612_v19  ;;  %v1550_v55 = vsel %vm1518_vm1, %v1517_v57, %v8396_v4  ;;  %v6898_v22 = vadd.s32 200, %v6612_v19  ;;  %v5745_v31 = vpop.f32.mrb[16].mxu0 }
 0x152   : > { %vm6873_vm10 = vcmp.eq.s32.totalorder %v8389_v41, 0  ;;  %8394 = vst [vmem:[#allocation21_spill] sm:$0xff] %v6882_v63  ;;  %v8397_v41 = vrot.slane %v6616_v25, 7  ;;  %v5689_v48 = vpop.f32.mrb[16].mxu1  ;;  %v1615_v23 = vsel %vm6757_vm2, 0.0, %v1550_v55  ;;  %vm6907_vm12 = vcmp.eq.s32.totalorder %v8398_v6, 0 }
 0x153   : > { %8395 = vst [vmem:[#allocation22_spill] sm:$0xff] %v6885_v37  ;;  %v6913_v25 = vsel %vm1518_vm1, %v1500_v38, %v1501_v50  ;;  %v8402_v40 = vand.u32 15, %v6697_v11  ;;  %v8405_v62 = vand.u32 15, %v6703_v15  ;;  %v6932_v6 = vadd.s32 248, %v6612_v19 }
 0x154   : > { %v6895_v32 = vsel %vm1518_vm1, %v1501_v50, %v8397_v41  ;;  %v6917_v41 = vsel %vm1518_vm1, %v1499_v26, %v1500_v38  ;;  %v1841_v50 = vadd.f32 %v5689_v48, %v6625_v30  ;;  %v1680_v55 = vrot.slane %v5745_v31, 1  ;;  %v808_v26 = vpop.f32.mrb[17].mxu1  ;;  %v6935_v38 = vpop.f32.mrb[17].mxu0  ;;  %v6957_v48 = vld [vmem:[%s8337_s3] ss:$0 sm:$0xff] }
 0x155   : > { %8401 = vst [vmem:[#allocation23_spill] sm:$0xff] %v6917_v41  ;;  %vm6921_vm13 = vcmp.eq.s32.totalorder %v8402_v40, 0  ;;  %vm6927_vm14 = vcmp.eq.s32.totalorder %v8405_v62, 0  ;;  %8408 = vst [vmem:[#allocation24_spill] sm:$0xff] %v6935_v38  ;;  %v6940_v40 = vsel %vm1518_vm1, %v1516_v54, %v1517_v57  ;;  %v1840_v15 = vadd.f32 %v1615_v23, %v808_v26  ;;  %v5748_v11 = vpop.f32.mrb[18].mxu0 }
 0x156   : > { %8409 = vst [vmem:[#allocation25_spill] sm:$0xff] %v6940_v40  ;;  %v8352_v62 = vrot.slane %v6935_v38, 1  ;;  %v6949_v30 = vsel %vm1518_vm1, %v1515_v10, %v1516_v54  ;;  %v6952_v31 = vadd.s32 232, %v6612_v19  ;;  %v5692_v54 = vpop.f32.mrb[18].mxu1  ;;  %v8413_v40 = vand.u32 15, %v6700_v14  ;;  %v1048_v14 = vpop.f32.mrb[19].mxu0 }
 0x157   : > { %8412 = vst [vmem:[#allocation26_spill] sm:$0xff] %v6949_v30  ;;  %v1843_v38 = vadd.f32 %v5692_v54, %v6653_v46  ;;  %v1682_v37 = vrot.slane %v5748_v11, 1  ;;  %v818_v63 = vpop.f32.mrb[19].mxu1  ;;  %v1681_v60 = vrot.slane %v1048_v14, 1  ;;  %v8419_v23 = vand.u32 15, %v6768_v56 }
 0x158   : > { %v1742_v10 = vsel %vm1711_vm3, %v8352_v62, %v1680_v55  ;;  %vm6969_vm1 = vcmp.eq.s32.totalorder %v8413_v40, 0  ;;  %v1617_v62 = vsel %vm6807_vm4, 0.0, %v6657_v47  ;;  %v8416_v40 = vand.u32 15, %v6713_v21 }
 0x159   : > { %v1872_v26 = vadd.f32 %v1840_v15, %v1742_v10  ;;  %v1842_v57 = vadd.f32 %v1617_v62, %v818_v63  ;;  %vm6988_vm0 = vcmp.eq.s32.totalorder %v8419_v23, 15  ;;  %v1633_v46 = vsel %vm6821_vm5, 0.0, %v6665_v49  ;;  %v5751_v10 = vpop.f32.mrb[20].mxu0 }
 0x15a   : > { %vm6982_vm2 = vcmp.eq.s32.totalorder %v8416_v40, 0  ;;  %v1619_v59 = vsel %vm6827_vm6, 0.0, %v6685_v3  ;;  %v1621_v21 = vsel %vm6833_vm7, 0.0, %v6721_v29  ;;  %v1635_v63 = vsel %vm6847_vm8, 0.0, %v6693_v5  ;;  %v5695_v23 = vpop.f32.mrb[20].mxu1  ;;  %v1058_v40 = vpop.f32.mrb[21].mxu0 }
 0x15b   : > { %v1911_v56 = vadd.f32 %v6957_v48, %v1872_v26  ;;  %v1740_v11 = vsel %vm1711_vm3, %v1681_v60, %v1682_v37  ;;  %v1741_v62 = vsel %vm1711_vm3, %v1680_v55, %v1681_v60  ;;  %v1623_v3 = vsel %vm6861_vm9, 0.0, %v6747_v13  ;;  %v828_v14 = vpop.f32.mrb[21].mxu1  ;;  %v7022_v55 = vld [vmem:[%s8338_s4] ss:$0 sm:$0xff] }
 0x15c   : > { %v1809_v45 = vsel %vm6877_vm11, 0.0, %v1741_v62  ;;  %v1874_v1 = vadd.f32 %v1842_v57, %v1740_v11  ;;  %v1845_v26 = vadd.f32 %v5695_v23, %v6681_v2  ;;  %v1684_v54 = vrot.slane %v5751_v10, 1 }
 0x15d   : > { %v8422_v13 = vand.u32 15, %v6710_v20  ;;  %v1844_v60 = vadd.f32 %v1619_v59, %v828_v14  ;;  %v1683_v42 = vrot.slane %v1058_v40, 1  ;;  %v1943_v62 = vmax.f32 %v1911_v56, 0.0 }
 0x15e   : > { %v8425_v57 = vand.u32 15, %v6771_v7  ;;  %v1873_v11 = vadd.f32 %v1841_v50, %v1809_v45  ;;  %v1913_v23 = vadd.f32 %v6957_v48, %v1874_v1  ;;  %v1625_v20 = vsel %vm6907_vm12, 0.0, %v6791_v16  ;;  %v5698_v56 = vpop.f32.mrb[22].mxu1  ;;  %v5754_v45 = vpop.f32.mrb[22].mxu0 }
 0x15f   : > { %vm7026_vm4 = vcmp.eq.s32.totalorder %v8422_v13, 0  ;;  %v1738_v7 = vsel %vm1711_vm3, %v1683_v42, %v1684_v54  ;;  %v1739_v50 = vsel %vm1711_vm3, %v1682_v37, %v1683_v42  ;;  %v1982_v1 = vmul.f32 %v7022_v55, %v1943_v62  ;;  %v1068_v47 = vpop.f32.mrb[23].mxu0 }
 0x160   : > { %vm7032_vm6 = vcmp.eq.s32.totalorder %v8425_v57, 15  ;;  %v1912_v16 = vadd.f32 %v6957_v48, %v1873_v11  ;;  %v1811_v4 = vsel %vm6943_vm15, 0.0, %v1739_v50  ;;  %v1876_v14 = vadd.f32 %v1844_v60, %v1738_v7  ;;  %v838_v57 = vpop.f32.mrb[23].mxu1 }
 0x161   : > { %v1847_v40 = vadd.f32 %v5698_v56, %v6717_v28  ;;  %v1686_v13 = vrot.slane %v5754_v45, 1  ;;  %v1846_v59 = vadd.f32 %v1621_v21, %v838_v57  ;;  %v1685_v10 = vrot.slane %v1068_v47, 1 }
 0x162   : > { %vm8428_vm7 = vcmask 130048   ;;  %v1945_v37 = vmax.f32 %v1913_v23, 0.0  ;;  %v8429_v42 = vand.u32 15, %v6775_v44  ;;  %v1944_v41 = vmax.f32 %v1912_v16, 0.0  ;;  %v5701_v44 = vpop.f32.mrb[24].mxu1  ;;  %v5757_v23 = vpop.f32.mrb[24].mxu0 }
 0x163   : > { %v2015_v29 = vsel %vm8428_vm7, %v1982_v1, 0.0  ;;  %v1875_v11 = vadd.f32 %v1843_v38, %v1811_v4  ;;  %v1915_v60 = vadd.f32 %v6957_v48, %v1876_v14  ;;  %v1627_v28 = vsel %vm6969_vm1, 0.0, %v6843_v61  ;;  %v848_v56 = vpop.f32.mrb[25].mxu1  ;;  %v1078_v45 = vpop.f32.mrb[25].mxu0  ;;  %vm8432_vm11 = vmmov %vm8428_vm7 }
 0x164   : > { %vm7058_vm9 = vcmp.eq.s32.totalorder %v8429_v42, 15  ;;  %2016 = vadd.xlane.f32.xlu0 %v2015_v29  ;;  %v1736_v47 = vsel %vm1711_vm3, %v1685_v10, %v1686_v13  ;;  %v1737_v21 = vsel %vm1711_vm3, %v1684_v54, %v1685_v10  ;;  %v1984_v7 = vmul.f32 %v7022_v55, %v1945_v37 }
 0x165   : > { %v1643_v38 = vsel %vm6982_vm2, 0.0, %v6857_v18  ;;  %v1813_v29 = vsel %vm6988_vm0, 0.0, %v1737_v21  ;;  %v1878_v50 = vadd.f32 %v1846_v59, %v1736_v47  ;;  %v7077_v61 = vadd.f32 %v5701_v44, %v6743_v12  ;;  %vm8439_vm0 = vmmov %vm8428_vm7 }
 0x166   : > { %v1688_v30 = vrot.slane %v5757_v23, 1  ;;  %v1848_v1 = vadd.f32 %v1623_v3, %v848_v56  ;;  %v1687_v54 = vrot.slane %v1078_v45, 1  ;;  %v2021_v10 = vsel %vm8432_vm11, %v1984_v7, 0.0  ;;  %v5704_v47 = vpop.f32.mrb[26].mxu1  ;;  %v8440_v45 = vld [vmem:[#allocation16_spill] sm:$0xff]  ;;  %vm8450_vm11 = vmmov %vm8439_vm0 }
 0x167   : > { %v1983_v16 = vmul.f32 %v7022_v55, %v1944_v41  ;;  %v8433_v4 = vand.u32 15, %v6707_v17  ;;  %2022 = vadd.xlane.f32.xlu1 %v2021_v10  ;;  %v1914_v15 = vadd.f32 %v6957_v48, %v1875_v11  ;;  %v1947_v12 = vmax.f32 %v1915_v60, 0.0  ;;  %v5760_v11 = vpop.f32.mrb[26].mxu0  ;;  %v858_v23 = vpop.f32.mrb[27].mxu1 }
 0x168   : > { %v8436_v59 = vand.u32 15, %v6778_v8  ;;  %v1917_v3 = vadd.f32 %v6957_v48, %v1878_v50  ;;  %v1877_v37 = vadd.f32 %v1845_v26, %v1813_v29  ;;  %v1734_v17 = vsel %vm1711_vm3, %v1687_v54, %v1688_v30  ;;  %v1088_v7 = vpop.f32.mrb[27].mxu0 }
 0x169   : > { %vm7083_vm12 = vcmp.eq.s32.totalorder %v8433_v4, 0  ;;  %v1735_v42 = vsel %vm1711_vm3, %v1686_v13, %v1687_v54  ;;  %v2018_v41 = vsel %vm8439_vm0, %v1983_v16, 0.0  ;;  %v1631_v8 = vsel %vm7026_vm4, 0.0, %v6895_v32  ;;  %vm8464_vm4 = vmmov %vm8439_vm0 }
 0x16a   : > { %vm7090_vm15 = vcmp.eq.s32.totalorder %v8436_v59, 15  ;;  %v1815_v60 = vsel %vm7032_vm6, 0.0, %v1735_v42  ;;  %v1880_v21 = vadd.f32 %v1848_v1, %v1734_v17  ;;  %2019 = vadd.xlane.f32.xlu0 %v2018_v41  ;;  %v7106_v26 = vadd.f32 %v5704_v47, %v6787_v51  ;;  %vm8444_vm6 = vmmov %vm8439_vm0  ;;  %v5707_v59 = vpop.f32.mrb[28].mxu1  ;;  %v5763_v17 = vpop.f32.mrb[28].mxu0 }
 0x16b   : > { %v1690_v44 = vrot.slane %v5760_v11, 1  ;;  %v1850_v13 = vadd.f32 %v1625_v20, %v858_v23  ;;  %v1689_v29 = vrot.slane %v1088_v7, 1  ;;  %v1946_v50 = vmax.f32 %v1914_v15, 0.0  ;;  %v868_v47 = vpop.f32.mrb[29].mxu1  ;;  %v1098_v11 = vpop.f32.mrb[29].mxu0 }
 0x16c   : > { %v1986_v56 = vmul.f32 %v7022_v55, %v1947_v12  ;;  %v8441_v54 = vand.u32 15, %v8440_v45  ;;  %v1949_v2 = vmax.f32 %v1917_v3, 0.0  ;;  %v1916_v1 = vadd.f32 %v6957_v48, %v1877_v37  ;;  %v8445_v37 = vld [vmem:[#allocation18_spill] sm:$0xff] }
 0x16d   : > { %v1919_v51 = vadd.f32 %v6957_v48, %v1880_v21  ;;  %v1879_v16 = vadd.f32 %v1847_v40, %v1815_v60  ;;  %v1732_v4 = vsel %vm1711_vm3, %v1689_v29, %v1690_v44  ;;  %v1733_v20 = vsel %vm1711_vm3, %v1688_v30, %v1689_v29  ;;  %v8446_v60 = vld [vmem:[#allocation15_spill] sm:$0xff] }
 0x16e   : > { %vm7111_vm1 = vcmp.eq.s32.totalorder %v8441_v54, 15  ;;  %v1985_v15 = vmul.f32 %v7022_v55, %v1946_v50  ;;  %v2027_v12 = vsel %vm8444_vm6, %v1986_v56, 0.0  ;;  %v1817_v3 = vsel %vm7058_vm9, 0.0, %v1733_v20 }
 0x16f   : > { %v1882_v42 = vadd.f32 %v1850_v13, %v1732_v4  ;;  %2028 = vadd.xlane.f32.xlu0 %v2027_v12  ;;  %v1853_v41 = vadd.f32 %v5707_v59, %v8445_v37  ;;  %v1692_v40 = vrot.slane %v5763_v17, 1  ;;  %v8447_v21 = vand.u32 15, %v8446_v60  ;;  %v8454_v17 = vld [vmem:[#allocation23_spill] sm:$0xff] }
 0x170   : > { %v2024_v23 = vsel %vm8450_vm11, %v1985_v15, 0.0  ;;  %v1852_v7 = vadd.f32 %v1627_v28, %v868_v47  ;;  %v1691_v29 = vrot.slane %v1098_v11, 1  ;;  %v1988_v62 = vmul.f32 %v7022_v55, %v1949_v2  ;;  %v5766_v15 = vpop.f32.mrb[30].mxu0  ;;  %vm8468_vm11 = vmmov %vm8439_vm0 }
 0x171   : > { %vm7128_vm7 = vcmp.eq.s32.totalorder %v8447_v21, 0  ;;  %2025 = vadd.xlane.f32.xlu1 %v2024_v23  ;;  %v1948_v13 = vmax.f32 %v1916_v1, 0.0  ;;  %v8451_v50 = vand.u32 15, %v6817_v34  ;;  %v1951_v45 = vmax.f32 %v1919_v51, 0.0  ;;  %v5710_v1 = vpop.f32.mrb[30].mxu1  ;;  %v1108_v37 = vpop.f32.mrb[31].mxu0 }
 0x172   : > { %v1918_v54 = vadd.f32 %v6957_v48, %v1879_v16  ;;  %v1921_v4 = vadd.f32 %v6957_v48, %v1882_v42  ;;  %v1730_v20 = vsel %vm1711_vm3, %v1691_v29, %v1692_v40  ;;  %v1731_v28 = vsel %vm1711_vm3, %v1690_v44, %v1691_v29  ;;  %v878_v59 = vpop.f32.mrb[31].mxu1 }
 0x173   : > { %vm7136_vm9 = vcmp.eq.s32.totalorder %v8451_v50, 15  ;;  %v2033_v2 = vsel %vm8439_vm0, %v1988_v62, 0.0  ;;  %v1881_v34 = vadd.f32 %v7077_v61, %v1817_v3  ;;  %v1884_v12 = vadd.f32 %v1852_v7, %v1730_v20  ;;  %v5713_v62 = vpop.f32.mrb[32].mxu1 }
 0x174   : > { %2034 = vadd.xlane.f32.xlu0 %v2033_v2  ;;  %v7149_v51 = vadd.f32 %v5710_v1, %v6913_v25  ;;  %v1694_v16 = vrot.slane %v5766_v15, 1  ;;  %v1629_v42 = vsel %vm7083_vm12, 0.0, %v8454_v17  ;;  %v1819_v44 = vsel %vm7090_vm15, 0.0, %v1731_v28  ;;  %vm8458_vm12 = vmmov %vm8439_vm0  ;;  %v888_v2 = vpop.f32.mrb[33].mxu1 }
 0x175   : > { %v1854_v47 = vadd.f32 %v1629_v42, %v878_v59  ;;  %v1693_v11 = vrot.slane %v1108_v37, 1  ;;  %v1987_v60 = vmul.f32 %v7022_v55, %v1948_v13  ;;  %v8455_v61 = vand.u32 15, %v6866_v52  ;;  %v5769_v52 = vpop.f32.mrb[32].mxu0 }
 0x176   : > { %v1950_v25 = vmax.f32 %v1918_v54, 0.0  ;;  %v1953_v21 = vmax.f32 %v1921_v4, 0.0  ;;  %v1920_v23 = vadd.f32 %v6957_v48, %v1881_v34  ;;  %v1923_v14 = vadd.f32 %v6957_v48, %v1884_v12  ;;  %v8459_v4 = vld [vmem:[#allocation10_spill] sm:$0xff]  ;;  %v1118_v1 = vpop.f32.mrb[33].mxu0  ;;  %v8460_v12 = vld [vmem:[#allocation20_spill] sm:$0xff] }
 0x177   : > { %vm7159_vm6 = vcmp.eq.s32.totalorder %v8455_v61, 15  ;;  %v1728_v57 = vsel %vm1711_vm3, %v1693_v11, %v1694_v16  ;;  %v1729_v7 = vsel %vm1711_vm3, %v1692_v40, %v1693_v11  ;;  %v2030_v29 = vsel %vm8458_vm12, %v1987_v60, 0.0  ;;  %v5716_v11 = vpop.f32.mrb[34].mxu1  ;;  %v5772_v60 = vpop.f32.mrb[34].mxu0  ;;  %v8465_v61 = vld [vmem:[#allocation26_spill] sm:$0xff] }
 0x178   : > { %v1990_v13 = vmul.f32 %v7022_v55, %v1951_v45  ;;  %v1821_v50 = vsel %vm7111_vm1, 0.0, %v1729_v7  ;;  %v1886_v54 = vadd.f32 %v1854_v47, %v1728_v57  ;;  %2031 = vadd.xlane.f32.xlu0 %v2030_v29  ;;  %v1857_v20 = vadd.f32 %v5713_v62, %v8459_v4  ;;  %vm8467_vm1 = vmmov %vm8439_vm0 }
 0x179   : > { %v1696_v28 = vrot.slane %v5769_v52, 1  ;;  %v1856_v40 = vadd.f32 %v1631_v8, %v888_v2  ;;  %v1695_v15 = vrot.slane %v1118_v1, 1  ;;  %v1989_v34 = vmul.f32 %v7022_v55, %v1950_v25  ;;  %v8469_v52 = vld [vmem:[#allocation21_spill] sm:$0xff]  ;;  %vm8479_vm12 = vmmov %vm8467_vm1 }
 0x17a   : > { %v8461_v45 = vand.u32 15, %v8460_v12  ;;  %v1992_v59 = vmul.f32 %v7022_v55, %v1953_v21  ;;  %v1952_v17 = vmax.f32 %v1920_v23, 0.0  ;;  %v1955_v42 = vmax.f32 %v1923_v14, 0.0  ;;  %v8466_v23 = vld [vmem:[#allocation11_spill] sm:$0xff]  ;;  %v1128_v14 = vpop.f32.mrb[35].mxu0  ;;  %vm8482_vm8 = vmmov %vm8467_vm1 }
 0x17b   : > { %v1883_v37 = vadd.f32 %v7106_v26, %v1819_v44  ;;  %v1885_v47 = vadd.f32 %v1853_v41, %v1821_v50  ;;  %v1726_v32 = vsel %vm1711_vm3, %v1695_v15, %v1696_v28  ;;  %v7191_v43 = vsel %vm1711_vm3, %v1694_v16, %v1695_v15  ;;  %v898_v44 = vpop.f32.mrb[35].mxu1  ;;  %v5775_v15 = vpop.f32.mrb[36].mxu0  ;;  %vm8504_vm2 = vmmov %vm8467_vm1 }
 0x17c   : > { %vm7181_vm15 = vcmp.eq.s32.totalorder %v8461_v45, 15  ;;  %v2039_v8 = vsel %vm8464_vm4, %v1990_v13, 0.0  ;;  %v1645_v25 = vsel %vm7128_vm7, 0.0, %v8465_v61  ;;  %v1888_v21 = vadd.f32 %v1856_v40, %v1726_v32  ;;  %v5719_v40 = vpop.f32.mrb[36].mxu1  ;;  %vm8489_vm4 = vmmov %vm8467_vm1 }
 0x17d   : > { %2040 = vadd.xlane.f32.xlu0 %v2039_v8  ;;  %v1859_v26 = vadd.f32 %v5716_v11, %v8466_v23  ;;  %v1698_v41 = vrot.slane %v5772_v60, 1  ;;  %v2036_v57 = vsel %vm8467_vm1, %v1989_v34, 0.0  ;;  %v1823_v16 = vsel %vm7136_vm9, 0.0, %v7191_v43  ;;  %v908_v32 = vpop.f32.mrb[37].mxu1  ;;  %v1138_v8 = vpop.f32.mrb[37].mxu0  ;;  %v8474_v60 = vld [vmem:[#allocation22_spill] sm:$0xff]  ;;  %vm8508_vm7 = vmmov %vm8467_vm1 }
 0x17e   : > { %v1858_v7 = vadd.f32 %v1633_v46, %v898_v44  ;;  %v1697_v29 = vrot.slane %v1128_v14, 1  ;;  %v2045_v62 = vsel %vm8468_vm11, %v1992_v59, 0.0  ;;  %v8470_v13 = vand.u32 15, %v8469_v52  ;;  %vm8512_vm9 = vmmov %vm8467_vm1 }
 0x17f   : > { %v1927_v4 = vadd.f32 %v6957_v48, %v1888_v21  ;;  %v1991_v2 = vmul.f32 %v7022_v55, %v1952_v17  ;;  %v1994_v1 = vmul.f32 %v7022_v55, %v1955_v42  ;;  %v1922_v36 = vadd.f32 %v6957_v48, %v1883_v37  ;;  %v8473_v17 = vld [vmem:[#allocation12_spill] sm:$0xff] }
 0x180   : > { %vm7209_vm0 = vcmp.eq.s32.totalorder %v8470_v13, 15  ;;  %v1724_v49 = vsel %vm1711_vm3, %v1697_v29, %v1698_v41  ;;  %v1725_v46 = vsel %vm1711_vm3, %v1696_v28, %v1697_v29  ;;  %v7222_v34 = vadd.f32 %v6957_v48, %v1885_v47 }
 0x181   : > { %v7225_v12 = vadd.f32 %v6957_v48, %v1886_v54  ;;  %v1825_v45 = vsel %vm7159_vm6, 0.0, %v1725_v46  ;;  %v1890_v59 = vadd.f32 %v1858_v7, %v1724_v49  ;;  %2037 = vadd.xlane.f32.xlu0 %v2036_v57  ;;  %v1861_v42 = vadd.f32 %v5719_v40, %v8473_v17  ;;  %vm8478_vm6 = vmmov %vm8467_vm1  ;;  %v5778_v7 = vpop.f32.mrb[38].mxu0 }
 0x182   : > { %v1700_v37 = vrot.slane %v5775_v15, 1  ;;  %v1860_v28 = vadd.f32 %v1635_v63, %v908_v32  ;;  %v1699_v47 = vrot.slane %v1138_v8, 1  ;;  %v1959_v11 = vmax.f32 %v1927_v4, 0.0  ;;  %v5722_v63 = vpop.f32.mrb[38].mxu1  ;;  %v1148_v49 = vpop.f32.mrb[39].mxu0 }
 0x183   : > { %v8475_v54 = vand.u32 15, %v8474_v60  ;;  %v1954_v3 = vmax.f32 %v1922_v36, 0.0  ;;  %v2042_v23 = vsel %vm8478_vm6, %v1991_v2, 0.0  ;;  %v1929_v44 = vadd.f32 %v6957_v48, %v1890_v59  ;;  %v8480_v2 = vld [vmem:[#allocation13_spill] sm:$0xff]  ;;  %v918_v36 = vpop.f32.mrb[39].mxu1  ;;  %v5781_v8 = vpop.f32.mrb[40].mxu0  ;;  %vm8509_vm6 = vmmov %vm8467_vm1 }
 0x184   : > { %v2051_v14 = vsel %vm8479_vm12, %v1994_v1, 0.0  ;;  %v1889_v57 = vadd.f32 %v1857_v20, %v1825_v45  ;;  %v1722_v5 = vsel %vm1711_vm3, %v1699_v47, %v1700_v37  ;;  %v1723_v35 = vsel %vm1711_vm3, %v1698_v41, %v1699_v47  ;;  %vm8510_vm12 = vmmov %vm8467_vm1 }
 0x185   : > { %vm7236_vm5 = vcmp.eq.s32.totalorder %v8475_v54, 15  ;;  %v1998_v29 = vmul.f32 %v7022_v55, %v1959_v11  ;;  %v1993_v52 = vmul.f32 %v7022_v55, %v1954_v3  ;;  %v1827_v13 = vsel %vm7181_vm15, 0.0, %v1723_v35  ;;  %2046 = vadd.xlane.f32.xlu0 %v2045_v62  ;;  %vm8486_vm15 = vmmov %vm8467_vm1  ;;  %v8487_v54 = vld [vmem:[#allocation14_spill] sm:$0xff]  ;;  %v8505_v11 = vld [vmem:[#allocation25_spill] sm:$0xff] }
 0x186   : > { %v1892_v4 = vadd.f32 %v1860_v28, %v1722_v5  ;;  %v7252_v1 = vadd.f32 %v5722_v63, %v8480_v2  ;;  %v1702_v20 = vrot.slane %v5778_v7, 1  ;;  %v8481_v41 = vsel %vm6873_vm10, 0.0, %v6729_v33  ;;  %v5725_v33 = vpop.f32.mrb[40].mxu1 }
 0x187   : > { %v1862_v46 = vadd.f32 %v8481_v41, %v918_v36  ;;  %v1701_v40 = vrot.slane %v1148_v49, 1  ;;  %v2063_v15 = vsel %vm8482_vm8, %v1998_v29, 0.0  ;;  %v1961_v45 = vmax.f32 %v1929_v44, 0.0  ;;  %v928_v44 = vpop.f32.mrb[41].mxu1  ;;  %vm8513_vm8 = vmmov %vm8467_vm1 }
 0x188   : > { %2064 = vadd.xlane.f32.xlu1 %v2063_v15  ;;  %v1931_v10 = vadd.f32 %v6957_v48, %v1892_v4  ;;  %v1928_v62 = vadd.f32 %v6957_v48, %v1889_v57  ;;  %v1891_v59 = vadd.f32 %v1859_v26, %v1827_v13  ;;  %v1956_v17 = vmax.f32 %v7222_v34, 0.0  ;;  %v1158_v57 = vpop.f32.mrb[41].mxu0  ;;  %v5728_v4 = vpop.f32.mrb[42].mxu1 }
 0x189   : > { %v1720_v32 = vsel %vm1711_vm3, %v1701_v40, %v1702_v20  ;;  %v1721_v58 = vsel %vm1711_vm3, %v1700_v37, %v1701_v40  ;;  %v2000_v28 = vmul.f32 %v7022_v55, %v1961_v45  ;;  %v8483_v47 = vand.u32 15, %v6898_v22  ;;  %2043 = vadd.xlane.f32.xlu0 %v2042_v23  ;;  %v8493_v40 = vld [vmem:[#allocation17_spill] sm:$0xff]  ;;  %v938_v45 = vpop.f32.mrb[43].mxu1 }
 0x18a   : > { %v2048_v26 = vsel %vm8486_vm15, %v1993_v52, 0.0  ;;  %v1829_v34 = vsel %vm7209_vm0, 0.0, %v1721_v58  ;;  %v1894_v60 = vadd.f32 %v1862_v46, %v1720_v32  ;;  %v7277_v3 = vadd.f32 %v5725_v33, %v8487_v54  ;;  %vm8515_vm15 = vmmov %vm8467_vm1 }
 0x18b   : > { %vm7269_vm10 = vcmp.eq.s32.totalorder %v8483_v47, 15  ;;  %v1704_v37 = vrot.slane %v5781_v8, 1  ;;  %v8488_v22 = vsel %vm6921_vm13, 0.0, %v6755_v24  ;;  %v1703_v35 = vrot.slane %v1158_v57, 1  ;;  %v5784_v24 = vpop.f32.mrb[42].mxu0  ;;  %v8501_v57 = vld [vmem:[#allocation19_spill] sm:$0xff] }
 0x18c   : > { %v1864_v5 = vadd.f32 %v8488_v22, %v928_v44  ;;  %v2069_v63 = vsel %vm8489_vm4, %v2000_v28, 0.0  ;;  %v1963_v7 = vmax.f32 %v1931_v10, 0.0  ;;  %v1933_v50 = vadd.f32 %v6957_v48, %v1894_v60  ;;  %v1168_v10 = vpop.f32.mrb[43].mxu0  ;;  %vm8516_vm4 = vmmov %vm8467_vm1 }
 0x18d   : > { %2070 = vadd.xlane.f32.xlu1 %v2069_v63  ;;  %v1960_v29 = vmax.f32 %v1928_v62, 0.0  ;;  %v1893_v23 = vadd.f32 %v1861_v42, %v1829_v34  ;;  %v1930_v52 = vadd.f32 %v6957_v48, %v1891_v59  ;;  %v1718_v13 = vsel %vm1711_vm3, %v1703_v35, %v1704_v37  ;;  %2052 = vadd.xlane.f32.xlu0 %v2051_v14  ;;  %v5731_v34 = vpop.f32.mrb[44].mxu1 }
 0x18e   : > { %v1719_v9 = vsel %vm1711_vm3, %v1702_v20, %v1703_v35  ;;  %v2002_v2 = vmul.f32 %v7022_v55, %v1963_v7  ;;  %v8490_v36 = vand.u32 15, %v6901_v53  ;;  %v1995_v42 = vmul.f32 %v7022_v55, %v1956_v17  ;;  %v948_v35 = vpop.f32.mrb[45].mxu1 }
 0x18f   : > { %v1831_v41 = vsel %vm7236_vm5, 0.0, %v1719_v9  ;;  %v1896_v46 = vadd.f32 %v1864_v5, %v1718_v13  ;;  %v7301_v15 = vadd.f32 %v5728_v4, %v8493_v40  ;;  %v1706_v20 = vrot.slane %v5784_v24, 1  ;;  %vm8503_vm5 = vmmov %vm8467_vm1 }
 0x190   : > { %vm7293_vm13 = vcmp.eq.s32.totalorder %v8490_v36, 15  ;;  %v8494_v53 = vsel %vm6927_vm14, 0.0, %v6799_v27  ;;  %v1705_v59 = vrot.slane %v1168_v10, 1  ;;  %v2075_v32 = vsel %vm8467_vm1, %v2002_v2, 0.0  ;;  %vm8502_vm14 = vmmov %vm8467_vm1 }
 0x191   : > { %v1866_v62 = vadd.f32 %v8494_v53, %v938_v45  ;;  %v1965_v17 = vmax.f32 %v1933_v50, 0.0  ;;  %v8495_v21 = vand.u32 15, %v6932_v6  ;;  %v8498_v14 = vand.u32 15, %v6952_v31  ;;  %2076 = vadd.xlane.f32.xlu1 %v2075_v32  ;;  %v5787_v31 = vpop.f32.mrb[44].mxu0  ;;  %2049 = vadd.xlane.f32.xlu0 %v2048_v26 }
 0x192   : > { %v1999_v27 = vmul.f32 %v7022_v55, %v1960_v29  ;;  %v1932_v0 = vadd.f32 %v6957_v48, %v1893_v23  ;;  %v1962_v8 = vmax.f32 %v1930_v52, 0.0  ;;  %v1935_v28 = vadd.f32 %v6957_v48, %v1896_v46  ;;  %v1178_v63 = vpop.f32.mrb[45].mxu0 }
 0x193   : > { %vm7310_vm11 = vcmp.eq.s32.totalorder %v8495_v21, 15  ;;  %vm7316_vm0 = vcmp.eq.s32.totalorder %v8498_v14, 15  ;;  %v1716_v6 = vsel %vm1711_vm3, %v1705_v59, %v1706_v20  ;;  %v1717_v47 = vsel %vm1711_vm3, %v1704_v37, %v1705_v59  ;;  %v5790_v9 = vpop.f32.mrb[46].mxu0 }
 0x194   : > { %v2004_v60 = vmul.f32 %v7022_v55, %v1965_v17  ;;  %v1895_v54 = vadd.f32 %v7252_v1, %v1831_v41  ;;  %v1898_v44 = vadd.f32 %v1866_v62, %v1716_v6  ;;  %v1869_v22 = vadd.f32 %v5731_v34, %v8501_v57  ;;  %v1188_v41 = vpop.f32.mrb[47].mxu0  ;;  %v8506_v62 = vld [vmem:[#allocation24_spill] sm:$0xff] }
 0x195   : > { %v1708_v5 = vrot.slane %v5787_v31, 1  ;;  %v1957_v7 = vmax.f32 %v7225_v12, 0.0  ;;  %v1868_v37 = vadd.f32 %v1643_v38, %v948_v35  ;;  %v1707_v50 = vrot.slane %v1178_v63, 1  ;;  %v5734_v38 = vpop.f32.mrb[46].mxu1 }
 0x196   : > { %v2081_v29 = vsel %vm8502_vm14, %v2004_v60, 0.0  ;;  %v2054_v23 = vsel %vm8503_vm5, %v1995_v42, 0.0  ;;  %v1833_v1 = vsel %vm7269_vm10, 0.0, %v1717_v47  ;;  %v1964_v26 = vmax.f32 %v1932_v0, 0.0  ;;  %v958_v42 = vpop.f32.mrb[47].mxu1  ;;  %vm8514_vm10 = vmmov %vm8467_vm1 }
 0x197   : > { %2082 = vadd.xlane.f32.xlu1 %v2081_v29  ;;  %v1967_v52 = vmax.f32 %v1935_v28, 0.0  ;;  %v1934_v13 = vadd.f32 %v6957_v48, %v1895_v54  ;;  %v1714_v12 = vsel %vm1711_vm3, %v1707_v50, %v1708_v5  ;;  %v1715_v18 = vsel %vm1711_vm3, %v1706_v20, %v1707_v50 }
 0x198   : > { %v2066_v39 = vsel %vm8504_vm2, %v1999_v27, 0.0  ;;  %v2001_v4 = vmul.f32 %v7022_v55, %v1962_v8  ;;  %v1900_v24 = vadd.f32 %v1868_v37, %v1714_v12  ;;  %v1871_v2 = vadd.f32 %v5734_v38, %v8505_v11 }
 0x199   : > { %2067 = vadd.xlane.f32.xlu0 %v2066_v39  ;;  %v1710_v36 = vrot.slane %v5790_v9, 1  ;;  %v1996_v46 = vmul.f32 %v7022_v55, %v1957_v7  ;;  %v1870_v40 = vadd.f32 %v1645_v25, %v958_v42  ;;  %v1709_v20 = vrot.slane %v1188_v41, 1 }
 0x19a   : > { %v2003_v45 = vmul.f32 %v7022_v55, %v1964_v26  ;;  %v1937_v10 = vadd.f32 %v6957_v48, %v1898_v44  ;;  %v1835_v53 = vsel %vm7293_vm13, 0.0, %v1715_v18  ;;  %v8507_v59 = vrot.slane %v8506_v62, 1  ;;  %vm8517_vm13 = vmmov %vm8467_vm1 }
 0x19b   : > { %v2006_v17 = vmul.f32 %v7022_v55, %v1967_v52  ;;  %v1966_v21 = vmax.f32 %v1934_v13, 0.0  ;;  %v1712_v30 = vsel %vm1711_vm3, %v1709_v20, %v1710_v36  ;;  %v1713_v61 = vsel %vm1711_vm3, %v1708_v5, %v1709_v20 }
 0x19c   : > { %v1743_v32 = vsel %vm1711_vm3, %v1710_v36, %v8507_v59  ;;  %v2078_v25 = vsel %vm8508_vm7, %v2003_v45, 0.0  ;;  %v2072_v14 = vsel %vm8509_vm6, %v2001_v4, 0.0  ;;  %v1837_v27 = vsel %vm7316_vm0, 0.0, %v1713_v61  ;;  %vm8511_vm3 = vmmov %vm8467_vm1 }
 0x19d   : > { %v1839_v49 = vsel %vm7310_vm11, 0.0, %v1743_v32  ;;  %v1902_v0 = vadd.f32 %v1870_v40, %v1712_v30  ;;  %2079 = vadd.xlane.f32.xlu1 %v2078_v25  ;;  %2073 = vadd.xlane.f32.xlu0 %v2072_v14  ;;  %v2057_v8 = vsel %vm8510_vm12, %v1996_v46, 0.0  ;;  %v1901_v28 = vadd.f32 %v1869_v22, %v1837_v27  ;;  %vm8518_vm11 = vmmov %vm8467_vm1 }
 0x19e   : > { %v2005_v6 = vmul.f32 %v7022_v55, %v1966_v21  ;;  %v1887_v47 = vadd.f32 %v7149_v51, %v1823_v16  ;;  %v1897_v58 = vadd.f32 %v7277_v3, %v1833_v1  ;;  %v2087_v34 = vsel %vm8511_vm3, %v2006_v17, 0.0  ;;  %vm8519_vm0 = vmmov %vm8467_vm1 }
 0x19f   : > { %v1939_v33 = vadd.f32 %v6957_v48, %v1900_v24  ;;  %v1899_v31 = vadd.f32 %v7301_v15, %v1835_v53  ;;  %v1941_v60 = vadd.f32 %v6957_v48, %v1902_v0  ;;  %v1969_v54 = vmax.f32 %v1937_v10, 0.0 }
 0x1a0   : > { %v1926_v44 = vadd.f32 %v6957_v48, %v1887_v47  ;;  %v1936_v57 = vadd.f32 %v6957_v48, %v1897_v58  ;;  %v1940_v56 = vadd.f32 %v6957_v48, %v1901_v28  ;;  %v1903_v3 = vadd.f32 %v1871_v2, %v1839_v49 }
 0x1a1   : > { %2088 = vadd.xlane.f32.xlu1 %v2087_v34  ;;  %2055 = vadd.xlane.f32.xlu0 %v2054_v23  ;;  %v1971_v51 = vmax.f32 %v1939_v33, 0.0  ;;  %v1938_v43 = vadd.f32 %v6957_v48, %v1899_v31  ;;  %v1973_v16 = vmax.f32 %v1941_v60, 0.0  ;;  %v2084_v22 = vsel %vm8512_vm9, %v2005_v6, 0.0 }
 0x1a2   : > { %v1958_v5 = vmax.f32 %v1926_v44, 0.0  ;;  %v1968_v15 = vmax.f32 %v1936_v57, 0.0  ;;  %v1972_v35 = vmax.f32 %v1940_v56, 0.0  ;;  %v1942_v50 = vadd.f32 %v6957_v48, %v1903_v3 }
 0x1a3   : > { %v2010_v63 = vmul.f32 %v7022_v55, %v1971_v51  ;;  %v1970_v7 = vmax.f32 %v1938_v43, 0.0  ;;  %v2012_v37 = vmul.f32 %v7022_v55, %v1973_v16  ;;  %v2008_v29 = vmul.f32 %v7022_v55, %v1969_v54 }
 0x1a4   : > { %v1997_v23 = vmul.f32 %v7022_v55, %v1958_v5  ;;  %v2007_v1 = vmul.f32 %v7022_v55, %v1968_v15  ;;  %v2011_v26 = vmul.f32 %v7022_v55, %v1972_v35  ;;  %v1974_v18 = vmax.f32 %v1942_v50, 0.0 }
 0x1a5   : > { %2085 = vadd.xlane.f32.xlu1 %v2084_v22  ;;  %2058 = vadd.xlane.f32.xlu0 %v2057_v8  ;;  %v2099_v52 = vsel %vm8513_vm8, %v2010_v63, 0.0  ;;  %v2009_v13 = vmul.f32 %v7022_v55, %v1970_v7  ;;  %v2105_v12 = vsel %vm8514_vm10, %v2012_v37, 0.0  ;;  %v2093_v4 = vsel %vm8467_vm1, %v2008_v29, 0.0 }
 0x1a6   : > { %v2090_v39 = vsel %vm8515_vm15, %v2007_v1, 0.0  ;;  %v2102_v48 = vsel %vm8516_vm4, %v2011_v26, 0.0  ;;  %v2013_v9 = vmul.f32 %v7022_v55, %v1974_v18  ;;  %v2060_v24 = vsel %vm8518_vm11, %v1997_v23, 0.0 }
 0x1a7   : > { %v2096_v38 = vsel %vm8517_vm13, %v2009_v13, 0.0  ;;  %v6101_v2 = vmov 0   ;;  %v7405_v36 = vstv %s2111_s29  ;;  %v6102_v47 = vmov 1966171168  }
 0x1a8   : > { %v2108_v11 = vsel %vm8519_vm0, %v2013_v9, 0.0  ;;  %5867 = vset.pattern.permute.xlu0 %v6101_v2  ;;  %5868 = vset.pattern.permute.xlu1 %v6101_v2  ;;  %v3398_v58 = vunpack.c.l.s4 %v6102_v47  ;;  %v7416_v51 = vsub.s32 0, %v6612_v19  ;;  %v7419_v43 = vsub.s32 1, %v6612_v19 }
 0x1a9   : > { %2094 = vadd.xlane.f32.xlu1 %v2093_v4  ;;  %2061 = vadd.xlane.f32.xlu0 %v2060_v24  ;;  %v7422_v16 = vsub.s32 2, %v6612_v19  ;;  %v7425_v5 = vsub.s32 3, %v6612_v19  ;;  %v7428_v15 = vsub.s32 4, %v6612_v19  ;;  %v7432_v7 = vsub.s32 5, %v6612_v19 }
 0x1aa   : > { %v3399_v44 = vunpack.c.0.s8 %v3398_v58  ;;  %v7435_v37 = vsub.s32 6, %v6612_v19  ;;  %v7438_v23 = vsub.s32 7, %v6612_v19  ;;  %vm5068_vm14 = vcmask 130112  }
 0x1ab   : > { %vm5075_vm5 = vcmask 195712   ;;  %vm5082_vm2 = vcmask 261312   ;;  %vm5089_vm7 = vcmask 326912   ;;  %vm5096_vm6 = vcmask 392512  }
 0x1ac   : > { %v7441_v1 = vsub.s32 %v3399_v44, %v6612_v19  ;;  %vm5103_vm12 = vcmask 458112   ;;  %vm5110_vm3 = vcmask 523712   ;;  %vm5117_vm9 = vcmask 589312  }
 0x1ad   : > { %2091 = vadd.xlane.f32.xlu1 %v2090_v39  ;;  %vm5124_vm8 = vcmask 654912   ;;  %vm5131_vm10 = vcmask 720512   ;;  %vm5138_vm15 = vcmask 786112   ;;  %vm5145_vm4 = vcmask 851712  }
 0x1ae   : > { %vm5152_vm13 = vcmask 917312   ;;  %vm5159_vm1 = vcmask 982912   ;;  %vm5166_vm11 = vcmask 1048512  }
 0x1b1   : > { %2100 = vadd.xlane.f32.xlu1 %v2099_v52 }
 0x1b5   : > { %2097 = vadd.xlane.f32.xlu1 %v2096_v38 }
 0x1b9   : > { %2106 = vadd.xlane.f32.xlu1 %v2105_v12 }
 0x1bd   : > { %2103 = vadd.xlane.f32.xlu1 %v2102_v48 }
 0x1c1   : > { %2109 = vadd.xlane.f32.xlu1 %v2108_v11 }
 0x1f1   : > { %v2017_v55 = vpop.xlane.xlu0 %2016 }
 0x1f2   : > { %v2113_v42 = vadd.f32 %v7405_v36, %v2017_v55 }
 0x1f4   : > { %v5477_v41 = vmul.f32 -1.442695, %v2113_v42  ;;  %v2023_v46 = vpop.xlane.xlu1 %2022 }
 0x1f5   : > { %v2115_v40 = vadd.f32 %v7405_v36, %v2023_v46 }
 0x1f6   : > { %5869 = vpow2.f32 %v5477_v41 }
 0x1f7   : > { %v2020_v20 = vpop.xlane.xlu0 %2019  ;;  %v5479_v45 = vmul.f32 -1.442695, %v2115_v40 }
 0x1f8   : > { %v2114_v10 = vadd.f32 %v7405_v36, %v2020_v20 }
 0x1f9   : > { %5871 = vpow2.f32 %v5479_v45 }
 0x1fa   : > { %v5478_v53 = vmul.f32 -1.442695, %v2114_v10 }
 0x1fc   : > { %v2029_v62 = vpop.xlane.xlu0 %2028  ;;  %5873 = vpow2.f32 %v5478_v53 }
 0x1fd   : > { %v2117_v59 = vadd.f32 %v7405_v36, %v2029_v62 }
 0x1fe   : > { %v2026_v32 = vpop.xlane.xlu1 %2025 }
 0x1ff   : > { %v2116_v17 = vadd.f32 %v7405_v36, %v2026_v32  ;;  %v5481_v21 = vmul.f32 -1.442695, %v2117_v59 }
 0x200   : > { %v5870_v61 = vpop.eup %5869 }
 0x201   : > { %v2035_v30 = vpop.xlane.xlu0 %2034  ;;  %v5480_v25 = vmul.f32 -1.442695, %v2116_v17  ;;  %5875 = vpow2.f32 %v5481_v21  ;;  %v2241_v49 = vadd.f32 1.0, %v5870_v61 }
 0x202   : > { %v2119_v14 = vadd.f32 %v7405_v36, %v2035_v30 }
 0x203   : > { %5877 = vpow2.f32 %v5480_v25  ;;  %v5872_v8 = vpop.eup %5871 }
 0x204   : > { %v5483_v27 = vmul.f32 -1.442695, %v2119_v14  ;;  %5879 = vrcp.f32 %v2241_v49  ;;  %v2243_v6 = vadd.f32 1.0, %v5872_v8 }
 0x205   : > { %v2032_v0 = vpop.xlane.xlu0 %2031 }
 0x206   : > { %5881 = vpow2.f32 %v5483_v27  ;;  %v2118_v28 = vadd.f32 %v7405_v36, %v2032_v0  ;;  %v5874_v34 = vpop.eup %5873 }
 0x207   : > { %5883 = vrcp.f32 %v2243_v6  ;;  %v2242_v31 = vadd.f32 1.0, %v5874_v34 }
 0x208   : > { %v5482_v33 = vmul.f32 -1.442695, %v2118_v28 }
 0x20a   : > { %v2041_v60 = vpop.xlane.xlu0 %2040  ;;  %5885 = vpow2.f32 %v5482_v33 }
 0x20b   : > { %v2121_v54 = vadd.f32 %v7405_v36, %v2041_v60  ;;  %v5876_v57 = vpop.eup %5875  ;;  %5887 = vrcp.f32 %v2242_v31 }
 0x20c   : > { %v2245_v3 = vadd.f32 1.0, %v5876_v57 }
 0x20d   : > { %v5485_v56 = vmul.f32 -1.442695, %v2121_v54  ;;  %v5878_v35 = vpop.eup %5877 }
 0x20e   : > { %v2038_v22 = vpop.xlane.xlu0 %2037  ;;  %v5880_v50 = vpop.eup %5879  ;;  %v2244_v29 = vadd.f32 1.0, %v5878_v35 }
 0x20f   : > { %5889 = vpow2.f32 %v5485_v56  ;;  %v2120_v63 = vadd.f32 %v7405_v36, %v2038_v22  ;;  %v2372_v13 = vrot.slane %v5880_v50, %v7416_v51  ;;  %v2376_v12 = vrot.slane %v5880_v50, %v7419_v43 }
 0x210   : > { %5891 = vrcp.f32 %v2245_v3  ;;  %v5882_v26 = vpop.eup %5881  ;;  %v2380_v18 = vrot.slane %v5880_v50, %v7422_v16  ;;  %v2384_v38 = vrot.slane %v5880_v50, %v7425_v5  ;;  %v2388_v9 = vrot.slane %v5880_v50, %v7428_v15 }
 0x211   : > { %v5484_v52 = vmul.f32 -1.442695, %v2120_v63  ;;  %5893 = vrcp.f32 %v2244_v29  ;;  %v2247_v39 = vadd.f32 1.0, %v5882_v26  ;;  %v2392_v24 = vrot.slane %v5880_v50, %v7432_v7  ;;  %v7451_v2 = vpop.eup %5883 }
 0x212   : > { %v2047_v48 = vpop.xlane.xlu0 %2046  ;;  %v2396_v11 = vrot.slane %v5880_v50, %v7435_v37  ;;  %v2400_v42 = vrot.slane %v5880_v50, %v7438_v23  ;;  %v3393_v41 = vcombine.low %v2372_v13, %v2376_v12  ;;  %v3394_v46 = vcombine.low %v2380_v18, %v2384_v38 }
 0x213   : > { %5895 = vpow2.f32 %v5484_v52  ;;  %v2123_v4 = vadd.f32 %v7405_v36, %v2047_v48  ;;  %v3395_v10 = vcombine.low %v2388_v9, %v2392_v24  ;;  %v2436_v53 = vrot.slane %v7451_v2, %v7416_v51 }
 0x214   : > { %5897 = vrcp.f32 %v2247_v39  ;;  %v5886_v40 = vpop.eup %5885  ;;  %v3396_v32 = vcombine.low %v2396_v11, %v2400_v42  ;;  %v3403_v17 = vrot.slane %v3393_v41, %v7441_v1  ;;  %v3410_v21 = vrot.slane %v3394_v46, %v7441_v1 }
 0x215   : > { %v2065_v55 = vpop.xlane.xlu1 %2064  ;;  %v5487_v20 = vmul.f32 -1.442695, %v2123_v4  ;;  %v2246_v62 = vadd.f32 1.0, %v5886_v40  ;;  %v3417_v25 = vrot.slane %v3395_v10, %v7441_v1  ;;  %v7461_v14 = vpop.eup %5887  ;;  %v2440_v8 = vrot.slane %v7451_v2, %v7419_v43 }
 0x216   : > { %v2129_v45 = vadd.f32 %v7405_v36, %v2065_v55  ;;  %v2044_v59 = vpop.xlane.xlu0 %2043  ;;  %v3424_v27 = vrot.slane %v3396_v32, %v7441_v1  ;;  %v3425_v0 = vcombine.low %v3403_v17, %v3410_v21  ;;  %v2444_v58 = vrot.slane %v7451_v2, %v7422_v16 }
 0x217   : > { %5899 = vpow2.f32 %v5487_v20  ;;  %v2122_v61 = vadd.f32 %v7405_v36, %v2044_v59  ;;  %v2448_v44 = vrot.slane %v7451_v2, %v7425_v5  ;;  %v2452_v3 = vrot.slane %v7451_v2, %v7428_v15 }
 0x218   : > { %v5493_v30 = vmul.f32 -1.442695, %v2129_v45  ;;  %5901 = vrcp.f32 %v2246_v62  ;;  %v3426_v60 = vcombine.low %v3417_v25, %v3424_v27  ;;  %v3433_v54 = vrot.slane %v3425_v0, %v7441_v1 }
 0x219   : > { %v5890_v28 = vpop.eup %5889  ;;  %v5486_v6 = vmul.f32 -1.442695, %v2122_v61  ;;  %v2456_v50 = vrot.slane %v7451_v2, %v7432_v7  ;;  %v2460_v29 = vrot.slane %v7451_v2, %v7435_v37  ;;  %v2464_v12 = vrot.slane %v7451_v2, %v7438_v23 }
 0x21a   : > { %v2071_v49 = vpop.xlane.xlu1 %2070  ;;  %5903 = vpow2.f32 %v5493_v30  ;;  %v7469_v34 = vpop.eup %5891  ;;  %v2249_v33 = vadd.f32 1.0, %v5890_v28  ;;  %v3440_v63 = vrot.slane %v3426_v60, %v7441_v1  ;;  %v3491_v9 = vcombine.low %v2436_v53, %v2440_v8 }
 0x21b   : > { %v2131_v47 = vadd.f32 %v7405_v36, %v2071_v49  ;;  %v2053_v31 = vpop.xlane.xlu0 %2052  ;;  %5905 = vpow2.f32 %v5486_v6  ;;  %v7477_v22 = vpop.eup %5893  ;;  %v3492_v4 = vcombine.low %v2444_v58, %v2448_v44  ;;  %v3493_v55 = vcombine.low %v2452_v3, %v2456_v50 }
 0x21c   : > { %v2125_v56 = vadd.f32 %v7405_v36, %v2053_v31  ;;  %5907 = vrcp.f32 %v2249_v33  ;;  %v3441_v38 = vcombine.low %v3433_v54, %v3440_v63  ;;  %v3494_v41 = vcombine.low %v2460_v29, %v2464_v12 }
 0x21d   : > { %v5495_v57 = vmul.f32 -1.442695, %v2131_v47  ;;  %v5896_v26 = vpop.eup %5895  ;;  %v3501_v46 = vrot.slane %v3491_v9, %v7441_v1  ;;  %v3508_v2 = vrot.slane %v3492_v4, %v7441_v1  ;;  %v3515_v10 = vrot.slane %v3493_v55, %v7441_v1 }
 0x21e   : > { %v2077_v35 = vpop.xlane.xlu1 %2076  ;;  %v5489_v52 = vmul.f32 -1.442695, %v2125_v56  ;;  %v7487_v18 = vpop.eup %5897  ;;  %v2248_v39 = vadd.f32 1.0, %v5896_v26  ;;  %4962 = vperm.xlu0 %5867, %v3441_v38   ;;  %v3522_v32 = vrot.slane %v3494_v41, %v7441_v1  ;;  %v2404_v21 = vrot.slane %v7461_v14, %v7416_v51 }
 0x21f   : > { %5909 = vpow2.f32 %v5495_v57  ;;  %v2133_v13 = vadd.f32 %v7405_v36, %v2077_v35  ;;  %v2050_v48 = vpop.xlane.xlu0 %2049  ;;  %v3523_v17 = vcombine.low %v3501_v46, %v3508_v2  ;;  %v2408_v49 = vrot.slane %v7461_v14, %v7419_v43 }
 0x220   : > { %5911 = vpow2.f32 %v5489_v52  ;;  %v2124_v11 = vadd.f32 %v7405_v36, %v2050_v48  ;;  %v3524_v0 = vcombine.low %v3515_v10, %v3522_v32  ;;  %v2412_v47 = vrot.slane %v7461_v14, %v7422_v16 }
 0x221   : > { %v5497_v24 = vmul.f32 -1.442695, %v2133_v13  ;;  %5913 = vrcp.f32 %v2248_v39  ;;  %v5900_v40 = vpop.eup %5899  ;;  %v3531_v8 = vrot.slane %v3523_v17, %v7441_v1  ;;  %v2416_v58 = vrot.slane %v7461_v14, %v7425_v5 }
 0x222   : > { %v5488_v20 = vmul.f32 -1.442695, %v2124_v11  ;;  %v7494_v53 = vpop.eup %5901  ;;  %v2251_v62 = vadd.f32 1.0, %v5900_v40  ;;  %v3538_v60 = vrot.slane %v3524_v0, %v7441_v1  ;;  %v2420_v57 = vrot.slane %v7461_v14, %v7428_v15 }
 0x223   : > { %5915 = vpow2.f32 %v5497_v24  ;;  %v2424_v63 = vrot.slane %v7461_v14, %v7432_v7  ;;  %v2428_v26 = vrot.slane %v7461_v14, %v7435_v37  ;;  %v2432_v39 = vrot.slane %v7461_v14, %v7438_v23 }
 0x224   : > { %v2083_v42 = vpop.xlane.xlu1 %2082  ;;  %v5904_v30 = vpop.eup %5903  ;;  %5917 = vpow2.f32 %v5488_v20  ;;  %v3539_v29 = vcombine.low %v3531_v8, %v3538_v60  ;;  %v3442_v48 = vcombine.low %v2404_v21, %v2408_v49  ;;  %v3443_v4 = vcombine.low %v2412_v47, %v2416_v58 }
 0x225   : > { %v2135_v45 = vadd.f32 %v7405_v36, %v2083_v42  ;;  %5919 = vrcp.f32 %v2251_v62  ;;  %v2257_v27 = vadd.f32 1.0, %v5904_v30  ;;  %v5906_v28 = vpop.eup %5905  ;;  %v3444_v24 = vcombine.low %v2420_v57, %v2424_v63 }
 0x226   : > { %v2068_v59 = vpop.xlane.xlu0 %2067  ;;  %v7507_v33 = vpop.eup %5907  ;;  %v2250_v31 = vadd.f32 1.0, %v5906_v28  ;;  %4968 = vperm.xlu1 %5868, %v3539_v29   ;;  %v3445_v41 = vcombine.low %v2428_v26, %v2432_v39  ;;  %v3452_v46 = vrot.slane %v3442_v48, %v7441_v1  ;;  %v3459_v14 = vrot.slane %v3443_v4, %v7441_v1 }
 0x227   : > { %v5499_v61 = vmul.f32 -1.442695, %v2135_v45  ;;  %v2130_v25 = vadd.f32 %v7405_v36, %v2068_v59  ;;  %v3466_v20 = vrot.slane %v3444_v24, %v7441_v1  ;;  %v2500_v30 = vrot.slane %v7469_v34, %v7416_v51 }
 0x228   : > { %v3473_v10 = vrot.slane %v3445_v41, %v7441_v1  ;;  %v3474_v21 = vcombine.low %v3452_v46, %v3459_v14  ;;  %v2516_v60 = vrot.slane %v7469_v34, %v7428_v15 }
 0x229   : > { %5921 = vpow2.f32 %v5499_v61  ;;  %v5494_v6 = vmul.f32 -1.442695, %v2130_v25  ;;  %v5910_v56 = vpop.eup %5909 }
 0x22a   : > { %5923 = vrcp.f32 %v2257_v27  ;;  %v2080_v54 = vpop.xlane.xlu1 %2079  ;;  %v2074_v44 = vpop.xlane.xlu0 %2073  ;;  %v2259_v50 = vadd.f32 1.0, %v5910_v56  ;;  %v3475_v25 = vcombine.low %v3466_v20, %v3473_v10  ;;  %v2504_v27 = vrot.slane %v7469_v34, %v7419_v43 }
 0x22b   : > { %5925 = vpow2.f32 %v5494_v6  ;;  %v2134_v3 = vadd.f32 %v7405_v36, %v2080_v54  ;;  %v2132_v35 = vadd.f32 %v7405_v36, %v2074_v44  ;;  %v5912_v52 = vpop.eup %5911  ;;  %v3482_v28 = vrot.slane %v3474_v21, %v7441_v1 }
 0x22c   : > { %5927 = vrcp.f32 %v2250_v31  ;;  %v7520_v38 = vpop.eup %5913  ;;  %v2253_v9 = vadd.f32 1.0, %v5912_v52  ;;  %v2508_v6 = vrot.slane %v7469_v34, %v7422_v16  ;;  %v3489_v58 = vrot.slane %v3475_v25, %v7441_v1 }
 0x22d   : > { %v5498_v13 = vmul.f32 -1.442695, %v2134_v3  ;;  %v5496_v12 = vmul.f32 -1.442695, %v2132_v35  ;;  %5929 = vrcp.f32 %v2259_v50  ;;  %v5916_v42 = vpop.eup %5915  ;;  %v2512_v31 = vrot.slane %v7469_v34, %v7425_v5 }
 0x22e   : > { %v2089_v11 = vpop.xlane.xlu1 %2088  ;;  %v2056_v55 = vpop.xlane.xlu0 %2055  ;;  %v2261_v40 = vadd.f32 1.0, %v5916_v42  ;;  %v2520_v3 = vrot.slane %v7469_v34, %v7432_v7  ;;  %v2524_v35 = vrot.slane %v7469_v34, %v7435_v37  ;;  %v3490_v63 = vcombine.low %v3482_v28, %v3489_v58 }
 0x22f   : > { %5931 = vpow2.f32 %v5498_v13  ;;  %v2137_v2 = vadd.f32 %v7405_v36, %v2089_v11  ;;  %v5918_v45 = vpop.eup %5917  ;;  %v2126_v59 = vadd.f32 %v7405_v36, %v2056_v55  ;;  %v2528_v50 = vrot.slane %v7469_v34, %v7438_v23 }
 0x230   : > { %5933 = vrcp.f32 %v2253_v9  ;;  %v7528_v32 = vpop.eup %5919  ;;  %v2252_v17 = vadd.f32 1.0, %v5918_v45  ;;  %v3589_v29 = vcombine.low %v2500_v30, %v2504_v27  ;;  %v3590_v26 = vcombine.low %v2508_v6, %v2512_v31  ;;  %4965 = vperm.xlu1 %5868, %v3490_v63  }
 0x231   : > { %5935 = vpow2.f32 %v5496_v12  ;;  %v5501_v62 = vmul.f32 -1.442695, %v2137_v2  ;;  %v5490_v49 = vmul.f32 -1.442695, %v2126_v59  ;;  %v3591_v13 = vcombine.low %v2516_v60, %v2520_v3 }
 0x232   : > { %5937 = vrcp.f32 %v2261_v40  ;;  %v2086_v54 = vpop.xlane.xlu1 %2085  ;;  %v2059_v44 = vpop.xlane.xlu0 %2058  ;;  %v3592_v9 = vcombine.low %v2524_v35, %v2528_v50  ;;  %v3599_v4 = vrot.slane %v3589_v29, %v7441_v1  ;;  %v3606_v24 = vrot.slane %v3590_v26, %v7441_v1 }
 0x233   : > { %v5922_v61 = vpop.eup %5921  ;;  %5939 = vpow2.f32 %v5501_v62  ;;  %v2136_v12 = vadd.f32 %v7405_v36, %v2086_v54  ;;  %v2127_v39 = vadd.f32 %v7405_v36, %v2059_v44  ;;  %v2468_v34 = vrot.slane %v7477_v22, %v7416_v51 }
 0x234   : > { %v7534_v0 = vpop.eup %5923  ;;  %5941 = vrcp.f32 %v2252_v17  ;;  %v2263_v8 = vadd.f32 1.0, %v5922_v61  ;;  %v3613_v42 = vrot.slane %v3591_v13, %v7441_v1  ;;  %v3620_v40 = vrot.slane %v3592_v9, %v7441_v1 }
 0x235   : > { %v5926_v47 = vpop.eup %5925  ;;  %5943 = vpow2.f32 %v5490_v49  ;;  %v5500_v41 = vmul.f32 -1.442695, %v2136_v12  ;;  %v5491_v46 = vmul.f32 -1.442695, %v2127_v39  ;;  %v3621_v14 = vcombine.low %v3599_v4, %v3606_v24 }
 0x236   : > { %v7544_v57 = vpop.eup %5927  ;;  %5945 = vrcp.f32 %v2263_v8  ;;  %v2258_v56 = vadd.f32 1.0, %v5926_v47  ;;  %v2472_v20 = vrot.slane %v7477_v22, %v7419_v43  ;;  %v2476_v45 = vrot.slane %v7477_v22, %v7422_v16  ;;  %v2095_v6 = vpop.xlane.xlu1 %2094 }
 0x237   : > { %v7552_v52 = vpop.eup %5929  ;;  %v2480_v59 = vrot.slane %v7477_v22, %v7425_v5  ;;  %v2484_v17 = vrot.slane %v7477_v22, %v7428_v15  ;;  %v3622_v30 = vcombine.low %v3613_v42, %v3620_v40  ;;  %v3629_v61 = vrot.slane %v3621_v14, %v7441_v1  ;;  %v2062_v54 = vpop.xlane.xlu0 %2061 }
 0x238   : > { %5947 = vrcp.f32 %v2258_v56  ;;  %v2488_v25 = vrot.slane %v7477_v22, %v7432_v7  ;;  %v2492_v8 = vrot.slane %v7477_v22, %v7435_v37  ;;  %v2496_v28 = vrot.slane %v7477_v22, %v7438_v23 }
 0x239   : > { %v5932_v48 = vpop.eup %5931  ;;  %v3636_v58 = vrot.slane %v3622_v30, %v7441_v1  ;;  %v3540_v31 = vcombine.low %v2468_v34, %v2472_v20  ;;  %v3541_v60 = vcombine.low %v2476_v45, %v2480_v59  ;;  %v2139_v22 = vadd.f32 %v7405_v36, %v2095_v6 }
 0x23a   : > { %v7560_v11 = vpop.eup %5933  ;;  %v2262_v55 = vadd.f32 1.0, %v5932_v48  ;;  %v3542_v3 = vcombine.low %v2484_v17, %v2488_v25  ;;  %v3543_v35 = vcombine.low %v2492_v8, %v2496_v28  ;;  %v2128_v39 = vadd.f32 %v7405_v36, %v2062_v54 }
 0x23b   : > { %v5936_v2 = vpop.eup %5935  ;;  %v3637_v63 = vcombine.low %v3629_v61, %v3636_v58  ;;  %v3550_v50 = vrot.slane %v3540_v31, %v7441_v1  ;;  %v3557_v29 = vrot.slane %v3541_v60, %v7441_v1  ;;  %v5503_v9 = vmul.f32 -1.442695, %v2139_v22 }
 0x23c   : > { %v7568_v10 = vpop.eup %5937  ;;  %5949 = vrcp.f32 %v2262_v55  ;;  %v2260_v62 = vadd.f32 1.0, %v5936_v2  ;;  %v3564_v13 = vrot.slane %v3542_v3, %v7441_v1  ;;  %v3571_v12 = vrot.slane %v3543_v35, %v7441_v1 }
 0x23d   : > { %v5940_v21 = vpop.eup %5939  ;;  %5951 = vpow2.f32 %v5500_v41  ;;  %4974 = vperm.xlu1 %5868, %v3637_v63   ;;  %v3572_v48 = vcombine.low %v3550_v50, %v3557_v29  ;;  %v2564_v4 = vrot.slane %v7487_v18, %v7416_v51  ;;  %v2568_v24 = vrot.slane %v7487_v18, %v7419_v43 }
 0x23e   : > { %v7577_v49 = vpop.eup %5941  ;;  %5953 = vrcp.f32 %v2260_v62  ;;  %v2265_v27 = vadd.f32 1.0, %v5940_v21  ;;  %v3573_v34 = vcombine.low %v3564_v13, %v3571_v12  ;;  %v5492_v55 = vmul.f32 -1.442695, %v2128_v39 }
 0x23f   : > { %v5944_v47 = vpop.eup %5943  ;;  %5955 = vpow2.f32 %v5491_v46  ;;  %v2572_v42 = vrot.slane %v7487_v18, %v7422_v16  ;;  %v2576_v41 = vrot.slane %v7487_v18, %v7425_v5  ;;  %v2092_v46 = vpop.xlane.xlu1 %2091  ;;  %v3580_v2 = vrot.slane %v3572_v48, %v7441_v1 }
 0x240   : > { %v7584_v44 = vpop.eup %5945  ;;  %5957 = vrcp.f32 %v2265_v27  ;;  %v2254_v56 = vadd.f32 1.0, %v5944_v47  ;;  %v2580_v40 = vrot.slane %v7487_v18, %v7428_v15  ;;  %v2584_v14 = vrot.slane %v7487_v18, %v7432_v7 }
 0x241   : > { %v3587_v45 = vrot.slane %v3573_v34, %v7441_v1  ;;  %v2588_v62 = vrot.slane %v7487_v18, %v7435_v37  ;;  %v2592_v59 = vrot.slane %v7487_v18, %v7438_v23  ;;  %v3687_v21 = vcombine.low %v2564_v4, %v2568_v24 }
 0x242   : > { %v7589_v26 = vpop.eup %5947  ;;  %5959 = vrcp.f32 %v2254_v56  ;;  %v3688_v30 = vcombine.low %v2572_v42, %v2576_v41  ;;  %v3689_v61 = vcombine.low %v2580_v40, %v2584_v14  ;;  %v2138_v25 = vadd.f32 %v7405_v36, %v2092_v46 }
 0x243   : > { %5961 = vpow2.f32 %v5503_v9  ;;  %v3588_v28 = vcombine.low %v3580_v2, %v3587_v45  ;;  %v3690_v6 = vcombine.low %v2588_v62, %v2592_v59  ;;  %v2532_v47 = vrot.slane %v7494_v53, %v7416_v51  ;;  %v2101_v13 = vpop.xlane.xlu1 %2100 }
 0x244   : > { %5963 = vpow2.f32 %v5492_v55  ;;  %v3697_v31 = vrot.slane %v3687_v21, %v7441_v1  ;;  %v3704_v60 = vrot.slane %v3688_v30, %v7441_v1  ;;  %v3711_v18 = vrot.slane %v3689_v61, %v7441_v1 }
 0x245   : > { %v5502_v54 = vmul.f32 -1.442695, %v2138_v25  ;;  %4971 = vperm.xlu1 %5868, %v3588_v28   ;;  %v3718_v35 = vrot.slane %v3690_v6, %v7441_v1  ;;  %v2536_v63 = vrot.slane %v7494_v53, %v7419_v43  ;;  %v2540_v29 = vrot.slane %v7494_v53, %v7422_v16 }
 0x246   : > { %v7607_v20 = vpop.eup %5949  ;;  %v3719_v50 = vcombine.low %v3697_v31, %v3704_v60  ;;  %v2544_v22 = vrot.slane %v7494_v53, %v7425_v5  ;;  %v2548_v48 = vrot.slane %v7494_v53, %v7428_v15  ;;  %v2552_v9 = vrot.slane %v7494_v53, %v7432_v7 }
 0x247   : > { %v5952_v17 = vpop.eup %5951  ;;  %v3720_v39 = vcombine.low %v3711_v18, %v3718_v35  ;;  %v2556_v24 = vrot.slane %v7494_v53, %v7435_v37  ;;  %v2560_v34 = vrot.slane %v7494_v53, %v7438_v23  ;;  %v3638_v55 = vcombine.low %v2532_v47, %v2536_v63  ;;  %v2098_v60 = vpop.xlane.xlu1 %2097 }
 0x248   : > { %v7615_v27 = vpop.eup %5953  ;;  %v2264_v8 = vadd.f32 1.0, %v5952_v17  ;;  %v3727_v4 = vrot.slane %v3719_v50, %v7441_v1  ;;  %v3639_v41 = vcombine.low %v2540_v29, %v2544_v22  ;;  %v3640_v46 = vcombine.low %v2548_v48, %v2552_v9 }
 0x249   : > { %v5956_v58 = vpop.eup %5955  ;;  %v3734_v42 = vrot.slane %v3720_v39, %v7441_v1  ;;  %v2141_v2 = vadd.f32 %v7405_v36, %v2101_v13  ;;  %v3641_v14 = vcombine.low %v2556_v24, %v2560_v34  ;;  %v3648_v45 = vrot.slane %v3638_v55, %v7441_v1 }
 0x24a   : > { %v7622_v56 = vpop.eup %5957  ;;  %5965 = vrcp.f32 %v2264_v8  ;;  %v2255_v3 = vadd.f32 1.0, %v5956_v58  ;;  %v2628_v62 = vrot.slane %v7507_v33, %v7416_v51  ;;  %v2632_v59 = vrot.slane %v7507_v33, %v7419_v43 }
 0x24b   : > { %5967 = vpow2.f32 %v5502_v54  ;;  %v3735_v53 = vcombine.low %v3727_v4, %v3734_v42  ;;  %v3655_v30 = vrot.slane %v3639_v41, %v7441_v1  ;;  %v3662_v61 = vrot.slane %v3640_v46, %v7441_v1 }
 0x24c   : > { %v7631_v12 = vpop.eup %5959  ;;  %5969 = vrcp.f32 %v2255_v3  ;;  %v3669_v8 = vrot.slane %v3641_v14, %v7441_v1  ;;  %v5505_v28 = vmul.f32 -1.442695, %v2141_v2  ;;  %v2636_v6 = vrot.slane %v7507_v33, %v7422_v16 }
 0x24d   : > { %v5962_v40 = vpop.eup %5961  ;;  %4980 = vperm.xlu1 %5868, %v3735_v53   ;;  %v3670_v47 = vcombine.low %v3648_v45, %v3655_v30  ;;  %v2640_v58 = vrot.slane %v7507_v33, %v7425_v5  ;;  %v2644_v31 = vrot.slane %v7507_v33, %v7428_v15  ;;  %v2648_v54 = vrot.slane %v7507_v33, %v7432_v7 }
 0x24e   : > { %v5964_v17 = vpop.eup %5963  ;;  %v2267_v21 = vadd.f32 1.0, %v5962_v40  ;;  %v3671_v18 = vcombine.low %v3662_v61, %v3669_v8  ;;  %v2652_v3 = vrot.slane %v7507_v33, %v7435_v37  ;;  %v2656_v50 = vrot.slane %v7507_v33, %v7438_v23 }
 0x24f   : > { %v2256_v25 = vadd.f32 1.0, %v5964_v17  ;;  %v3678_v63 = vrot.slane %v3670_v47, %v7441_v1  ;;  %v3785_v29 = vcombine.low %v2628_v62, %v2632_v59  ;;  %v3786_v39 = vcombine.low %v2636_v6, %v2640_v58 }
 0x250   : > { %5971 = vrcp.f32 %v2267_v21  ;;  %v3685_v13 = vrot.slane %v3671_v18, %v7441_v1  ;;  %v3787_v48 = vcombine.low %v2644_v31, %v2648_v54  ;;  %v2140_v9 = vadd.f32 %v7405_v36, %v2098_v60 }
 0x251   : > { %5973 = vrcp.f32 %v2256_v25  ;;  %v3788_v34 = vcombine.low %v2652_v3, %v2656_v50  ;;  %v3795_v55 = vrot.slane %v3785_v29, %v7441_v1  ;;  %v2596_v42 = vrot.slane %v7520_v38, %v7416_v51 }
 0x252   : > { %5975 = vpow2.f32 %v5505_v28  ;;  %v3686_v41 = vcombine.low %v3678_v63, %v3685_v13  ;;  %v3802_v33 = vrot.slane %v3786_v39, %v7441_v1  ;;  %v3809_v46 = vrot.slane %v3787_v48, %v7441_v1 }
 0x253   : > { %v5504_v2 = vmul.f32 -1.442695, %v2140_v9  ;;  %v3816_v40 = vrot.slane %v3788_v34, %v7441_v1  ;;  %v2600_v14 = vrot.slane %v7520_v38, %v7419_v43  ;;  %v2604_v45 = vrot.slane %v7520_v38, %v7422_v16  ;;  %v2107_v9 = vpop.xlane.xlu1 %2106 }
 0x254   : > { %v7662_v35 = vpop.eup %5965  ;;  %4977 = vperm.xlu1 %5868, %v3686_v41   ;;  %v3817_v62 = vcombine.low %v3795_v55, %v3802_v33  ;;  %v2608_v59 = vrot.slane %v7520_v38, %v7425_v5  ;;  %v2612_v17 = vrot.slane %v7520_v38, %v7428_v15  ;;  %v2616_v53 = vrot.slane %v7520_v38, %v7432_v7 }
 0x255   : > { %v5968_v22 = vpop.eup %5967  ;;  %v3818_v21 = vcombine.low %v3809_v46, %v3816_v40  ;;  %v2620_v30 = vrot.slane %v7520_v38, %v7435_v37  ;;  %v2624_v61 = vrot.slane %v7520_v38, %v7438_v23  ;;  %v3736_v8 = vcombine.low %v2596_v42, %v2600_v14 }
 0x256   : > { %v7669_v4 = vpop.eup %5969  ;;  %v2266_v24 = vadd.f32 1.0, %v5968_v22  ;;  %v3825_v25 = vrot.slane %v3817_v62, %v7441_v1  ;;  %v3737_v28 = vcombine.low %v2604_v45, %v2608_v59  ;;  %v2660_v6 = vrot.slane %v7544_v57, %v7416_v51 }
 0x257   : > { %v3832_v58 = vrot.slane %v3818_v21, %v7441_v1  ;;  %v3738_v31 = vcombine.low %v2612_v17, %v2616_v53  ;;  %v3739_v60 = vcombine.low %v2620_v30, %v2624_v61  ;;  %v2664_v18 = vrot.slane %v7544_v57, %v7419_v43 }
 0x258   : > { %5977 = vrcp.f32 %v2266_v24  ;;  %v3746_v38 = vrot.slane %v3736_v8, %v7441_v1  ;;  %v3753_v3 = vrot.slane %v3737_v28, %v7441_v1  ;;  %v2668_v63 = vrot.slane %v7544_v57, %v7422_v16 }
 0x259   : > { %5979 = vpow2.f32 %v5504_v2  ;;  %v2672_v50 = vrot.slane %v7544_v57, %v7425_v5  ;;  %v3833_v22 = vcombine.low %v3825_v25, %v3832_v58  ;;  %v3760_v13 = vrot.slane %v3738_v31, %v7441_v1 }
 0x25a   : > { %v7694_v47 = vpop.eup %5971  ;;  %v3767_v39 = vrot.slane %v3739_v60, %v7441_v1  ;;  %v2676_v48 = vrot.slane %v7544_v57, %v7428_v15  ;;  %v3768_v34 = vcombine.low %v3746_v38, %v3753_v3  ;;  %v2680_v55 = vrot.slane %v7544_v57, %v7432_v7  ;;  %v2104_v3 = vpop.xlane.xlu1 %2103 }
 0x25b   : > { %v7699_v54 = vpop.eup %5973  ;;  %v2684_v42 = vrot.slane %v7544_v57, %v7435_v37  ;;  %4986 = vperm.xlu1 %5868, %v3833_v22   ;;  %v2688_v33 = vrot.slane %v7544_v57, %v7438_v23  ;;  %v3834_v46 = vcombine.low %v2660_v6, %v2664_v18  ;;  %v3835_v2 = vcombine.low %v2668_v63, %v2672_v50 }
 0x25c   : > { %v5976_v29 = vpop.eup %5975  ;;  %v3769_v41 = vcombine.low %v3760_v13, %v3767_v39  ;;  %v3776_v40 = vrot.slane %v3768_v34, %v7441_v1  ;;  %v3836_v14 = vcombine.low %v2676_v48, %v2680_v55  ;;  %v2143_v45 = vadd.f32 %v7405_v36, %v2107_v9 }
 0x25d   : > { %v2269_v24 = vadd.f32 1.0, %v5976_v29  ;;  %v3837_v17 = vcombine.low %v2684_v42, %v2688_v33  ;;  %v3844_v21 = vrot.slane %v3834_v46, %v7441_v1  ;;  %v3851_v53 = vrot.slane %v3835_v2, %v7441_v1 }
 0x25e   : > { %v3783_v59 = vrot.slane %v3769_v41, %v7441_v1  ;;  %v3858_v57 = vrot.slane %v3836_v14, %v7441_v1  ;;  %v5507_v61 = vmul.f32 -1.442695, %v2143_v45  ;;  %v2692_v25 = vrot.slane %v7528_v32, %v7416_v51 }
 0x25f   : > { %5981 = vrcp.f32 %v2269_v24  ;;  %v2696_v8 = vrot.slane %v7528_v32, %v7419_v43  ;;  %v3865_v58 = vrot.slane %v3837_v17, %v7441_v1  ;;  %v3866_v31 = vcombine.low %v3844_v21, %v3851_v53 }
 0x260   : > { %v3784_v6 = vcombine.low %v3776_v40, %v3783_v59  ;;  %5983 = vpow2.f32 %v5507_v61  ;;  %v2700_v60 = vrot.slane %v7528_v32, %v7422_v16  ;;  %v2704_v18 = vrot.slane %v7528_v32, %v7425_v5 }
 0x261   : > { %v2708_v38 = vrot.slane %v7528_v32, %v7428_v15  ;;  %v3867_v63 = vcombine.low %v3858_v57, %v3865_v58  ;;  %v3874_v50 = vrot.slane %v3866_v31, %v7441_v1  ;;  %v2712_v29 = vrot.slane %v7528_v32, %v7432_v7 }
 0x262   : > { %v7719_v62 = vpop.eup %5977  ;;  %4983 = vperm.xlu1 %5868, %v3784_v6   ;;  %v2716_v22 = vrot.slane %v7528_v32, %v7435_v37  ;;  %v2720_v13 = vrot.slane %v7528_v32, %v7438_v23  ;;  %v3883_v39 = vcombine.low %v2692_v25, %v2696_v8  ;;  %v3884_v48 = vcombine.low %v2700_v60, %v2704_v18 }
 0x263   : > { %v5980_v30 = vpop.eup %5979  ;;  %v3881_v9 = vrot.slane %v3867_v63, %v7441_v1  ;;  %v3885_v24 = vcombine.low %v2708_v38, %v2712_v29  ;;  %v2142_v34 = vadd.f32 %v7405_v36, %v2104_v3  ;;  %v2756_v55 = vrot.slane %v7560_v11, %v7416_v51 }
 0x264   : > { %v2268_v28 = vadd.f32 1.0, %v5980_v30  ;;  %v3886_v42 = vcombine.low %v2716_v22, %v2720_v13  ;;  %v3893_v41 = vrot.slane %v3883_v39, %v7441_v1  ;;  %v3900_v33 = vrot.slane %v3884_v48, %v7441_v1  ;;  %v2110_v30 = vpop.xlane.xlu1 %2109 }
 0x265   : > { %v2760_v46 = vrot.slane %v7560_v11, %v7419_v43  ;;  %v3882_v2 = vcombine.low %v3874_v50, %v3881_v9  ;;  %v3907_v32 = vrot.slane %v3885_v24, %v7441_v1  ;;  %v5506_v40 = vmul.f32 -1.442695, %v2142_v34 }
 0x266   : > { %5985 = vrcp.f32 %v2268_v28  ;;  %v2764_v14 = vrot.slane %v7560_v11, %v7422_v16  ;;  %v3914_v59 = vrot.slane %v3886_v42, %v7441_v1  ;;  %v3915_v17 = vcombine.low %v3893_v41, %v3900_v33 }
 0x267   : > { %v2768_v21 = vrot.slane %v7560_v11, %v7425_v5  ;;  %v2772_v53 = vrot.slane %v7560_v11, %v7428_v15  ;;  %4989 = vperm.xlu0 %5867, %v3882_v2   ;;  %5987 = vpow2.f32 %v5506_v40  ;;  %v2776_v57 = vrot.slane %v7560_v11, %v7432_v7 }
 0x268   : > { %v2780_v61 = vrot.slane %v7560_v11, %v7435_v37  ;;  %v2784_v25 = vrot.slane %v7560_v11, %v7438_v23  ;;  %v3916_v8 = vcombine.low %v3907_v32, %v3914_v59  ;;  %v3923_v28 = vrot.slane %v3915_v17, %v7441_v1 }
 0x269   : > { %v7754_v45 = vpop.eup %5981  ;;  %v3981_v6 = vcombine.low %v2756_v55, %v2760_v46  ;;  %v3982_v58 = vcombine.low %v2764_v14, %v2768_v21  ;;  %v3983_v31 = vcombine.low %v2772_v53, %v2776_v57  ;;  %v2144_v18 = vadd.f32 %v7405_v36, %v2110_v30 }
 0x26a   : > { %v3984_v60 = vcombine.low %v2780_v61, %v2784_v25  ;;  %v2724_v38 = vrot.slane %v7577_v49, %v7416_v51  ;;  %v5984_v3 = vpop.eup %5983  ;;  %v3930_v63 = vrot.slane %v3916_v8, %v7441_v1  ;;  %v2728_v11 = vrot.slane %v7577_v49, %v7419_v43 }
 0x26b   : > { %v3991_v50 = vrot.slane %v3981_v6, %v7441_v1  ;;  %v3998_v29 = vrot.slane %v3982_v58, %v7441_v1  ;;  %v2271_v13 = vadd.f32 1.0, %v5984_v3  ;;  %v4005_v39 = vrot.slane %v3983_v31, %v7441_v1 }
 0x26c   : > { %v4012_v36 = vrot.slane %v3984_v60, %v7441_v1  ;;  %v5508_v48 = vmul.f32 -1.442695, %v2144_v18  ;;  %v3931_v9 = vcombine.low %v3923_v28, %v3930_v63  ;;  %v2732_v34 = vrot.slane %v7577_v49, %v7422_v16 }
 0x26d   : > { %v4013_v24 = vcombine.low %v3991_v50, %v3998_v29  ;;  %v2736_v55 = vrot.slane %v7577_v49, %v7425_v5  ;;  %5989 = vrcp.f32 %v2271_v13  ;;  %v2740_v41 = vrot.slane %v7577_v49, %v7428_v15 }
 0x26e   : > { %v4014_v42 = vcombine.low %v4005_v39, %v4012_v36  ;;  %v2744_v33 = vrot.slane %v7577_v49, %v7432_v7  ;;  %4992 = vperm.xlu1 %5868, %v3931_v9   ;;  %5991 = vpow2.f32 %v5508_v48  ;;  %v2748_v2 = vrot.slane %v7577_v49, %v7435_v37 }
 0x26f   : > { %v4021_v46 = vrot.slane %v4013_v24, %v7441_v1  ;;  %v2752_v32 = vrot.slane %v7577_v49, %v7438_v23  ;;  %v3932_v14 = vcombine.low %v2724_v38, %v2728_v11  ;;  %v3933_v59 = vcombine.low %v2732_v34, %v2736_v55 }
 0x270   : > { %v7776_v22 = vpop.eup %5985  ;;  %v4028_v40 = vrot.slane %v4014_v42, %v7441_v1  ;;  %v3934_v17 = vcombine.low %v2740_v41, %v2744_v33  ;;  %v2916_v53 = vrot.slane %v7589_v26, %v7416_v51  ;;  %v2920_v30 = vrot.slane %v7589_v26, %v7419_v43 }
 0x271   : > { %v3935_v21 = vcombine.low %v2748_v2, %v2752_v32  ;;  %v2924_v57 = vrot.slane %v7589_v26, %v7422_v16  ;;  %v5988_v61 = vpop.eup %5987  ;;  %v3942_v8 = vrot.slane %v3932_v14, %v7441_v1  ;;  %v3949_v49 = vrot.slane %v3933_v59, %v7441_v1 }
 0x272   : > { %v4029_v25 = vcombine.low %v4021_v46, %v4028_v40  ;;  %v3956_v28 = vrot.slane %v3934_v17, %v7441_v1  ;;  %v2270_v6 = vadd.f32 1.0, %v5988_v61  ;;  %v2928_v31 = vrot.slane %v7589_v26, %v7425_v5 }
 0x273   : > { %v3963_v58 = vrot.slane %v3935_v21, %v7441_v1  ;;  %v2932_v60 = vrot.slane %v7589_v26, %v7428_v15  ;;  %v3964_v18 = vcombine.low %v3942_v8, %v3949_v49  ;;  %v2936_v38 = vrot.slane %v7589_v26, %v7432_v7 }
 0x274   : > { %4998 = vperm.xlu1 %5868, %v4029_v25   ;;  %v2940_v3 = vrot.slane %v7589_v26, %v7435_v37  ;;  %v2944_v63 = vrot.slane %v7589_v26, %v7438_v23  ;;  %5993 = vrcp.f32 %v2270_v6  ;;  %v4226_v29 = vcombine.low %v2916_v53, %v2920_v30 }
 0x275   : > { %v3965_v50 = vcombine.low %v3956_v28, %v3963_v58  ;;  %v4227_v11 = vcombine.low %v2924_v57, %v2928_v31  ;;  %v3972_v13 = vrot.slane %v3964_v18, %v7441_v1  ;;  %v4228_v39 = vcombine.low %v2932_v60, %v2936_v38 }
 0x276   : > { %v4229_v36 = vcombine.low %v2940_v3, %v2944_v63  ;;  %v2980_v48 = vrot.slane %v7615_v27, %v7416_v51  ;;  %v4236_v24 = vrot.slane %v4226_v29, %v7441_v1  ;;  %v2984_v26 = vrot.slane %v7615_v27, %v7419_v43 }
 0x277   : > { %v3979_v9 = vrot.slane %v3965_v50, %v7441_v1  ;;  %v4243_v34 = vrot.slane %v4227_v11, %v7441_v1  ;;  %v7822_v55 = vpop.eup %5989  ;;  %v4250_v42 = vrot.slane %v4228_v39, %v7441_v1  ;;  %v2988_v33 = vrot.slane %v7615_v27, %v7422_v16 }
 0x278   : > { %v4257_v41 = vrot.slane %v4229_v36, %v7441_v1  ;;  %v2992_v46 = vrot.slane %v7615_v27, %v7425_v5  ;;  %v5992_v2 = vpop.eup %5991  ;;  %v2996_v14 = vrot.slane %v7615_v27, %v7428_v15  ;;  %v3000_v59 = vrot.slane %v7615_v27, %v7432_v7 }
 0x279   : > { %v3980_v32 = vcombine.low %v3972_v13, %v3979_v9  ;;  %v4258_v40 = vcombine.low %v4236_v24, %v4243_v34  ;;  %v2272_v17 = vadd.f32 1.0, %v5992_v2  ;;  %v3004_v53 = vrot.slane %v7615_v27, %v7435_v37 }
 0x27a   : > { %v4259_v21 = vcombine.low %v4250_v42, %v4257_v41  ;;  %v3008_v30 = vrot.slane %v7615_v27, %v7438_v23  ;;  %v4324_v61 = vcombine.low %v2980_v48, %v2984_v26  ;;  %v4325_v25 = vcombine.low %v2988_v33, %v2992_v46 }
 0x27b   : > { %4995 = vperm.xlu1 %5868, %v3980_v32   ;;  %v4266_v57 = vrot.slane %v4258_v40, %v7441_v1  ;;  %v4326_v8 = vcombine.low %v2996_v14, %v3000_v59  ;;  %5995 = vrcp.f32 %v2272_v17  ;;  %v3044_v6 = vrot.slane %v7607_v20, %v7416_v51 }
 0x27c   : > { %v4273_v49 = vrot.slane %v4259_v21, %v7441_v1  ;;  %v4327_v28 = vcombine.low %v3004_v53, %v3008_v30  ;;  %v4334_v58 = vrot.slane %v4324_v61, %v7441_v1  ;;  %v4341_v31 = vrot.slane %v4325_v25, %v7441_v1 }
 0x27d   : > { %v4348_v60 = vrot.slane %v4326_v8, %v7441_v1  ;;  %v3048_v27 = vrot.slane %v7607_v20, %v7419_v43  ;;  %v3052_v3 = vrot.slane %v7607_v20, %v7422_v16  ;;  %v3056_v63 = vrot.slane %v7607_v20, %v7425_v5 }
 0x27e   : > { %v4274_v18 = vcombine.low %v4266_v57, %v4273_v49  ;;  %v4355_v38 = vrot.slane %v4327_v28, %v7441_v1  ;;  %v7852_v50 = vpop.eup %5993  ;;  %v4356_v29 = vcombine.low %v4334_v58, %v4341_v31  ;;  %v3060_v11 = vrot.slane %v7607_v20, %v7428_v15 }
 0x27f   : > { %v3064_v13 = vrot.slane %v7607_v20, %v7432_v7  ;;  %v3068_v39 = vrot.slane %v7607_v20, %v7435_v37  ;;  %v3072_v48 = vrot.slane %v7607_v20, %v7438_v23  ;;  %v4422_v9 = vcombine.low %v3044_v6, %v3048_v27 }
 0x280   : > { %5013 = vperm.xlu0 %5867, %v4274_v18   ;;  %v4357_v36 = vcombine.low %v4348_v60, %v4355_v38  ;;  %v4423_v24 = vcombine.low %v3052_v3, %v3056_v63  ;;  %v4364_v34 = vrot.slane %v4356_v29, %v7441_v1  ;;  %v2788_v42 = vrot.slane %v7631_v12, %v7416_v51 }
 0x281   : > { %v4424_v26 = vcombine.low %v3060_v11, %v3064_v13  ;;  %v2792_v41 = vrot.slane %v7631_v12, %v7419_v43  ;;  %v4425_v46 = vcombine.low %v3068_v39, %v3072_v48  ;;  %v4432_v2 = vrot.slane %v4422_v9, %v7441_v1 }
 0x282   : > { %v4371_v33 = vrot.slane %v4357_v36, %v7441_v1  ;;  %v4439_v32 = vrot.slane %v4423_v24, %v7441_v1  ;;  %v2796_v40 = vrot.slane %v7631_v12, %v7422_v16  ;;  %v2800_v14 = vrot.slane %v7631_v12, %v7425_v5 }
 0x283   : > { %v4446_v20 = vrot.slane %v4424_v26, %v7441_v1  ;;  %v2804_v59 = vrot.slane %v7631_v12, %v7428_v15  ;;  %v4453_v21 = vrot.slane %v4425_v46, %v7441_v1  ;;  %v2808_v30 = vrot.slane %v7631_v12, %v7432_v7 }
 0x284   : > { %v4372_v17 = vcombine.low %v4364_v34, %v4371_v33  ;;  %v4454_v53 = vcombine.low %v4432_v2, %v4439_v32  ;;  %v2812_v57 = vrot.slane %v7631_v12, %v7435_v37  ;;  %v2816_v61 = vrot.slane %v7631_v12, %v7438_v23 }
 0x285   : > { %v4030_v25 = vcombine.low %v2788_v42, %v2792_v41  ;;  %v4031_v8 = vcombine.low %v2796_v40, %v2800_v14  ;;  %v7884_v49 = vpop.eup %5995  ;;  %v4455_v28 = vcombine.low %v4446_v20, %v4453_v21  ;;  %v4032_v58 = vcombine.low %v2804_v59, %v2808_v30 }
 0x286   : > { %5019 = vperm.xlu0 %5867, %v4372_v17   ;;  %v4462_v6 = vrot.slane %v4454_v53, %v7441_v1  ;;  %v3108_v31 = vrot.slane %v7662_v35, %v7416_v51  ;;  %v4033_v60 = vcombine.low %v2812_v57, %v2816_v61  ;;  %v3112_v12 = vrot.slane %v7662_v35, %v7419_v43 }
 0x287   : > { %v4040_v27 = vrot.slane %v4030_v25, %v7441_v1  ;;  %v4047_v18 = vrot.slane %v4031_v8, %v7441_v1  ;;  %v4469_v38 = vrot.slane %v4455_v28, %v7441_v1  ;;  %v4054_v3 = vrot.slane %v4032_v58, %v7441_v1 }
 0x288   : > { %v3116_v63 = vrot.slane %v7662_v35, %v7422_v16  ;;  %v3120_v29 = vrot.slane %v7662_v35, %v7425_v5  ;;  %v4061_v11 = vrot.slane %v4033_v60, %v7441_v1  ;;  %v3124_v39 = vrot.slane %v7662_v35, %v7428_v15 }
 0x289   : > { %v4062_v13 = vcombine.low %v4040_v27, %v4047_v18  ;;  %v3128_v36 = vrot.slane %v7662_v35, %v7432_v7  ;;  %v4470_v48 = vcombine.low %v4462_v6, %v4469_v38  ;;  %v3132_v9 = vrot.slane %v7662_v35, %v7435_v37 }
 0x28a   : > { %v3136_v24 = vrot.slane %v7662_v35, %v7438_v23  ;;  %v4520_v34 = vcombine.low %v3108_v31, %v3112_v12  ;;  %v4063_v26 = vcombine.low %v4054_v3, %v4061_v11  ;;  %v4521_v41 = vcombine.low %v3116_v63, %v3120_v29 }
 0x28b   : > { %v4070_v42 = vrot.slane %v4062_v13, %v7441_v1  ;;  %v4522_v33 = vcombine.low %v3124_v39, %v3128_v36  ;;  %5025 = vperm.xlu0 %5867, %v4470_v48   ;;  %v2884_v32 = vrot.slane %v7534_v0, %v7416_v51  ;;  %v2888_v20 = vrot.slane %v7534_v0, %v7419_v43 }
 0x28c   : > { %v4523_v46 = vcombine.low %v3132_v9, %v3136_v24  ;;  %v4530_v2 = vrot.slane %v4520_v34, %v7441_v1  ;;  %v4077_v40 = vrot.slane %v4063_v26, %v7441_v1  ;;  %v4537_v35 = vrot.slane %v4521_v41, %v7441_v1 }
 0x28d   : > { %v4544_v14 = vrot.slane %v4522_v33, %v7441_v1  ;;  %v2892_v59 = vrot.slane %v7534_v0, %v7422_v16  ;;  %v2896_v21 = vrot.slane %v7534_v0, %v7425_v5  ;;  %v2900_v53 = vrot.slane %v7534_v0, %v7428_v15 }
 0x28e   : > { %v4551_v17 = vrot.slane %v4523_v46, %v7441_v1  ;;  %v2904_v30 = vrot.slane %v7534_v0, %v7432_v7  ;;  %v4078_v57 = vcombine.low %v4070_v42, %v4077_v40  ;;  %v4552_v61 = vcombine.low %v4530_v2, %v4537_v35 }
 0x28f   : > { %v2908_v25 = vrot.slane %v7534_v0, %v7435_v37  ;;  %v2912_v8 = vrot.slane %v7534_v0, %v7438_v23  ;;  %v4177_v6 = vcombine.low %v2884_v32, %v2888_v20  ;;  %v4178_v58 = vcombine.low %v2892_v59, %v2896_v21 }
 0x290   : > { %v4553_v28 = vcombine.low %v4544_v14, %v4551_v17  ;;  %v4179_v31 = vcombine.low %v2900_v53, %v2904_v30  ;;  %5001 = vperm.xlu1 %5868, %v4078_v57   ;;  %v4560_v60 = vrot.slane %v4552_v61, %v7441_v1  ;;  %v3204_v18 = vrot.slane %v7694_v47, %v7416_v51 }
 0x291   : > { %v4180_v27 = vcombine.low %v2908_v25, %v2912_v8  ;;  %v3208_v12 = vrot.slane %v7694_v47, %v7419_v43  ;;  %v4187_v3 = vrot.slane %v4177_v6, %v7441_v1  ;;  %v4194_v0 = vrot.slane %v4178_v58, %v7441_v1 }
 0x292   : > { %v4567_v38 = vrot.slane %v4553_v28, %v7441_v1  ;;  %v4201_v63 = vrot.slane %v4179_v31, %v7441_v1  ;;  %v3212_v11 = vrot.slane %v7694_v47, %v7422_v16  ;;  %v3216_v13 = vrot.slane %v7694_v47, %v7425_v5 }
 0x293   : > { %v4208_v29 = vrot.slane %v4180_v27, %v7441_v1  ;;  %v3220_v39 = vrot.slane %v7694_v47, %v7428_v15  ;;  %v4209_v48 = vcombine.low %v4187_v3, %v4194_v0  ;;  %v3224_v9 = vrot.slane %v7694_v47, %v7432_v7 }
 0x294   : > { %v4568_v36 = vcombine.low %v4560_v60, %v4567_v38  ;;  %v3228_v24 = vrot.slane %v7694_v47, %v7435_v37  ;;  %v3232_v26 = vrot.slane %v7694_v47, %v7438_v23  ;;  %v4667_v42 = vcombine.low %v3204_v18, %v3208_v12 }
 0x295   : > { %v4210_v34 = vcombine.low %v4201_v63, %v4208_v29  ;;  %v4668_v41 = vcombine.low %v3212_v11, %v3216_v13  ;;  %v4217_v33 = vrot.slane %v4209_v48, %v7441_v1  ;;  %v4669_v46 = vcombine.low %v3220_v39, %v3224_v9 }
 0x296   : > { %5031 = vperm.xlu0 %5867, %v4568_v36   ;;  %v2948_v2 = vrot.slane %v7552_v52, %v7416_v51  ;;  %v2952_v32 = vrot.slane %v7552_v52, %v7419_v43  ;;  %v4670_v40 = vcombine.low %v3228_v24, %v3232_v26  ;;  %v4677_v35 = vrot.slane %v4667_v42, %v7441_v1 }
 0x297   : > { %v4224_v20 = vrot.slane %v4210_v34, %v7441_v1  ;;  %v4684_v14 = vrot.slane %v4668_v41, %v7441_v1  ;;  %v4691_v47 = vrot.slane %v4669_v46, %v7441_v1  ;;  %v2956_v59 = vrot.slane %v7552_v52, %v7422_v16 }
 0x298   : > { %v2960_v17 = vrot.slane %v7552_v52, %v7425_v5  ;;  %v2964_v21 = vrot.slane %v7552_v52, %v7428_v15  ;;  %v4698_v30 = vrot.slane %v4670_v40, %v7441_v1  ;;  %v2968_v61 = vrot.slane %v7552_v52, %v7432_v7 }
 0x299   : > { %v4225_v53 = vcombine.low %v4217_v33, %v4224_v20  ;;  %v4699_v57 = vcombine.low %v4677_v35, %v4684_v14  ;;  %v2972_v25 = vrot.slane %v7552_v52, %v7435_v37  ;;  %v2976_v8 = vrot.slane %v7552_v52, %v7438_v23 }
 0x29a   : > { %v4275_v28 = vcombine.low %v2948_v2, %v2952_v32  ;;  %v4276_v6 = vcombine.low %v2956_v59, %v2960_v17  ;;  %v4700_v58 = vcombine.low %v4691_v47, %v4698_v30  ;;  %v4277_v60 = vcombine.low %v2964_v21, %v2968_v61 }
 0x29b   : > { %5010 = vperm.xlu1 %5868, %v4225_v53   ;;  %v4707_v31 = vrot.slane %v4699_v57, %v7441_v1  ;;  %v3172_v27 = vrot.slane %v7719_v62, %v7416_v51  ;;  %v4278_v18 = vcombine.low %v2972_v25, %v2976_v8  ;;  %v3176_v3 = vrot.slane %v7719_v62, %v7419_v43 }
 0x29c   : > { %v4285_v12 = vrot.slane %v4275_v28, %v7441_v1  ;;  %v4292_v38 = vrot.slane %v4276_v6, %v7441_v1  ;;  %v4714_v52 = vrot.slane %v4700_v58, %v7441_v1  ;;  %v4299_v0 = vrot.slane %v4277_v60, %v7441_v1 }
 0x29d   : > { %v3180_v63 = vrot.slane %v7719_v62, %v7422_v16  ;;  %v3184_v29 = vrot.slane %v7719_v62, %v7425_v5  ;;  %v4306_v11 = vrot.slane %v4278_v18, %v7441_v1  ;;  %v3188_v39 = vrot.slane %v7719_v62, %v7428_v15 }
 0x29e   : > { %v4307_v13 = vcombine.low %v4285_v12, %v4292_v38  ;;  %v3192_v36 = vrot.slane %v7719_v62, %v7432_v7  ;;  %v4715_v48 = vcombine.low %v4707_v31, %v4714_v52  ;;  %v3196_v9 = vrot.slane %v7719_v62, %v7435_v37 }
 0x29f   : > { %v3200_v24 = vrot.slane %v7719_v62, %v7438_v23  ;;  %v4618_v34 = vcombine.low %v3172_v27, %v3176_v3  ;;  %v4308_v26 = vcombine.low %v4299_v0, %v4306_v11  ;;  %v4619_v41 = vcombine.low %v3180_v63, %v3184_v29 }
 0x2a0   : > { %v4315_v42 = vrot.slane %v4307_v13, %v7441_v1  ;;  %v4620_v33 = vcombine.low %v3188_v39, %v3192_v36  ;;  %5040 = vperm.xlu0 %5867, %v4715_v48   ;;  %v3012_v32 = vrot.slane %v7568_v10, %v7416_v51  ;;  %v3016_v20 = vrot.slane %v7568_v10, %v7419_v43 }
 0x2a1   : > { %v4621_v46 = vcombine.low %v3196_v9, %v3200_v24  ;;  %v4628_v2 = vrot.slane %v4618_v34, %v7441_v1  ;;  %v4322_v40 = vrot.slane %v4308_v26, %v7441_v1  ;;  %v4635_v62 = vrot.slane %v4619_v41, %v7441_v1 }
 0x2a2   : > { %v4642_v35 = vrot.slane %v4620_v33, %v7441_v1  ;;  %v3020_v14 = vrot.slane %v7568_v10, %v7422_v16  ;;  %v3024_v59 = vrot.slane %v7568_v10, %v7425_v5  ;;  %v3028_v17 = vrot.slane %v7568_v10, %v7428_v15 }
 0x2a3   : > { %v4649_v47 = vrot.slane %v4621_v46, %v7441_v1  ;;  %v3032_v21 = vrot.slane %v7568_v10, %v7432_v7  ;;  %v4323_v53 = vcombine.low %v4315_v42, %v4322_v40  ;;  %v4650_v30 = vcombine.low %v4628_v2, %v4635_v62 }
 0x2a4   : > { %v3036_v57 = vrot.slane %v7568_v10, %v7435_v37  ;;  %v3040_v61 = vrot.slane %v7568_v10, %v7438_v23  ;;  %v4373_v8 = vcombine.low %v3012_v32, %v3016_v20  ;;  %v4374_v28 = vcombine.low %v3020_v14, %v3024_v59 }
 0x2a5   : > { %v4651_v25 = vcombine.low %v4642_v35, %v4649_v47  ;;  %v4375_v6 = vcombine.low %v3028_v17, %v3032_v21  ;;  %5016 = vperm.xlu1 %5868, %v4323_v53   ;;  %v4658_v58 = vrot.slane %v4650_v30, %v7441_v1  ;;  %v3268_v60 = vrot.slane %v7754_v45, %v7416_v51 }
 0x2a6   : > { %v4376_v31 = vcombine.low %v3036_v57, %v3040_v61  ;;  %v3272_v27 = vrot.slane %v7754_v45, %v7419_v43  ;;  %v4383_v12 = vrot.slane %v4373_v8, %v7441_v1  ;;  %v4390_v10 = vrot.slane %v4374_v28, %v7441_v1 }
 0x2a7   : > { %v4665_v18 = vrot.slane %v4651_v25, %v7441_v1  ;;  %v4397_v38 = vrot.slane %v4375_v6, %v7441_v1  ;;  %v3276_v52 = vrot.slane %v7754_v45, %v7422_v16  ;;  %v3280_v0 = vrot.slane %v7754_v45, %v7425_v5 }
 0x2a8   : > { %v4404_v3 = vrot.slane %v4376_v31, %v7441_v1  ;;  %v3284_v63 = vrot.slane %v7754_v45, %v7428_v15  ;;  %v4405_v11 = vcombine.low %v4383_v12, %v4390_v10  ;;  %v3288_v13 = vrot.slane %v7754_v45, %v7432_v7 }
 0x2a9   : > { %v4666_v29 = vcombine.low %v4658_v58, %v4665_v18  ;;  %v3292_v39 = vrot.slane %v7754_v45, %v7435_v37  ;;  %v3296_v48 = vrot.slane %v7754_v45, %v7438_v23  ;;  %v4765_v9 = vcombine.low %v3268_v60, %v3272_v27 }
 0x2aa   : > { %v4406_v36 = vcombine.low %v4397_v38, %v4404_v3  ;;  %v4766_v24 = vcombine.low %v3276_v52, %v3280_v0  ;;  %v4413_v34 = vrot.slane %v4405_v11, %v7441_v1  ;;  %v4767_v26 = vcombine.low %v3284_v63, %v3288_v13 }
 0x2ab   : > { %5037 = vperm.xlu0 %5867, %v4666_v29   ;;  %v3076_v42 = vrot.slane %v7584_v44, %v7416_v51  ;;  %v3080_v41 = vrot.slane %v7584_v44, %v7419_v43  ;;  %v4768_v46 = vcombine.low %v3292_v39, %v3296_v48  ;;  %v4775_v2 = vrot.slane %v4765_v9, %v7441_v1 }
 0x2ac   : > { %v4420_v33 = vrot.slane %v4406_v36, %v7441_v1  ;;  %v4782_v32 = vrot.slane %v4766_v24, %v7441_v1  ;;  %v4789_v45 = vrot.slane %v4767_v26, %v7441_v1  ;;  %v3084_v20 = vrot.slane %v7584_v44, %v7422_v16 }
 0x2ad   : > { %v3088_v40 = vrot.slane %v7584_v44, %v7425_v5  ;;  %v3092_v62 = vrot.slane %v7584_v44, %v7428_v15  ;;  %v4796_v14 = vrot.slane %v4768_v46, %v7441_v1  ;;  %v3096_v59 = vrot.slane %v7584_v44, %v7432_v7 }
 0x2ae   : > { %v4421_v35 = vcombine.low %v4413_v34, %v4420_v33  ;;  %v4797_v47 = vcombine.low %v4775_v2, %v4782_v32  ;;  %v3100_v17 = vrot.slane %v7584_v44, %v7435_v37  ;;  %v3104_v21 = vrot.slane %v7584_v44, %v7438_v23 }
 0x2af   : > { %v4471_v53 = vcombine.low %v3076_v42, %v3080_v41  ;;  %v4472_v30 = vcombine.low %v3084_v20, %v3088_v40  ;;  %v4798_v57 = vcombine.low %v4789_v45, %v4796_v14  ;;  %v4473_v25 = vcombine.low %v3092_v62, %v3096_v59 }
 0x2b0   : > { %5022 = vperm.xlu1 %5868, %v4421_v35   ;;  %v4805_v61 = vrot.slane %v4797_v47, %v7441_v1  ;;  %v3236_v8 = vrot.slane %v7776_v22, %v7416_v51  ;;  %v4474_v28 = vcombine.low %v3100_v17, %v3104_v21  ;;  %v3240_v31 = vrot.slane %v7776_v22, %v7419_v43 }
 0x2b1   : > { %v4481_v6 = vrot.slane %v4471_v53, %v7441_v1  ;;  %v4488_v58 = vrot.slane %v4472_v30, %v7441_v1  ;;  %v4812_v44 = vrot.slane %v4798_v57, %v7441_v1  ;;  %v4495_v60 = vrot.slane %v4473_v25, %v7441_v1 }
 0x2b2   : > { %v3244_v27 = vrot.slane %v7776_v22, %v7422_v16  ;;  %v3248_v18 = vrot.slane %v7776_v22, %v7425_v5  ;;  %v4502_v12 = vrot.slane %v4474_v28, %v7441_v1  ;;  %v3252_v38 = vrot.slane %v7776_v22, %v7428_v15 }
 0x2b3   : > { %v4503_v10 = vcombine.low %v4481_v6, %v4488_v58  ;;  %v3256_v3 = vrot.slane %v7776_v22, %v7432_v7  ;;  %v4813_v52 = vcombine.low %v4805_v61, %v4812_v44  ;;  %v3260_v0 = vrot.slane %v7776_v22, %v7435_v37 }
 0x2b4   : > { %v3264_v63 = vrot.slane %v7776_v22, %v7438_v23  ;;  %v4716_v29 = vcombine.low %v3236_v8, %v3240_v31  ;;  %v4504_v11 = vcombine.low %v4495_v60, %v4502_v12  ;;  %v4717_v39 = vcombine.low %v3244_v27, %v3248_v18 }
 0x2b5   : > { %v4511_v13 = vrot.slane %v4503_v10, %v7441_v1  ;;  %v4718_v36 = vcombine.low %v3252_v38, %v3256_v3  ;;  %5046 = vperm.xlu0 %5867, %v4813_v52   ;;  %v3140_v24 = vrot.slane %v7622_v56, %v7416_v51  ;;  %v3144_v34 = vrot.slane %v7622_v56, %v7419_v43 }
 0x2b6   : > { %v4719_v48 = vcombine.low %v3260_v0, %v3264_v63  ;;  %v4726_v9 = vrot.slane %v4716_v29, %v7441_v1  ;;  %v4518_v26 = vrot.slane %v4504_v11, %v7441_v1  ;;  %v4733_v22 = vrot.slane %v4717_v39, %v7441_v1 }
 0x2b7   : > { %v4740_v42 = vrot.slane %v4718_v36, %v7441_v1  ;;  %v3148_v41 = vrot.slane %v7622_v56, %v7422_v16  ;;  %v3152_v46 = vrot.slane %v7622_v56, %v7425_v5  ;;  %v3156_v2 = vrot.slane %v7622_v56, %v7428_v15 }
 0x2b8   : > { %v4747_v33 = vrot.slane %v4719_v48, %v7441_v1  ;;  %v3160_v32 = vrot.slane %v7622_v56, %v7432_v7  ;;  %v4519_v45 = vcombine.low %v4511_v13, %v4518_v26  ;;  %v4748_v20 = vcombine.low %v4726_v9, %v4733_v22 }
 0x2b9   : > { %v3164_v40 = vrot.slane %v7622_v56, %v7435_v37  ;;  %v3168_v62 = vrot.slane %v7622_v56, %v7438_v23  ;;  %v4569_v14 = vcombine.low %v3140_v24, %v3144_v34  ;;  %v4570_v47 = vcombine.low %v3148_v41, %v3152_v46 }
 0x2ba   : > { %v4749_v35 = vcombine.low %v4740_v42, %v4747_v33  ;;  %v4571_v59 = vcombine.low %v3156_v2, %v3160_v32  ;;  %5028 = vperm.xlu1 %5868, %v4519_v45   ;;  %v4756_v17 = vrot.slane %v4748_v20, %v7441_v1  ;;  %v2820_v53 = vrot.slane %v7669_v4, %v7416_v51 }
 0x2bb   : > { %v4572_v21 = vcombine.low %v3164_v40, %v3168_v62  ;;  %v2824_v30 = vrot.slane %v7669_v4, %v7419_v43  ;;  %v4579_v61 = vrot.slane %v4569_v14, %v7441_v1  ;;  %v4586_v56 = vrot.slane %v4570_v47, %v7441_v1 }
 0x2bc   : > { %v4763_v57 = vrot.slane %v4749_v35, %v7441_v1  ;;  %v4593_v25 = vrot.slane %v4571_v59, %v7441_v1  ;;  %v2828_v28 = vrot.slane %v7669_v4, %v7422_v16  ;;  %v2832_v6 = vrot.slane %v7669_v4, %v7425_v5 }
 0x2bd   : > { %v4600_v8 = vrot.slane %v4572_v21, %v7441_v1  ;;  %v2836_v58 = vrot.slane %v7669_v4, %v7428_v15  ;;  %v4601_v44 = vcombine.low %v4579_v61, %v4586_v56  ;;  %v2840_v60 = vrot.slane %v7669_v4, %v7432_v7 }
 0x2be   : > { %v4764_v31 = vcombine.low %v4756_v17, %v4763_v57  ;;  %v2844_v27 = vrot.slane %v7669_v4, %v7435_v37  ;;  %v2848_v12 = vrot.slane %v7669_v4, %v7438_v23  ;;  %v4079_v10 = vcombine.low %v2820_v53, %v2824_v30 }
 0x2bf   : > { %v4602_v18 = vcombine.low %v4593_v25, %v4600_v8  ;;  %v4080_v38 = vcombine.low %v2828_v28, %v2832_v6  ;;  %v4609_v3 = vrot.slane %v4601_v44, %v7441_v1  ;;  %v4081_v52 = vcombine.low %v2836_v58, %v2840_v60 }
 0x2c0   : > { %5043 = vperm.xlu0 %5867, %v4764_v31   ;;  %v3332_v0 = vrot.slane %v7822_v55, %v7416_v51  ;;  %v3336_v63 = vrot.slane %v7822_v55, %v7419_v43  ;;  %v4082_v11 = vcombine.low %v2844_v27, %v2848_v12  ;;  %v4089_v13 = vrot.slane %v4079_v10, %v7441_v1 }
 0x2c1   : > { %v4616_v29 = vrot.slane %v4602_v18, %v7441_v1  ;;  %v4096_v39 = vrot.slane %v4080_v38, %v7441_v1  ;;  %v4103_v4 = vrot.slane %v4081_v52, %v7441_v1  ;;  %v3340_v36 = vrot.slane %v7822_v55, %v7422_v16 }
 0x2c2   : > { %v3344_v48 = vrot.slane %v7822_v55, %v7425_v5  ;;  %v3348_v9 = vrot.slane %v7822_v55, %v7428_v15  ;;  %v4110_v34 = vrot.slane %v4082_v11, %v7441_v1  ;;  %v3352_v22 = vrot.slane %v7822_v55, %v7432_v7 }
 0x2c3   : > { %v4617_v24 = vcombine.low %v4609_v3, %v4616_v29  ;;  %v4111_v26 = vcombine.low %v4089_v13, %v4096_v39  ;;  %v3356_v42 = vrot.slane %v7822_v55, %v7435_v37  ;;  %v3360_v41 = vrot.slane %v7822_v55, %v7438_v23 }
 0x2c4   : > { %v4863_v33 = vcombine.low %v3332_v0, %v3336_v63  ;;  %v4864_v46 = vcombine.low %v3340_v36, %v3344_v48  ;;  %v4112_v2 = vcombine.low %v4103_v4, %v4110_v34  ;;  %v4865_v45 = vcombine.low %v3348_v9, %v3352_v22 }
 0x2c5   : > { %5034 = vperm.xlu1 %5868, %v4617_v24   ;;  %v4119_v32 = vrot.slane %v4111_v26, %v7441_v1  ;;  %v2852_v20 = vrot.slane %v7699_v54, %v7416_v51  ;;  %v4866_v40 = vcombine.low %v3356_v42, %v3360_v41  ;;  %v2856_v14 = vrot.slane %v7699_v54, %v7419_v43 }
 0x2c6   : > { %v4873_v62 = vrot.slane %v4863_v33, %v7441_v1  ;;  %v4880_v35 = vrot.slane %v4864_v46, %v7441_v1  ;;  %v4126_v55 = vrot.slane %v4112_v2, %v7441_v1  ;;  %v4887_v47 = vrot.slane %v4865_v45, %v7441_v1 }
 0x2c7   : > { %v2860_v59 = vrot.slane %v7699_v54, %v7422_v16  ;;  %v2864_v17 = vrot.slane %v7699_v54, %v7425_v5  ;;  %v4894_v21 = vrot.slane %v4866_v40, %v7441_v1  ;;  %v2868_v30 = vrot.slane %v7699_v54, %v7428_v15 }
 0x2c8   : > { %v4895_v53 = vcombine.low %v4873_v62, %v4880_v35  ;;  %v2872_v57 = vrot.slane %v7699_v54, %v7432_v7  ;;  %v4127_v61 = vcombine.low %v4119_v32, %v4126_v55  ;;  %v2876_v56 = vrot.slane %v7699_v54, %v7435_v37 }
 0x2c9   : > { %v2880_v25 = vrot.slane %v7699_v54, %v7438_v23  ;;  %v4128_v8 = vcombine.low %v2852_v20, %v2856_v14  ;;  %v4896_v28 = vcombine.low %v4887_v47, %v4894_v21  ;;  %v4129_v58 = vcombine.low %v2860_v59, %v2864_v17 }
 0x2ca   : > { %v4903_v6 = vrot.slane %v4895_v53, %v7441_v1  ;;  %v4130_v31 = vcombine.low %v2868_v30, %v2872_v57  ;;  %5004 = vperm.xlu1 %5868, %v4127_v61   ;;  %v3300_v27 = vrot.slane %v7852_v50, %v7416_v51  ;;  %v3304_v18 = vrot.slane %v7852_v50, %v7419_v43  ;;  %v4969_v61 = vpop.permute.xlu1 %4968 }
 0x2cb   : > { %v4131_v44 = vcombine.low %v2876_v56, %v2880_v25  ;;  %v4138_v60 = vrot.slane %v4128_v8, %v7441_v1  ;;  %v4910_v12 = vrot.slane %v4896_v28, %v7441_v1  ;;  %v4145_v54 = vrot.slane %v4129_v58, %v7441_v1 }
 0x2cc   : > { %v4152_v10 = vrot.slane %v4130_v31, %v7441_v1  ;;  %v3308_v38 = vrot.slane %v7852_v50, %v7422_v16  ;;  %v3312_v52 = vrot.slane %v7852_v50, %v7425_v5  ;;  %v3316_v0 = vrot.slane %v7852_v50, %v7428_v15 }
 0x2cd   : > { %v4159_v3 = vrot.slane %v4131_v44, %v7441_v1  ;;  %v3320_v63 = vrot.slane %v7852_v50, %v7432_v7  ;;  %v4911_v29 = vcombine.low %v4903_v6, %v4910_v12  ;;  %v4160_v11 = vcombine.low %v4138_v60, %v4145_v54  ;;  %v4963_v44 = vpop.permute.xlu0 %4962 }
 0x2ce   : > { %v3324_v13 = vrot.slane %v7852_v50, %v7435_v37  ;;  %v3328_v39 = vrot.slane %v7852_v50, %v7438_v23  ;;  %v4814_v36 = vcombine.low %v3300_v27, %v3304_v18  ;;  %v4815_v48 = vcombine.low %v3308_v38, %v3312_v52  ;;  %v4966_v56 = vpop.permute.xlu1 %4965 }
 0x2cf   : > { %v4161_v4 = vcombine.low %v4152_v10, %v4159_v3  ;;  %v4816_v9 = vcombine.low %v3316_v0, %v3320_v63  ;;  %5052 = vperm.xlu0 %5867, %v4911_v29   ;;  %v4168_v24 = vrot.slane %v4160_v11, %v7441_v1  ;;  %v3364_v26 = vrot.slane %v7884_v49, %v7416_v51 }
 0x2d0   : > { %v4817_v34 = vcombine.low %v3324_v13, %v3328_v39  ;;  %v3368_v22 = vrot.slane %v7884_v49, %v7419_v43  ;;  %v4824_v41 = vrot.slane %v4814_v36, %v7441_v1  ;;  %v4831_v50 = vrot.slane %v4815_v48, %v7441_v1 }
 0x2d1   : > { %v4175_v42 = vrot.slane %v4161_v4, %v7441_v1  ;;  %v4838_v33 = vrot.slane %v4816_v9, %v7441_v1  ;;  %v3372_v2 = vrot.slane %v7884_v49, %v7422_v16  ;;  %v3376_v32 = vrot.slane %v7884_v49, %v7425_v5 }
 0x2d2   : > { %v4845_v46 = vrot.slane %v4817_v34, %v7441_v1  ;;  %v3380_v51 = vrot.slane %v7884_v49, %v7428_v15  ;;  %v4846_v45 = vcombine.low %v4824_v41, %v4831_v50  ;;  %v3384_v20 = vrot.slane %v7884_v49, %v7432_v7  ;;  %v8224_v25 = vpop.permute.xlu1 %4974 }
 0x2d3   : > { %v4176_v43 = vcombine.low %v4168_v24, %v4175_v42  ;;  %v3388_v40 = vrot.slane %v7884_v49, %v7435_v37  ;;  %v3392_v35 = vrot.slane %v7884_v49, %v7438_v23  ;;  %v4912_v14 = vcombine.low %v3364_v26, %v3368_v22 }
 0x2d4   : > { %v4847_v62 = vcombine.low %v4838_v33, %v4845_v46  ;;  %v4913_v16 = vcombine.low %v3372_v2, %v3376_v32  ;;  %v4854_v5 = vrot.slane %v4846_v45, %v7441_v1  ;;  %v4914_v55 = vcombine.low %v3380_v51, %v3384_v20 }
 0x2d5   : > { %5007 = vperm.xlu1 %5868, %v4176_v43   ;;  %v4915_v47 = vcombine.low %v3388_v40, %v3392_v35  ;;  %v4922_v59 = vrot.slane %v4912_v14, %v7441_v1  ;;  %v8520_v63 = vlaneseq }
 0x2d6   : > { %v4861_v15 = vrot.slane %v4847_v62, %v7441_v1  ;;  %v4929_v7 = vrot.slane %v4913_v16, %v7441_v1  ;;  %v4936_v17 = vrot.slane %v4914_v55, %v7441_v1  ;;  %v4972_v8 = vpop.permute.xlu1 %4971 }
 0x2d7   : > { %v4943_v21 = vrot.slane %v4915_v47, %v7441_v1  ;;  %v8247_v29 = vand.u32 127, %v8520_v63  ;;  %vm5265_vm0 = vcmp.lt.s32.totalorder %v8520_v63, 256 }
 0x2d8   : > { %v4862_v37 = vcombine.low %v4854_v5, %v4861_v15  ;;  %v4944_v53 = vcombine.low %v4922_v59, %v4929_v7 }
 0x2d9   : > { %v4945_v23 = vcombine.low %v4936_v17, %v4943_v21  ;;  %v5063_v13 = vadd.s32 4294967288, %v8247_v29  ;;  %v5070_v39 = vadd.s32 4294967280, %v8247_v29  ;;  %v5061_v48 = vsub.s32 %v8247_v29, %v6612_v19 }
 0x2da   : > { %5049 = vperm.xlu0 %5867, %v4862_v37   ;;  %v4952_v49 = vrot.slane %v4944_v53, %v7441_v1  ;;  %v8226_v28 = vpop.permute.xlu1 %4980  ;;  %v5077_v9 = vadd.s32 4294967272, %v8247_v29  ;;  %v5084_v26 = vadd.s32 4294967264, %v8247_v29  ;;  %v5091_v46 = vadd.s32 4294967256, %v8247_v29 }
 0x2db   : > { %v4959_v30 = vrot.slane %v4945_v23, %v7441_v1  ;;  %v5066_v36 = vsub.s32 %v5063_v13, %v6612_v19  ;;  %v5073_v34 = vsub.s32 %v5070_v39, %v6612_v19  ;;  %v5062_v32 = vrot.slane %v4963_v44, %v5061_v48 }
 0x2dc   : > { %v5080_v33 = vsub.s32 %v5077_v9, %v6612_v19  ;;  %v5087_v51 = vsub.s32 %v5084_v26, %v6612_v19  ;;  %v5098_v43 = vadd.s32 4294967248, %v8247_v29  ;;  %v5094_v16 = vsub.s32 %v5091_v46, %v6612_v19 }
 0x2dd   : > { %v4960_v57 = vcombine.low %v4952_v49, %v4959_v30  ;;  %v5067_v42 = vrot.slane %v4966_v56, %v5066_v36  ;;  %v5105_v5 = vadd.s32 4294967240, %v8247_v29  ;;  %v5074_v15 = vrot.slane %v4969_v61, %v5073_v34 }
 0x2de   : > { %v8228_v6 = vpop.permute.xlu1 %4977  ;;  %v5081_v14 = vrot.slane %v4972_v8, %v5080_v33  ;;  %v5101_v47 = vsub.s32 %v5098_v43, %v6612_v19  ;;  %v5112_v59 = vadd.s32 4294967232, %v8247_v29  ;;  %v5088_v56 = vrot.slane %v8224_v25, %v5087_v51 }
 0x2df   : > { %5055 = vperm.xlu0 %5867, %v4960_v57   ;;  %v5069_v40 = vsel %vm5068_vm14, %v5067_v42, %v5062_v32  ;;  %v5095_v49 = vrot.slane %v8228_v6, %v5094_v16  ;;  %v5108_v30 = vsub.s32 %v5105_v5, %v6612_v19  ;;  %v5119_v44 = vadd.s32 4294967224, %v8247_v29 }
 0x2e0   : > { %v5076_v37 = vsel %vm5075_vm5, %v5074_v15, %v5069_v40  ;;  %v5115_v8 = vsub.s32 %v5112_v59, %v6612_v19  ;;  %v5102_v25 = vrot.slane %v8226_v28, %v5101_v47  ;;  %v5133_v9 = vadd.s32 4294967208, %v8247_v29 }
 0x2e1   : > { %v5083_v23 = vsel %vm5082_vm2, %v5081_v14, %v5076_v37  ;;  %v5147_v46 = vadd.s32 4294967192, %v8247_v29 }
 0x2e2   : > { %v8230_v58 = vpop.permute.xlu1 %4986 }
 0x2e6   : > { %v8232_v31 = vpop.permute.xlu1 %4983  ;;  %v8236_v27 = vpop.permute.xlu0 %4989 }
 0x2e7   : > { %v5109_v39 = vrot.slane %v8232_v31, %v5108_v30 }
 0x2ed   : > { %v8234_v60 = vpop.permute.xlu1 %4992 }
 0x2f3   : > { %v8238_v18 = vpop.permute.xlu1 %4998 }
 0x2fa   : > { %v8240_v54 = vpop.permute.xlu1 %4995 }
 0x2ff   : > { %v5014_v12 = vpop.permute.xlu0 %5013 }
 0x300   : > { %v5175_v2 = vrot.slane %v5014_v12, %v5066_v36  ;;  %v5126_v36 = vadd.s32 4294967216, %v8247_v29 }
 0x302   : > { %v5129_v28 = vsub.s32 %v5126_v36, %v6612_v19 }
 0x305   : > { %v5020_v10 = vpop.permute.xlu0 %5019 }
 0x306   : > { %v5185_v55 = vrot.slane %v5020_v10, %v5080_v33  ;;  %v5090_v10 = vsel %vm5089_vm7, %v5088_v56, %v5083_v23  ;;  %v5136_v33 = vsub.s32 %v5133_v9, %v6612_v19 }
 0x307   : > { %v5097_v6 = vsel %vm5096_vm6, %v5095_v49, %v5090_v10 }
 0x30a   : > { %v5026_v3 = vpop.permute.xlu0 %5025 }
 0x30b   : > { %v5195_v57 = vrot.slane %v5026_v3, %v5094_v16 }
 0x30f   : > { %v8242_v38 = vpop.permute.xlu1 %5001 }
 0x315   : > { %v8244_v0 = vpop.permute.xlu0 %5031 }
 0x316   : > { %v5205_v3 = vrot.slane %v8244_v0, %v5108_v30  ;;  %v5116_v0 = vrot.slane %v8230_v58, %v5115_v8  ;;  %v5154_v58 = vadd.s32 4294967184, %v8247_v29 }
 0x31a   : > { %v5011_v52 = vpop.permute.xlu1 %5010 }
 0x31b   : > { %v5171_v22 = vrot.slane %v5011_v52, %v5061_v48  ;;  %v5122_v48 = vsub.s32 %v5119_v44, %v6612_v19 }
 0x31d   : > { %v5176_v45 = vsel %vm5068_vm14, %v5175_v2, %v5171_v22 }
 0x31f   : > { %v8251_v4 = vpop.permute.xlu0 %5040 }
 0x324   : > { %v5017_v11 = vpop.permute.xlu1 %5016 }
 0x325   : > { %v5180_v41 = vrot.slane %v5017_v11, %v5073_v34  ;;  %v5104_v34 = vsel %vm5103_vm12, %v5102_v25, %v5097_v6 }
 0x326   : > { %v5111_v22 = vsel %vm5110_vm3, %v5109_v39, %v5104_v34 }
 0x327   : > { %v5181_v62 = vsel %vm5075_vm5, %v5180_v41, %v5176_v45  ;;  %v5123_v41 = vrot.slane %v8236_v27, %v5122_v48  ;;  %v5118_v32 = vsel %vm5117_vm9, %v5116_v0, %v5111_v22  ;;  %v5161_v45 = vadd.s32 4294967176, %v8247_v29 }
 0x328   : > { %v5186_v17 = vsel %vm5082_vm2, %v5185_v55, %v5181_v62  ;;  %v5130_v27 = vrot.slane %v8234_v60, %v5129_v28  ;;  %v5137_v62 = vrot.slane %v8240_v54, %v5136_v33 }
 0x329   : > { %v5125_v40 = vsel %vm5124_vm8, %v5123_v41, %v5118_v32 }
 0x32a   : > { %v8259_v50 = vpop.permute.xlu0 %5037  ;;  %v5132_v60 = vsel %vm5131_vm10, %v5130_v27, %v5125_v40 }
 0x32b   : > { %v5215_v31 = vrot.slane %v8259_v50, %v5122_v48  ;;  %v5220_v50 = vrot.slane %v8251_v4, %v5129_v28  ;;  %v5157_v4 = vsub.s32 %v5154_v58, %v6612_v19  ;;  %v5139_v54 = vsel %vm5138_vm15, %v5137_v62, %v5132_v60 }
 0x32f   : > { %v5023_v24 = vpop.permute.xlu1 %5022 }
 0x330   : > { %v5190_v35 = vrot.slane %v5023_v24, %v5087_v51  ;;  %v5140_v51 = vadd.s32 4294967200, %v8247_v29  ;;  %v5164_v29 = vsub.s32 %v5161_v45, %v6612_v19 }
 0x332   : > { %v5191_v21 = vsel %vm5089_vm7, %v5190_v35, %v5186_v17  ;;  %v5150_v35 = vsub.s32 %v5147_v46, %v6612_v19  ;;  %v5143_v16 = vsub.s32 %v5140_v51, %v6612_v19 }
 0x333   : > { %v5196_v12 = vsel %vm5096_vm6, %v5195_v57, %v5191_v21 }
 0x334   : > { %v8270_v7 = vpop.permute.xlu0 %5046  ;;  %v5151_v17 = vrot.slane %v8242_v38, %v5150_v35  ;;  %v5144_v37 = vrot.slane %v8238_v18, %v5143_v16 }
 0x336   : > { %v5146_v19 = vsel %vm5145_vm4, %v5144_v37, %v5139_v54 }
 0x337   : > { %v5153_v57 = vsel %vm5152_vm13, %v5151_v17, %v5146_v19 }
 0x339   : > { %v5029_v20 = vpop.permute.xlu1 %5028 }
 0x33a   : > { %v5200_v53 = vrot.slane %v5029_v20, %v5101_v47  ;;  %v5230_v47 = vrot.slane %v8270_v7, %v5143_v16 }
 0x33c   : > { %v5201_v52 = vsel %vm5103_vm12, %v5200_v53, %v5196_v12 }
 0x33d   : > { %v5206_v24 = vsel %vm5110_vm3, %v5205_v3, %v5201_v52 }
 0x33f   : > { %v5044_v11 = vpop.permute.xlu0 %5043 }
 0x340   : > { %v5225_v14 = vrot.slane %v5044_v11, %v5136_v33 }
 0x344   : > { %v5035_v61 = vpop.permute.xlu1 %5034 }
 0x345   : > { %v5210_v13 = vrot.slane %v5035_v61, %v5115_v8 }
 0x347   : > { %v5211_v26 = vsel %vm5117_vm9, %v5210_v13, %v5206_v24 }
 0x348   : > { %v5216_v2 = vsel %vm5124_vm8, %v5215_v31, %v5211_v26 }
 0x349   : > { %v5005_v43 = vpop.permute.xlu1 %5004  ;;  %v5221_v20 = vsel %vm5131_vm10, %v5220_v50, %v5216_v2 }
 0x34a   : > { %v5226_v55 = vsel %vm5138_vm15, %v5225_v14, %v5221_v20  ;;  %v5158_v21 = vrot.slane %v5005_v43, %v5157_v4 }
 0x34b   : > { %v5231_v53 = vsel %vm5145_vm4, %v5230_v47, %v5226_v55 }
 0x34c   : > { %v5160_v56 = vsel %vm5159_vm1, %v5158_v21, %v5153_v57 }
 0x34e   : > { %v5053_v42 = vpop.permute.xlu0 %5052 }
 0x34f   : > { %v5240_v30 = vrot.slane %v5053_v42, %v5157_v4 }
 0x354   : > { %v5008_v59 = vpop.permute.xlu1 %5007 }
 0x355   : > { %v5165_v49 = vrot.slane %v5008_v59, %v5164_v29 }
 0x357   : > { %v5167_v44 = vsel %vm5166_vm11, %v5165_v49, %v5160_v56 }
 0x359   : > { %v5050_v5 = vpop.permute.xlu0 %5049 }
 0x35a   : > { %v5235_v15 = vrot.slane %v5050_v5, %v5150_v35 }
 0x35c   : > { %v5236_v23 = vsel %vm5152_vm13, %v5235_v15, %v5231_v53 }
 0x35d   : > { %v5241_v8 = vsel %vm5159_vm1, %v5240_v30, %v5236_v23 }
 0x35e   : > { %v5056_v7 = vpop.permute.xlu0 %5055 }
 0x35f   : > { %v5245_v61 = vrot.slane %v5056_v7, %v5164_v29 }
 0x361   : > { %v5246_v38 = vsel %vm5166_vm11, %v5245_v61, %v5241_v8 }
 0x362   : > { %v5247_v18 = vcombine.low %v5167_v44, %v5246_v38 }
 0x364   : > { %v5254_v12 = vrot.slane %v5247_v18, %v7441_v1 }
 0x366   : > { %v5261_v10 = vrot.slane %v5254_v12, %v7441_v1 }
 0x368   : > { %5267 = vst.msk [vmem:[%s314_s19] sm:$0x3] %vm5265_vm0, %v5261_v10 }
 0x369 PF: > { %p20_p11 = scmp.ge.s32.totalorder %s6163_s27, 4   ;;  %s8521_s23 = smov %s6087_s24 }
 0x36a   : > { %s8522_s24 = smov %s6091_s25  ;;  %s8523_s25 = smov %s6173_s30 }
 0x36b   : > { %s8524_s26 = smov %s6163_s27  ;;  %22 = sbr.rel (!%p20_p11) target bundleno = 7 (0x7), region = 99 }
 0x372   :  { %5287 = vsyncpa [#allocation5], 1 }
 0x373   :  { %5289 = vsyncpa [#allocation5 + $0x1], 1 }
 0x374   :  { %5290 = vsyncpa [#allocation7], 1 }
 0x375   :  { %5292 = vsyncpa [#allocation7 + $0x1], 1 }

</bundles_post_ra>
